<compile_context>
chip_gen: v6e
topology: v6e:2x2x1
jax: 0.10.0
libtpu: 0.0.40
codegen_flags: <defaults>
</compile_context>

<pallas_src>
import math
from functools import partial

import jax
import jax.numpy as jnp
from jax.experimental import pallas as pl
from jax.experimental.pallas import tpu as pltpu


# ------------------------------ in-kernel helpers ------------------------------

def _gelu(x):
    # matches the module's custom tanh-approx GELU
    c = math.sqrt(2.0 / math.pi)
    return 0.5 * x * (1.0 + jnp.tanh(c * (x + 0.044715 * x * x * x)))


def _layer_norm(x, g, b):
    # nn.LayerNorm over the last dim, eps=1e-5
    mean = jnp.mean(x, axis=-1, keepdims=True)
    xc = x - mean
    var = jnp.mean(xc * xc, axis=-1, keepdims=True)
    return xc * jax.lax.rsqrt(var + 1e-5) * g + b


def _mha_heads(q_t, q0, kv_t, k0, v0, n_heads, head_dim, wo, bo):
    """Multi-head attention with the model's 'subsequent' (causal-style) mask.

    q_t : (>=H*Dh, Lq) transposed query projections; head h = rows [q0+h*Dh, q0+(h+1)*Dh)
          (sublane-aligned slices).
    kv_t: (>=.., Lk)   transposed key/value projections (keys at k0, values at v0).
    wo  : (D, D)  output projection, (concat-head in) x (model out) layout.
    bo  : (1, D)
    Returns (Lq, D).
    """
    lq = q_t.shape[1]
    lk = kv_t.shape[1]
    scale = 1.0 / math.sqrt(head_dim)
    # in-kernel mask (element (i, j) allowed iff j <= i), finite fill value
    row = jax.lax.broadcasted_iota(jnp.int32, (lq, lk), 0)
    col = jax.lax.broadcasted_iota(jnp.int32, (lq, lk), 1)
    allowed = col <= row

    out = None
    for h in range(n_heads):
        lo, hi = h * head_dim, (h + 1) * head_dim
        q_h = q_t[q0 + lo:q0 + hi, :]          # (Dh, Lq)
        k_h = kv_t[k0 + lo:k0 + hi, :]         # (Dh, Lk)
        v_h = kv_t[v0 + lo:v0 + hi, :]         # (Dh, Lk)
        s = jax.lax.dot_general(q_h, k_h, (((0,), (0,)), ((), ())),
                                preferred_element_type=jnp.float32) * scale     # (Lq, Lk)
        s = jnp.where(allowed, s, -1e30)
        m = jnp.max(s, axis=-1, keepdims=True)
        p = jnp.exp(s - m)
        denom = jnp.sum(p, axis=-1, keepdims=True)
        p = p * pl.reciprocal(denom, approx=True)
        ctx = jax.lax.dot_general(p, v_h, (((1,), (1,)), ((), ())),
                                  preferred_element_type=jnp.float32)           # (Lq, Dh)
        part = jnp.dot(ctx, wo[lo:hi, :], preferred_element_type=jnp.float32)   # (Lq, D)
        out = part if out is None else out + part
    return out + bo


# --------------------------------- fused kernels --------------------------------

def _input_mlp_pe_kernel(x_ref, w1_ref, b1_ref, w2_ref, b2_ref, pe_ref, o_ref):
    # encoder_input: Linear -> ReLU -> Linear, then + positional encoding
    x = x_ref[0]                                                              # (L, F)
    h = jnp.maximum(jnp.dot(x, w1_ref[...], preferred_element_type=jnp.float32)
                    + b1_ref[...], 0.0)
    y = jnp.dot(h, w2_ref[...], preferred_element_type=jnp.float32) + b2_ref[...]
    o_ref[0] = y + pe_ref[...]


def _input_mlp_kernel(x_ref, w1_ref, b1_ref, w2_ref, b2_ref, o_ref):
    # decoder_input: Linear -> ReLU -> Linear (no positional encoding)
    x = x_ref[0]
    h = jnp.maximum(jnp.dot(x, w1_ref[...], preferred_element_type=jnp.float32)
                    + b1_ref[...], 0.0)
    o_ref[0] = jnp.dot(h, w2_ref[...], preferred_element_type=jnp.float32) + b2_ref[...]


def _encoder_layer_kernel(x_ref, wqkv_ref, bqkv_ref, wo_ref, bo_ref,
                          w1_ref, b1_ref, w2_ref, b2_ref,
                          g1_ref, be1_ref, g2_ref, be2_ref, o_ref, *, n_heads):
    # post-norm nn.TransformerEncoderLayer (dropout = identity)
    x = x_ref[0]                                                              # (L, D)
    d = x.shape[1]
    dh = d // n_heads
    # fused QKV projection: (3D, D) . (L, D)^T -> (3D, L)
    qkv_t = jax.lax.dot_general(wqkv_ref[...], x, (((1,), (1,)), ((), ())),
                                preferred_element_type=jnp.float32) + bqkv_ref[...]
    attn = _mha_heads(qkv_t, 0, qkv_t, d, 2 * d, n_heads, dh, wo_ref[...], bo_ref[...])
    x = _layer_norm(x + attn, g1_ref[...], be1_ref[...])
    h = _gelu(jnp.dot(x, w1_ref[...], preferred_element_type=jnp.float32) + b1_ref[...])
    y = jnp.dot(h, w2_ref[...], preferred_element_type=jnp.float32) + b2_ref[...]
    o_ref[0] = _layer_norm(x + y, g2_ref[...], be2_ref[...])


def _decoder_layer_kernel(x_ref, mem_ref,
                          sa_wqkv_ref, sa_bqkv_ref, sa_wo_ref, sa_bo_ref,
                          ca_wq_ref, ca_bq_ref, ca_wkv_ref, ca_bkv_ref, ca_wo_ref, ca_bo_ref,
                          w1_ref, b1_ref, w2_ref, b2_ref,
                          g1_ref, be1_ref, g2_ref, be2_ref, g3_ref, be3_ref,
                          o_ref, *, n_heads):
    # post-norm nn.TransformerDecoderLayer (dropout = identity)
    x = x_ref[0]                                                              # (Lt, D)
    mem = mem_ref[0]                                                          # (Ls, D)
    d = x.shape[1]
    dh = d // n_heads
    # --- masked self-attention ---
    qkv_t = jax.lax.dot_general(sa_wqkv_ref[...], x, (((1,), (1,)), ((), ())),
                                preferred_element_type=jnp.float32) + sa_bqkv_ref[...]
    sa = _mha_heads(qkv_t, 0, qkv_t, d, 2 * d, n_heads, dh, sa_wo_ref[...], sa_bo_ref[...])
    x = _layer_norm(x + sa, g1_ref[...], be1_ref[...])
    # --- cross-attention (memory mask is also the 'subsequent' mask in this model) ---
    q_t = jax.lax.dot_general(ca_wq_ref[...], x, (((1,), (1,)), ((), ())),
                              preferred_element_type=jnp.float32) + ca_bq_ref[...]       # (D, Lt)
    kv_t = jax.lax.dot_general(ca_wkv_ref[...], mem, (((1,), (1,)), ((), ())),
                               preferred_element_type=jnp.float32) + ca_bkv_ref[...]     # (2D, Ls)
    ca = _mha_heads(q_t, 0, kv_t, 0, d, n_heads, dh, ca_wo_ref[...], ca_bo_ref[...])
    x = _layer_norm(x + ca, g2_ref[...], be2_ref[...])
    # --- feed forward (custom tanh GELU) ---
    h = _gelu(jnp.dot(x, w1_ref[...], preferred_element_type=jnp.float32) + b1_ref[...])
    y = jnp.dot(h, w2_ref[...], preferred_element_type=jnp.float32) + b2_ref[...]
    o_ref[0] = _layer_norm(x + y, g3_ref[...], be3_ref[...])


def _head_kernel(x_ref, w1_ref, b1_ref, w2_ref, b2_ref, o_ref):
    # lc_feat: Linear -> ReLU -> Linear, then clamp(-10,10) + nan_to_num(nan=0)
    x = x_ref[0]
    h = jnp.maximum(jnp.dot(x, w1_ref[...], preferred_element_type=jnp.float32)
                    + b1_ref[...], 0.0)
    y = jnp.dot(h, w2_ref[...], preferred_element_type=jnp.float32) + b2_ref[...]
    o_ref[0] = jnp.where(jnp.isnan(y), 0.0, jnp.clip(y, -10.0, 10.0))


# ------------------------------- pallas_call wrappers ----------------------------

def _full_spec(arr):
    zeros = (0,) * arr.ndim
    return pl.BlockSpec(arr.shape, lambda b: zeros)


_PARALLEL = pltpu.CompilerParams(dimension_semantics=("parallel",))


def input_mlp(x, p, pe=None):
    B, L, F = x.shape
    d_out = p["w2"].shape[1]
    if pe is not None:
        kern = _input_mlp_pe_kernel
        weights = [p["w1"], p["b1"], p["w2"], p["b2"], pe]
    else:
        kern = _input_mlp_kernel
        weights = [p["w1"], p["b1"], p["w2"], p["b2"]]
    return pl.pallas_call(
        kern,
        out_shape=jax.ShapeDtypeStruct((B, L, d_out), jnp.float32),
        grid=(B,),
        in_specs=[pl.BlockSpec((1, L, F), lambda b: (b, 0, 0))]
                 + [_full_spec(w) for w in weights],
        out_specs=pl.BlockSpec((1, L, d_out), lambda b: (b, 0, 0)),
        compiler_params=_PARALLEL,
    )(x, *weights)


def encoder_layer(x, p, n_heads):
    B, L, D = x.shape
    weights = [p["wqkv"], p["bqkv"], p["wo"], p["bo"],
               p["ff_w1"], p["ff_b1"], p["ff_w2"], p["ff_b2"],
               p["n1_g"], p["n1_b"], p["n2_g"], p["n2_b"]]
    return pl.pallas_call(
        partial(_encoder_layer_kernel, n_heads=n_heads),
        out_shape=jax.ShapeDtypeStruct((B, L, D), jnp.float32),
        grid=(B,),
        in_specs=[pl.BlockSpec((1, L, D), lambda b: (b, 0, 0))]
                 + [_full_spec(w) for w in weights],
        out_specs=pl.BlockSpec((1, L, D), lambda b: (b, 0, 0)),
        compiler_params=_PARALLEL,
    )(x, *weights)


def decoder_layer(x, mem, p, n_heads):
    B, Lt, D = x.shape
    Ls = mem.shape[1]
    weights = [p["sa_wqkv"], p["sa_bqkv"], p["sa_wo"], p["sa_bo"],
               p["ca_wq"], p["ca_bq"], p["ca_wkv"], p["ca_bkv"], p["ca_wo"], p["ca_bo"],
               p["ff_w1"], p["ff_b1"], p["ff_w2"], p["ff_b2"],
               p["n1_g"], p["n1_b"], p["n2_g"], p["n2_b"], p["n3_g"], p["n3_b"]]
    return pl.pallas_call(
        partial(_decoder_layer_kernel, n_heads=n_heads),
        out_shape=jax.ShapeDtypeStruct((B, Lt, D), jnp.float32),
        grid=(B,),
        in_specs=[pl.BlockSpec((1, Lt, D), lambda b: (b, 0, 0)),
                  pl.BlockSpec((1, Ls, D), lambda b: (b, 0, 0))]
                 + [_full_spec(w) for w in weights],
        out_specs=pl.BlockSpec((1, Lt, D), lambda b: (b, 0, 0)),
        compiler_params=_PARALLEL,
    )(x, mem, *weights)


def output_head(x, p):
    B, L, D = x.shape
    d_out = p["w2"].shape[1]
    weights = [p["w1"], p["b1"], p["w2"], p["b2"]]
    return pl.pallas_call(
        _head_kernel,
        out_shape=jax.ShapeDtypeStruct((B, L, d_out), jnp.float32),
        grid=(B,),
        in_specs=[pl.BlockSpec((1, L, D), lambda b: (b, 0, 0))]
                 + [_full_spec(w) for w in weights],
        out_specs=pl.BlockSpec((1, L, d_out), lambda b: (b, 0, 0)),
        compiler_params=_PARALLEL,
    )(x, *weights)


# ----------------------------------- forward -------------------------------------

def transformer_forward(params, x_0D, x_ctrl, target_0D, target_ctrl, *, cfg):
    H = cfg["n_heads"]
    # NoiseLayer: identity in eval; RIN=False branch skipped; dropout identity.
    x = jnp.concatenate([x_0D, x_ctrl], axis=2)                # (B, Lin, 26)
    Lin = x.shape[1]
    x = input_mlp(x, params["enc_in"], pe=params["pe"][:Lin])  # (B, Lin, D)
    for lp in params["enc_layers"]:
        x = encoder_layer(x, lp, H)
    mem = x

    t = jnp.concatenate([target_0D, target_ctrl], axis=2)      # (B, Lout, 26)
    t = input_mlp(t, params["dec_in"], pe=None)                # (B, Lout, D)
    for lp in params["dec_layers"]:
        t = decoder_layer(t, mem, lp, H)

    return output_head(t, params["head"])                      # (B, Lout, out_0D_dim)


# -------------------------------- parameter init ---------------------------------

def make_positional_encoding(d_model, max_len):
    position = jnp.arange(max_len, dtype=jnp.float32)[:, None]
    div_term = jnp.exp(jnp.arange(0, d_model, 2, dtype=jnp.float32)
                       * (-math.log(10000.0) / d_model))
    pe = jnp.zeros((max_len, d_model), jnp.float32)
    pe = pe.at[:, 0::2].set(jnp.sin(position * div_term))
    pe = pe.at[:, 1::2].set(jnp.cos(position * div_term))      # d_model is even
    return pe                                                  # (max_len, d_model)


def init_params(key, cfg):
    D = cfg["feature_dim"]
    ff = cfg["dim_feedforward"]
    in_dim = cfg["input_0D_dim"] + cfg["input_ctrl_dim"]
    out_dim = cfg["output_0D_dim"]
    assert D % cfg["n_heads"] == 0

    keys = iter(jax.random.split(key, 256))

    def w(shape, scale=0.05):
        return jax.random.normal(next(keys), shape, jnp.float32) * scale

    zeros = lambda s: jnp.zeros(s, jnp.float32)
    ones = lambda s: jnp.ones(s, jnp.float32)

    def enc_layer_params():
        return dict(
            wqkv=w((3 * D, D)), bqkv=zeros((3 * D, 1)),      # fused in-proj, (out, in) layout
            wo=w((D, D)), bo=zeros((1, D)),
            ff_w1=w((D, ff)), ff_b1=zeros((1, ff)),
            ff_w2=w((ff, D)), ff_b2=zeros((1, D)),
            n1_g=ones((1, D)), n1_b=zeros((1, D)),
            n2_g=ones((1, D)), n2_b=zeros((1, D)))

    def dec_layer_params():
        return dict(
            sa_wqkv=w((3 * D, D)), sa_bqkv=zeros((3 * D, 1)),
            sa_wo=w((D, D)), sa_bo=zeros((1, D)),
            ca_wq=w((D, D)), ca_bq=zeros((D, 1)),
            ca_wkv=w((2 * D, D)), ca_bkv=zeros((2 * D, 1)),
            ca_wo=w((D, D)), ca_bo=zeros((1, D)),
            ff_w1=w((D, ff)), ff_b1=zeros((1, ff)),
            ff_w2=w((ff, D)), ff_b2=zeros((1, D)),
            n1_g=ones((1, D)), n1_b=zeros((1, D)),
            n2_g=ones((1, D)), n2_b=zeros((1, D)),
            n3_g=ones((1, D)), n3_b=zeros((1, D)))

    return dict(
        enc_in=dict(w1=w((in_dim, D // 2)), b1=zeros((1, D // 2)),
                    w2=w((D // 2, D)), b2=zeros((1, D))),
        dec_in=dict(w1=w((in_dim, D // 2)), b1=zeros((1, D // 2)),
                    w2=w((D // 2, D)), b2=zeros((1, D))),
        head=dict(w1=w((D, D // 2)), b1=zeros((1, D // 2)),
                  w2=w((D // 2, out_dim)), b2=zeros((1, out_dim))),
        pe=make_positional_encoding(D, cfg["input_seq_len"]),
        enc_layers=[enc_layer_params() for _ in range(cfg["n_layers"])],
        dec_layers=[dec_layer_params() for _ in range(cfg["n_layers"])],
    )


# ------------------------------------- main ---------------------------------------

if __name__ == "__main__":
    cfg = dict(n_layers=2, n_heads=8, feature_dim=64, dim_feedforward=128,
               input_0D_dim=12, input_ctrl_dim=14, input_seq_len=8,
               output_pred_len=4, output_0D_dim=12)

    key = jax.random.PRNGKey(0)
    kp, k1, k2, k3, k4 = jax.random.split(key, 5)
    params = init_params(kp, cfg)

    B = 2
    x_0D = jax.random.normal(k1, (B, cfg["input_seq_len"], cfg["input_0D_dim"]), jnp.float32)
    x_ctrl = jax.random.normal(k2, (B, cfg["input_seq_len"], cfg["input_ctrl_dim"]), jnp.float32)
    tgt_0D = jax.random.normal(k3, (B, cfg["output_pred_len"], cfg["input_0D_dim"]), jnp.float32)
    tgt_ctrl = jax.random.normal(k4, (B, cfg["output_pred_len"], cfg["input_ctrl_dim"]), jnp.float32)

    fwd = jax.jit(partial(transformer_forward, cfg=cfg))
    out = fwd(params, x_0D, x_ctrl, tgt_0D, tgt_ctrl)
    out = jax.block_until_ready(out)

    assert out.shape == (B, cfg["output_pred_len"], cfg["output_0D_dim"])
    assert bool(jnp.all(jnp.isfinite(out)))
    print("KERNEL_OK")
</pallas_src>

<mosaic_0001>
module attributes {stable_mosaic.version = 11 : i64} {
  func.func @_input_mlp_pe_kernel(%arg0: i32, %arg1: memref<1x8x26xf32, #tpu.memory_space<vmem>>, %arg2: memref<26x32xf32, #tpu.memory_space<vmem>>, %arg3: memref<1x32xf32, #tpu.memory_space<vmem>>, %arg4: memref<32x64xf32, #tpu.memory_space<vmem>>, %arg5: memref<1x64xf32, #tpu.memory_space<vmem>>, %arg6: memref<8x64xf32, #tpu.memory_space<vmem>>, %arg7: memref<1x8x64xf32, #tpu.memory_space<vmem>>) attributes {dimension_semantics = [#tpu.dimension_semantics<parallel>], iteration_bounds = array<i64: 2>, scalar_prefetch = 0 : i64, scratch_operands = 0 : i64, tpu.core_type = #tpu.core_type<tc>, window_params = [{transform_indices = @transform_0, window_bounds = array<i64: 1, 8, 26>}, {pipeline_mode = #tpu.pipeline_mode<synchronous>, transform_indices = @transform_1, window_bounds = array<i64: 26, 32>}, {pipeline_mode = #tpu.pipeline_mode<synchronous>, transform_indices = @transform_2, window_bounds = array<i64: 1, 32>}, {pipeline_mode = #tpu.pipeline_mode<synchronous>, transform_indices = @transform_3, window_bounds = array<i64: 32, 64>}, {pipeline_mode = #tpu.pipeline_mode<synchronous>, transform_indices = @transform_4, window_bounds = array<i64: 1, 64>}, {pipeline_mode = #tpu.pipeline_mode<synchronous>, transform_indices = @transform_5, window_bounds = array<i64: 8, 64>}, {transform_indices = @transform_6, window_bounds = array<i64: 1, 8, 64>}]} {
    %c0 = arith.constant 0 : index
    %c0_0 = arith.constant 0 : index
    %c0_1 = arith.constant 0 : index
    %0 = vector.load %arg1[%c0, %c0_0, %c0_1] : memref<1x8x26xf32, #tpu.memory_space<vmem>>, vector<1x8x26xf32>
    %1 = vector.shape_cast %0 : vector<1x8x26xf32> to vector<8x26xf32>
    %c0_2 = arith.constant 0 : index
    %c0_3 = arith.constant 0 : index
    %2 = vector.load %arg2[%c0_2, %c0_3] : memref<26x32xf32, #tpu.memory_space<vmem>>, vector<26x32xf32>
    %cst = arith.constant dense<0.000000e+00> : vector<8x32xf32>
    %3 = tpu.matmul %1, %2, %cst {dimension_numbers = #tpu.dot_dimension_numbers<[1], [0], [0], [1], [0, 0, 1, 1], [], []>} : vector<8x26xf32>, vector<26x32xf32>, vector<8x32xf32> -> vector<8x32xf32>
    %c0_4 = arith.constant 0 : index
    %c0_5 = arith.constant 0 : index
    %4 = vector.load %arg3[%c0_4, %c0_5] : memref<1x32xf32, #tpu.memory_space<vmem>>, vector<1x32xf32>
    %5 = vector.broadcast %4 : vector<1x32xf32> to vector<8x32xf32>
    %6 = arith.addf %3, %5 : vector<8x32xf32>
    %cst_6 = arith.constant 0.000000e+00 : f32
    %7 = vector.broadcast %cst_6 : f32 to vector<8x32xf32>
    %8 = arith.maximumf %6, %7 : vector<8x32xf32>
    %c0_7 = arith.constant 0 : index
    %c0_8 = arith.constant 0 : index
    %9 = vector.load %arg4[%c0_7, %c0_8] : memref<32x64xf32, #tpu.memory_space<vmem>>, vector<32x64xf32>
    %cst_9 = arith.constant dense<0.000000e+00> : vector<8x64xf32>
    %10 = tpu.matmul %8, %9, %cst_9 {dimension_numbers = #tpu.dot_dimension_numbers<[1], [0], [0], [1], [0, 0, 1, 1], [], []>} : vector<8x32xf32>, vector<32x64xf32>, vector<8x64xf32> -> vector<8x64xf32>
    %c0_10 = arith.constant 0 : index
    %c0_11 = arith.constant 0 : index
    %11 = vector.load %arg5[%c0_10, %c0_11] : memref<1x64xf32, #tpu.memory_space<vmem>>, vector<1x64xf32>
    %12 = vector.broadcast %11 : vector<1x64xf32> to vector<8x64xf32>
    %13 = arith.addf %10, %12 : vector<8x64xf32>
    %c0_12 = arith.constant 0 : index
    %c0_13 = arith.constant 0 : index
    %14 = vector.load %arg6[%c0_12, %c0_13] : memref<8x64xf32, #tpu.memory_space<vmem>>, vector<8x64xf32>
    %15 = arith.addf %13, %14 : vector<8x64xf32>
    %c0_14 = arith.constant 0 : index
    %c0_15 = arith.constant 0 : index
    %c0_16 = arith.constant 0 : index
    %16 = vector.load %arg7[%c0_14, %c0_15, %c0_16] : memref<1x8x64xf32, #tpu.memory_space<vmem>>, vector<1x8x64xf32>
    %17 = vector.shape_cast %16 : vector<1x8x64xf32> to vector<8x64xf32>
    %18 = vector.shape_cast %15 : vector<8x64xf32> to vector<1x8x64xf32>
    tpu.vector_store %arg7[%c0_14, %c0_15, %c0_16], %18 {strides = array<i32>} : memref<1x8x64xf32, #tpu.memory_space<vmem>>, vector<1x8x64xf32>,
    return
  }
  func.func @transform_0(%arg0: i32) -> (i32, i32, i32) {
    %c0_i32 = arith.constant 0 : i32
    %c0_i32_0 = arith.constant 0 : i32
    %c0_i32_1 = arith.constant 0 : i32
    return %arg0, %c0_i32, %c0_i32_0 : i32, i32, i32
  }
  func.func @transform_1(%arg0: i32) -> (i32, i32) {
    %c0_i32 = arith.constant 0 : i32
    %c0_i32_0 = arith.constant 0 : i32
    %c0_i32_1 = arith.constant 0 : i32
    return %c0_i32, %c0_i32_0 : i32, i32
  }
  func.func @transform_2(%arg0: i32) -> (i32, i32) {
    %c0_i32 = arith.constant 0 : i32
    %c0_i32_0 = arith.constant 0 : i32
    %c0_i32_1 = arith.constant 0 : i32
    return %c0_i32, %c0_i32_0 : i32, i32
  }
  func.func @transform_3(%arg0: i32) -> (i32, i32) {
    %c0_i32 = arith.constant 0 : i32
    %c0_i32_0 = arith.constant 0 : i32
    %c0_i32_1 = arith.constant 0 : i32
    return %c0_i32, %c0_i32_0 : i32, i32
  }
  func.func @transform_4(%arg0: i32) -> (i32, i32) {
    %c0_i32 = arith.constant 0 : i32
    %c0_i32_0 = arith.constant 0 : i32
    %c0_i32_1 = arith.constant 0 : i32
    return %c0_i32, %c0_i32_0 : i32, i32
  }
  func.func @transform_5(%arg0: i32) -> (i32, i32) {
    %c0_i32 = arith.constant 0 : i32
    %c0_i32_0 = arith.constant 0 : i32
    %c0_i32_1 = arith.constant 0 : i32
    return %c0_i32, %c0_i32_0 : i32, i32
  }
  func.func @transform_6(%arg0: i32) -> (i32, i32, i32) {
    %c0_i32 = arith.constant 0 : i32
    %c0_i32_0 = arith.constant 0 : i32
    %c0_i32_1 = arith.constant 0 : i32
    return %arg0, %c0_i32, %c0_i32_0 : i32, i32, i32
  }
}

module attributes {stable_mosaic.version = 11 : i64} {
  func.func @_input_mlp_kernel(%arg0: i32, %arg1: memref<1x4x26xf32, #tpu.memory_space<vmem>>, %arg2: memref<26x32xf32, #tpu.memory_space<vmem>>, %arg3: memref<1x32xf32, #tpu.memory_space<vmem>>, %arg4: memref<32x64xf32, #tpu.memory_space<vmem>>, %arg5: memref<1x64xf32, #tpu.memory_space<vmem>>, %arg6: memref<1x4x64xf32, #tpu.memory_space<vmem>>) attributes {dimension_semantics = [#tpu.dimension_semantics<parallel>], iteration_bounds = array<i64: 2>, scalar_prefetch = 0 : i64, scratch_operands = 0 : i64, tpu.core_type = #tpu.core_type<tc>, window_params = [{transform_indices = @transform_0, window_bounds = array<i64: 1, 4, 26>}, {pipeline_mode = #tpu.pipeline_mode<synchronous>, transform_indices = @transform_1, window_bounds = array<i64: 26, 32>}, {pipeline_mode = #tpu.pipeline_mode<synchronous>, transform_indices = @transform_2, window_bounds = array<i64: 1, 32>}, {pipeline_mode = #tpu.pipeline_mode<synchronous>, transform_indices = @transform_3, window_bounds = array<i64: 32, 64>}, {pipeline_mode = #tpu.pipeline_mode<synchronous>, transform_indices = @transform_4, window_bounds = array<i64: 1, 64>}, {transform_indices = @transform_5, window_bounds = array<i64: 1, 4, 64>}]} {
    %c0 = arith.constant 0 : index
    %c0_0 = arith.constant 0 : index
    %c0_1 = arith.constant 0 : index
    %0 = vector.load %arg1[%c0, %c0_0, %c0_1] : memref<1x4x26xf32, #tpu.memory_space<vmem>>, vector<1x4x26xf32>
    %1 = vector.shape_cast %0 : vector<1x4x26xf32> to vector<4x26xf32>
    %c0_2 = arith.constant 0 : index
    %c0_3 = arith.constant 0 : index
    %2 = vector.load %arg2[%c0_2, %c0_3] : memref<26x32xf32, #tpu.memory_space<vmem>>, vector<26x32xf32>
    %cst = arith.constant dense<0.000000e+00> : vector<4x32xf32>
    %3 = tpu.matmul %1, %2, %cst {dimension_numbers = #tpu.dot_dimension_numbers<[1], [0], [0], [1], [0, 0, 1, 1], [], []>} : vector<4x26xf32>, vector<26x32xf32>, vector<4x32xf32> -> vector<4x32xf32>
    %c0_4 = arith.constant 0 : index
    %c0_5 = arith.constant 0 : index
    %4 = vector.load %arg3[%c0_4, %c0_5] : memref<1x32xf32, #tpu.memory_space<vmem>>, vector<1x32xf32>
    %5 = vector.broadcast %4 : vector<1x32xf32> to vector<4x32xf32>
    %6 = arith.addf %3, %5 : vector<4x32xf32>
    %cst_6 = arith.constant 0.000000e+00 : f32
    %7 = vector.broadcast %cst_6 : f32 to vector<4x32xf32>
    %8 = arith.maximumf %6, %7 : vector<4x32xf32>
    %c0_7 = arith.constant 0 : index
    %c0_8 = arith.constant 0 : index
    %9 = vector.load %arg4[%c0_7, %c0_8] : memref<32x64xf32, #tpu.memory_space<vmem>>, vector<32x64xf32>
    %cst_9 = arith.constant dense<0.000000e+00> : vector<4x64xf32>
    %10 = tpu.matmul %8, %9, %cst_9 {dimension_numbers = #tpu.dot_dimension_numbers<[1], [0], [0], [1], [0, 0, 1, 1], [], []>} : vector<4x32xf32>, vector<32x64xf32>, vector<4x64xf32> -> vector<4x64xf32>
    %c0_10 = arith.constant 0 : index
    %c0_11 = arith.constant 0 : index
    %11 = vector.load %arg5[%c0_10, %c0_11] : memref<1x64xf32, #tpu.memory_space<vmem>>, vector<1x64xf32>
    %12 = vector.broadcast %11 : vector<1x64xf32> to vector<4x64xf32>
    %13 = arith.addf %10, %12 : vector<4x64xf32>
    %c0_12 = arith.constant 0 : index
    %c0_13 = arith.constant 0 : index
    %c0_14 = arith.constant 0 : index
    %14 = vector.load %arg6[%c0_12, %c0_13, %c0_14] : memref<1x4x64xf32, #tpu.memory_space<vmem>>, vector<1x4x64xf32>
    %15 = vector.shape_cast %14 : vector<1x4x64xf32> to vector<4x64xf32>
    %16 = vector.shape_cast %13 : vector<4x64xf32> to vector<1x4x64xf32>
    tpu.vector_store %arg6[%c0_12, %c0_13, %c0_14], %16 {strides = array<i32>} : memref<1x4x64xf32, #tpu.memory_space<vmem>>, vector<1x4x64xf32>,
    return
  }
  func.func @transform_0(%arg0: i32) -> (i32, i32, i32) {
    %c0_i32 = arith.constant 0 : i32
    %c0_i32_0 = arith.constant 0 : i32
    %c0_i32_1 = arith.constant 0 : i32
    return %arg0, %c0_i32, %c0_i32_0 : i32, i32, i32
  }
  func.func @transform_1(%arg0: i32) -> (i32, i32) {
    %c0_i32 = arith.constant 0 : i32
    %c0_i32_0 = arith.constant 0 : i32
    %c0_i32_1 = arith.constant 0 : i32
    return %c0_i32, %c0_i32_0 : i32, i32
  }
  func.func @transform_2(%arg0: i32) -> (i32, i32) {
    %c0_i32 = arith.constant 0 : i32
    %c0_i32_0 = arith.constant 0 : i32
    %c0_i32_1 = arith.constant 0 : i32
    return %c0_i32, %c0_i32_0 : i32, i32
  }
  func.func @transform_3(%arg0: i32) -> (i32, i32) {
    %c0_i32 = arith.constant 0 : i32
    %c0_i32_0 = arith.constant 0 : i32
    %c0_i32_1 = arith.constant 0 : i32
    return %c0_i32, %c0_i32_0 : i32, i32
  }
  func.func @transform_4(%arg0: i32) -> (i32, i32) {
    %c0_i32 = arith.constant 0 : i32
    %c0_i32_0 = arith.constant 0 : i32
    %c0_i32_1 = arith.constant 0 : i32
    return %c0_i32, %c0_i32_0 : i32, i32
  }
  func.func @transform_5(%arg0: i32) -> (i32, i32, i32) {
    %c0_i32 = arith.constant 0 : i32
    %c0_i32_0 = arith.constant 0 : i32
    %c0_i32_1 = arith.constant 0 : i32
    return %arg0, %c0_i32, %c0_i32_0 : i32, i32, i32
  }
}

module attributes {stable_mosaic.version = 11 : i64} {
  func.func @_encoder_layer_kernel(%arg0: i32, %arg1: memref<1x8x64xf32, #tpu.memory_space<vmem>>, %arg2: memref<192x64xf32, #tpu.memory_space<vmem>>, %arg3: memref<192x1xf32, #tpu.memory_space<vmem>>, %arg4: memref<64x64xf32, #tpu.memory_space<vmem>>, %arg5: memref<1x64xf32, #tpu.memory_space<vmem>>, %arg6: memref<64x128xf32, #tpu.memory_space<vmem>>, %arg7: memref<1x128xf32, #tpu.memory_space<vmem>>, %arg8: memref<128x64xf32, #tpu.memory_space<vmem>>, %arg9: memref<1x64xf32, #tpu.memory_space<vmem>>, %arg10: memref<1x64xf32, #tpu.memory_space<vmem>>, %arg11: memref<1x64xf32, #tpu.memory_space<vmem>>, %arg12: memref<1x64xf32, #tpu.memory_space<vmem>>, %arg13: memref<1x64xf32, #tpu.memory_space<vmem>>, %arg14: memref<1x8x64xf32, #tpu.memory_space<vmem>>) attributes {dimension_semantics = [#tpu.dimension_semantics<parallel>], iteration_bounds = array<i64: 2>, scalar_prefetch = 0 : i64, scratch_operands = 0 : i64, tpu.core_type = #tpu.core_type<tc>, window_params = [{transform_indices = @transform_0, window_bounds = array<i64: 1, 8, 64>}, {pipeline_mode = #tpu.pipeline_mode<synchronous>, transform_indices = @transform_1, window_bounds = array<i64: 192, 64>}, {pipeline_mode = #tpu.pipeline_mode<synchronous>, transform_indices = @transform_2, window_bounds = array<i64: 192, 1>}, {pipeline_mode = #tpu.pipeline_mode<synchronous>, transform_indices = @transform_3, window_bounds = array<i64: 64, 64>}, {pipeline_mode = #tpu.pipeline_mode<synchronous>, transform_indices = @transform_4, window_bounds = array<i64: 1, 64>}, {pipeline_mode = #tpu.pipeline_mode<synchronous>, transform_indices = @transform_5, window_bounds = array<i64: 64, 128>}, {pipeline_mode = #tpu.pipeline_mode<synchronous>, transform_indices = @transform_6, window_bounds = array<i64: 1, 128>}, {pipeline_mode = #tpu.pipeline_mode<synchronous>, transform_indices = @transform_7, window_bounds = array<i64: 128, 64>}, {pipeline_mode = #tpu.pipeline_mode<synchronous>, transform_indices = @transform_8, window_bounds = array<i64: 1, 64>}, {pipeline_mode = #tpu.pipeline_mode<synchronous>, transform_indices = @transform_9, window_bounds = array<i64: 1, 64>}, {pipeline_mode = #tpu.pipeline_mode<synchronous>, transform_indices = @transform_10, window_bounds = array<i64: 1, 64>}, {pipeline_mode = #tpu.pipeline_mode<synchronous>, transform_indices = @transform_11, window_bounds = array<i64: 1, 64>}, {pipeline_mode = #tpu.pipeline_mode<synchronous>, transform_indices = @transform_12, window_bounds = array<i64: 1, 64>}, {transform_indices = @transform_13, window_bounds = array<i64: 1, 8, 64>}]} {
    %c0 = arith.constant 0 : index
    %c0_0 = arith.constant 0 : index
    %c0_1 = arith.constant 0 : index
    %0 = vector.load %arg1[%c0, %c0_0, %c0_1] : memref<1x8x64xf32, #tpu.memory_space<vmem>>, vector<1x8x64xf32>
    %1 = vector.shape_cast %0 : vector<1x8x64xf32> to vector<8x64xf32>
    %c0_2 = arith.constant 0 : index
    %c0_3 = arith.constant 0 : index
    %2 = vector.load %arg2[%c0_2, %c0_3] : memref<192x64xf32, #tpu.memory_space<vmem>>, vector<192x64xf32>
    %cst = arith.constant dense<0.000000e+00> : vector<192x8xf32>
    %3 = tpu.matmul %2, %1, %cst {dimension_numbers = #tpu.dot_dimension_numbers<[1], [1], [0], [0], [0, 0, 1, 0], [], []>} : vector<192x64xf32>, vector<8x64xf32>, vector<192x8xf32> -> vector<192x8xf32>
    %c0_4 = arith.constant 0 : index
    %c0_5 = arith.constant 0 : index
    %4 = vector.load %arg3[%c0_4, %c0_5] : memref<192x1xf32, #tpu.memory_space<vmem>>, vector<192x1xf32>
    %5 = vector.broadcast %4 : vector<192x1xf32> to vector<192x8xf32>
    %6 = arith.addf %3, %5 : vector<192x8xf32>
    %c0_6 = arith.constant 0 : index
    %c0_7 = arith.constant 0 : index
    %7 = vector.load %arg4[%c0_6, %c0_7] : memref<64x64xf32, #tpu.memory_space<vmem>>, vector<64x64xf32>
    %c0_8 = arith.constant 0 : index
    %c0_9 = arith.constant 0 : index
    %8 = vector.load %arg5[%c0_8, %c0_9] : memref<1x64xf32, #tpu.memory_space<vmem>>, vector<1x64xf32>
    %9 = tpu.iota {dimensions = array<i32: 0>} : vector<8x8xi32>
    %10 = tpu.iota {dimensions = array<i32: 1>} : vector<8x8xi32>
    %11 = arith.cmpi sle, %10, %9 : vector<8x8xi32>
    %12 = vector.extract_strided_slice %6 {offsets = [0, 0], sizes = [8, 8], strides = [1, 1]} : vector<192x8xf32> to vector<8x8xf32>
    %13 = vector.extract_strided_slice %6 {offsets = [64, 0], sizes = [8, 8], strides = [1, 1]} : vector<192x8xf32> to vector<8x8xf32>
    %14 = vector.extract_strided_slice %6 {offsets = [128, 0], sizes = [8, 8], strides = [1, 1]} : vector<192x8xf32> to vector<8x8xf32>
    %cst_10 = arith.constant dense<0.000000e+00> : vector<8x8xf32>
    %15 = tpu.matmul %12, %13, %cst_10 {dimension_numbers = #tpu.dot_dimension_numbers<[0], [0], [1], [1], [0, 1, 1, 1], [], []>} : vector<8x8xf32>, vector<8x8xf32>, vector<8x8xf32> -> vector<8x8xf32>
    %cst_11 = arith.constant 0.353553385 : f32
    %16 = vector.broadcast %cst_11 : f32 to vector<8x8xf32>
    %17 = arith.mulf %15, %16 : vector<8x8xf32>
    %cst_12 = arith.constant -1.000000e+30 : f32
    %18 = vector.broadcast %cst_12 : f32 to vector<8x8xf32>
    %19 = arith.select %11, %17, %18 : vector<8x8xi1>, vector<8x8xf32>
    %cst_13 = arith.constant dense<0xFF800000> : vector<8xf32>
    %20 = vector.multi_reduction <maximumf>, %19, %cst_13 [1] : vector<8x8xf32> to vector<8xf32>
    %21 = vector.shape_cast %20 : vector<8xf32> to vector<8x1xf32>
    %22 = vector.broadcast %21 : vector<8x1xf32> to vector<8x8xf32>
    %23 = arith.subf %19, %22 : vector<8x8xf32>
    %24 = math.exp %23 : vector<8x8xf32>
    %cst_14 = arith.constant dense<0.000000e+00> : vector<8xf32>
    %25 = vector.multi_reduction <add>, %24, %cst_14 [1] : vector<8x8xf32> to vector<8xf32>
    %26 = vector.shape_cast %25 : vector<8xf32> to vector<8x1xf32>
    %27 = tpu.reciprocal %26 {approx = true} : vector<8x1xf32> -> vector<8x1xf32>
    %28 = vector.broadcast %27 : vector<8x1xf32> to vector<8x8xf32>
    %29 = arith.mulf %24, %28 : vector<8x8xf32>
    %cst_15 = arith.constant dense<0.000000e+00> : vector<8x8xf32>
    %30 = tpu.matmul %29, %14, %cst_15 {dimension_numbers = #tpu.dot_dimension_numbers<[1], [1], [0], [0], [0, 0, 1, 0], [], []>} : vector<8x8xf32>, vector<8x8xf32>, vector<8x8xf32> -> vector<8x8xf32>
    %31 = vector.extract_strided_slice %7 {offsets = [0, 0], sizes = [8, 64], strides = [1, 1]} : vector<64x64xf32> to vector<8x64xf32>
    %cst_16 = arith.constant dense<0.000000e+00> : vector<8x64xf32>
    %32 = tpu.matmul %30, %31, %cst_16 {dimension_numbers = #tpu.dot_dimension_numbers<[1], [0], [0], [1], [0, 0, 1, 1], [], []>} : vector<8x8xf32>, vector<8x64xf32>, vector<8x64xf32> -> vector<8x64xf32>
    %33 = vector.extract_strided_slice %6 {offsets = [8, 0], sizes = [8, 8], strides = [1, 1]} : vector<192x8xf32> to vector<8x8xf32>
    %34 = vector.extract_strided_slice %6 {offsets = [72, 0], sizes = [8, 8], strides = [1, 1]} : vector<192x8xf32> to vector<8x8xf32>
    %35 = vector.extract_strided_slice %6 {offsets = [136, 0], sizes = [8, 8], strides = [1, 1]} : vector<192x8xf32> to vector<8x8xf32>
    %cst_17 = arith.constant dense<0.000000e+00> : vector<8x8xf32>
    %36 = tpu.matmul %33, %34, %cst_17 {dimension_numbers = #tpu.dot_dimension_numbers<[0], [0], [1], [1], [0, 1, 1, 1], [], []>} : vector<8x8xf32>, vector<8x8xf32>, vector<8x8xf32> -> vector<8x8xf32>
    %cst_18 = arith.constant 0.353553385 : f32
    %37 = vector.broadcast %cst_18 : f32 to vector<8x8xf32>
    %38 = arith.mulf %36, %37 : vector<8x8xf32>
    %cst_19 = arith.constant -1.000000e+30 : f32
    %39 = vector.broadcast %cst_19 : f32 to vector<8x8xf32>
    %40 = arith.select %11, %38, %39 : vector<8x8xi1>, vector<8x8xf32>
    %cst_20 = arith.constant dense<0xFF800000> : vector<8xf32>
    %41 = vector.multi_reduction <maximumf>, %40, %cst_20 [1] : vector<8x8xf32> to vector<8xf32>
    %42 = vector.shape_cast %41 : vector<8xf32> to vector<8x1xf32>
    %43 = vector.broadcast %42 : vector<8x1xf32> to vector<8x8xf32>
    %44 = arith.subf %40, %43 : vector<8x8xf32>
    %45 = math.exp %44 : vector<8x8xf32>
    %cst_21 = arith.constant dense<0.000000e+00> : vector<8xf32>
    %46 = vector.multi_reduction <add>, %45, %cst_21 [1] : vector<8x8xf32> to vector<8xf32>
    %47 = vector.shape_cast %46 : vector<8xf32> to vector<8x1xf32>
    %48 = tpu.reciprocal %47 {approx = true} : vector<8x1xf32> -> vector<8x1xf32>
    %49 = vector.broadcast %48 : vector<8x1xf32> to vector<8x8xf32>
    %50 = arith.mulf %45, %49 : vector<8x8xf32>
    %cst_22 = arith.constant dense<0.000000e+00> : vector<8x8xf32>
    %51 = tpu.matmul %50, %35, %cst_22 {dimension_numbers = #tpu.dot_dimension_numbers<[1], [1], [0], [0], [0, 0, 1, 0], [], []>} : vector<8x8xf32>, vector<8x8xf32>, vector<8x8xf32> -> vector<8x8xf32>
    %52 = vector.extract_strided_slice %7 {offsets = [8, 0], sizes = [8, 64], strides = [1, 1]} : vector<64x64xf32> to vector<8x64xf32>
    %cst_23 = arith.constant dense<0.000000e+00> : vector<8x64xf32>
    %53 = tpu.matmul %51, %52, %cst_23 {dimension_numbers = #tpu.dot_dimension_numbers<[1], [0], [0], [1], [0, 0, 1, 1], [], []>} : vector<8x8xf32>, vector<8x64xf32>, vector<8x64xf32> -> vector<8x64xf32>
    %54 = arith.addf %32, %53 : vector<8x64xf32>
    %55 = vector.extract_strided_slice %6 {offsets = [16, 0], sizes = [8, 8], strides = [1, 1]} : vector<192x8xf32> to vector<8x8xf32>
    %56 = vector.extract_strided_slice %6 {offsets = [80, 0], sizes = [8, 8], strides = [1, 1]} : vector<192x8xf32> to vector<8x8xf32>
    %57 = vector.extract_strided_slice %6 {offsets = [144, 0], sizes = [8, 8], strides = [1, 1]} : vector<192x8xf32> to vector<8x8xf32>
    %cst_24 = arith.constant dense<0.000000e+00> : vector<8x8xf32>
    %58 = tpu.matmul %55, %56, %cst_24 {dimension_numbers = #tpu.dot_dimension_numbers<[0], [0], [1], [1], [0, 1, 1, 1], [], []>} : vector<8x8xf32>, vector<8x8xf32>, vector<8x8xf32> -> vector<8x8xf32>
    %cst_25 = arith.constant 0.353553385 : f32
    %59 = vector.broadcast %cst_25 : f32 to vector<8x8xf32>
    %60 = arith.mulf %58, %59 : vector<8x8xf32>
    %cst_26 = arith.constant -1.000000e+30 : f32
    %61 = vector.broadcast %cst_26 : f32 to vector<8x8xf32>
    %62 = arith.select %11, %60, %61 : vector<8x8xi1>, vector<8x8xf32>
    %cst_27 = arith.constant dense<0xFF800000> : vector<8xf32>
    %63 = vector.multi_reduction <maximumf>, %62, %cst_27 [1] : vector<8x8xf32> to vector<8xf32>
    %64 = vector.shape_cast %63 : vector<8xf32> to vector<8x1xf32>
    %65 = vector.broadcast %64 : vector<8x1xf32> to vector<8x8xf32>
    %66 = arith.subf %62, %65 : vector<8x8xf32>
    %67 = math.exp %66 : vector<8x8xf32>
    %cst_28 = arith.constant dense<0.000000e+00> : vector<8xf32>
    %68 = vector.multi_reduction <add>, %67, %cst_28 [1] : vector<8x8xf32> to vector<8xf32>
    %69 = vector.shape_cast %68 : vector<8xf32> to vector<8x1xf32>
    %70 = tpu.reciprocal %69 {approx = true} : vector<8x1xf32> -> vector<8x1xf32>
    %71 = vector.broadcast %70 : vector<8x1xf32> to vector<8x8xf32>
    %72 = arith.mulf %67, %71 : vector<8x8xf32>
    %cst_29 = arith.constant dense<0.000000e+00> : vector<8x8xf32>
    %73 = tpu.matmul %72, %57, %cst_29 {dimension_numbers = #tpu.dot_dimension_numbers<[1], [1], [0], [0], [0, 0, 1, 0], [], []>} : vector<8x8xf32>, vector<8x8xf32>, vector<8x8xf32> -> vector<8x8xf32>
    %74 = vector.extract_strided_slice %7 {offsets = [16, 0], sizes = [8, 64], strides = [1, 1]} : vector<64x64xf32> to vector<8x64xf32>
    %cst_30 = arith.constant dense<0.000000e+00> : vector<8x64xf32>
    %75 = tpu.matmul %73, %74, %cst_30 {dimension_numbers = #tpu.dot_dimension_numbers<[1], [0], [0], [1], [0, 0, 1, 1], [], []>} : vector<8x8xf32>, vector<8x64xf32>, vector<8x64xf32> -> vector<8x64xf32>
    %76 = arith.addf %54, %75 : vector<8x64xf32>
    %77 = vector.extract_strided_slice %6 {offsets = [24, 0], sizes = [8, 8], strides = [1, 1]} : vector<192x8xf32> to vector<8x8xf32>
    %78 = vector.extract_strided_slice %6 {offsets = [88, 0], sizes = [8, 8], strides = [1, 1]} : vector<192x8xf32> to vector<8x8xf32>
    %79 = vector.extract_strided_slice %6 {offsets = [152, 0], sizes = [8, 8], strides = [1, 1]} : vector<192x8xf32> to vector<8x8xf32>
    %cst_31 = arith.constant dense<0.000000e+00> : vector<8x8xf32>
    %80 = tpu.matmul %77, %78, %cst_31 {dimension_numbers = #tpu.dot_dimension_numbers<[0], [0], [1], [1], [0, 1, 1, 1], [], []>} : vector<8x8xf32>, vector<8x8xf32>, vector<8x8xf32> -> vector<8x8xf32>
    %cst_32 = arith.constant 0.353553385 : f32
    %81 = vector.broadcast %cst_32 : f32 to vector<8x8xf32>
    %82 = arith.mulf %80, %81 : vector<8x8xf32>
    %cst_33 = arith.constant -1.000000e+30 : f32
    %83 = vector.broadcast %cst_33 : f32 to vector<8x8xf32>
    %84 = arith.select %11, %82, %83 : vector<8x8xi1>, vector<8x8xf32>
    %cst_34 = arith.constant dense<0xFF800000> : vector<8xf32>
    %85 = vector.multi_reduction <maximumf>, %84, %cst_34 [1] : vector<8x8xf32> to vector<8xf32>
    %86 = vector.shape_cast %85 : vector<8xf32> to vector<8x1xf32>
    %87 = vector.broadcast %86 : vector<8x1xf32> to vector<8x8xf32>
    %88 = arith.subf %84, %87 : vector<8x8xf32>
    %89 = math.exp %88 : vector<8x8xf32>
    %cst_35 = arith.constant dense<0.000000e+00> : vector<8xf32>
    %90 = vector.multi_reduction <add>, %89, %cst_35 [1] : vector<8x8xf32> to vector<8xf32>
    %91 = vector.shape_cast %90 : vector<8xf32> to vector<8x1xf32>
    %92 = tpu.reciprocal %91 {approx = true} : vector<8x1xf32> -> vector<8x1xf32>
    %93 = vector.broadcast %92 : vector<8x1xf32> to vector<8x8xf32>
    %94 = arith.mulf %89, %93 : vector<8x8xf32>
    %cst_36 = arith.constant dense<0.000000e+00> : vector<8x8xf32>
    %95 = tpu.matmul %94, %79, %cst_36 {dimension_numbers = #tpu.dot_dimension_numbers<[1], [1], [0], [0], [0, 0, 1, 0], [], []>} : vector<8x8xf32>, vector<8x8xf32>, vector<8x8xf32> -> vector<8x8xf32>
    %96 = vector.extract_strided_slice %7 {offsets = [24, 0], sizes = [8, 64], strides = [1, 1]} : vector<64x64xf32> to vector<8x64xf32>
    %cst_37 = arith.constant dense<0.000000e+00> : vector<8x64xf32>
    %97 = tpu.matmul %95, %96, %cst_37 {dimension_numbers = #tpu.dot_dimension_numbers<[1], [0], [0], [1], [0, 0, 1, 1], [], []>} : vector<8x8xf32>, vector<8x64xf32>, vector<8x64xf32> -> vector<8x64xf32>
    %98 = arith.addf %76, %97 : vector<8x64xf32>
    %99 = vector.extract_strided_slice %6 {offsets = [32, 0], sizes = [8, 8], strides = [1, 1]} : vector<192x8xf32> to vector<8x8xf32>
    %100 = vector.extract_strided_slice %6 {offsets = [96, 0], sizes = [8, 8], strides = [1, 1]} : vector<192x8xf32> to vector<8x8xf32>
    %101 = vector.extract_strided_slice %6 {offsets = [160, 0], sizes = [8, 8], strides = [1, 1]} : vector<192x8xf32> to vector<8x8xf32>
    %cst_38 = arith.constant dense<0.000000e+00> : vector<8x8xf32>
    %102 = tpu.matmul %99, %100, %cst_38 {dimension_numbers = #tpu.dot_dimension_numbers<[0], [0], [1], [1], [0, 1, 1, 1], [], []>} : vector<8x8xf32>, vector<8x8xf32>, vector<8x8xf32> -> vector<8x8xf32>
    %cst_39 = arith.constant 0.353553385 : f32
    %103 = vector.broadcast %cst_39 : f32 to vector<8x8xf32>
    %104 = arith.mulf %102, %103 : vector<8x8xf32>
    %cst_40 = arith.constant -1.000000e+30 : f32
    %105 = vector.broadcast %cst_40 : f32 to vector<8x8xf32>
    %106 = arith.select %11, %104, %105 : vector<8x8xi1>, vector<8x8xf32>
    %cst_41 = arith.constant dense<0xFF800000> : vector<8xf32>
    %107 = vector.multi_reduction <maximumf>, %106, %cst_41 [1] : vector<8x8xf32> to vector<8xf32>
    %108 = vector.shape_cast %107 : vector<8xf32> to vector<8x1xf32>
    %109 = vector.broadcast %108 : vector<8x1xf32> to vector<8x8xf32>
    %110 = arith.subf %106, %109 : vector<8x8xf32>
    %111 = math.exp %110 : vector<8x8xf32>
    %cst_42 = arith.constant dense<0.000000e+00> : vector<8xf32>
    %112 = vector.multi_reduction <add>, %111, %cst_42 [1] : vector<8x8xf32> to vector<8xf32>
    %113 = vector.shape_cast %112 : vector<8xf32> to vector<8x1xf32>
    %114 = tpu.reciprocal %113 {approx = true} : vector<8x1xf32> -> vector<8x1xf32>
    %115 = vector.broadcast %114 : vector<8x1xf32> to vector<8x8xf32>
    %116 = arith.mulf %111, %115 : vector<8x8xf32>
    %cst_43 = arith.constant dense<0.000000e+00> : vector<8x8xf32>
    %117 = tpu.matmul %116, %101, %cst_43 {dimension_numbers = #tpu.dot_dimension_numbers<[1], [1], [0], [0], [0, 0, 1, 0], [], []>} : vector<8x8xf32>, vector<8x8xf32>, vector<8x8xf32> -> vector<8x8xf32>
    %118 = vector.extract_strided_slice %7 {offsets = [32, 0], sizes = [8, 64], strides = [1, 1]} : vector<64x64xf32> to vector<8x64xf32>
    %cst_44 = arith.constant dense<0.000000e+00> : vector<8x64xf32>
    %119 = tpu.matmul %117, %118, %cst_44 {dimension_numbers = #tpu.dot_dimension_numbers<[1], [0], [0], [1], [0, 0, 1, 1], [], []>} : vector<8x8xf32>, vector<8x64xf32>, vector<8x64xf32> -> vector<8x64xf32>
    %120 = arith.addf %98, %119 : vector<8x64xf32>
    %121 = vector.extract_strided_slice %6 {offsets = [40, 0], sizes = [8, 8], strides = [1, 1]} : vector<192x8xf32> to vector<8x8xf32>
    %122 = vector.extract_strided_slice %6 {offsets = [104, 0], sizes = [8, 8], strides = [1, 1]} : vector<192x8xf32> to vector<8x8xf32>
    %123 = vector.extract_strided_slice %6 {offsets = [168, 0], sizes = [8, 8], strides = [1, 1]} : vector<192x8xf32> to vector<8x8xf32>
    %cst_45 = arith.constant dense<0.000000e+00> : vector<8x8xf32>
    %124 = tpu.matmul %121, %122, %cst_45 {dimension_numbers = #tpu.dot_dimension_numbers<[0], [0], [1], [1], [0, 1, 1, 1], [], []>} : vector<8x8xf32>, vector<8x8xf32>, vector<8x8xf32> -> vector<8x8xf32>
    %cst_46 = arith.constant 0.353553385 : f32
    %125 = vector.broadcast %cst_46 : f32 to vector<8x8xf32>
    %126 = arith.mulf %124, %125 : vector<8x8xf32>
    %cst_47 = arith.constant -1.000000e+30 : f32
    %127 = vector.broadcast %cst_47 : f32 to vector<8x8xf32>
    %128 = arith.select %11, %126, %127 : vector<8x8xi1>, vector<8x8xf32>
    %cst_48 = arith.constant dense<0xFF800000> : vector<8xf32>
    %129 = vector.multi_reduction <maximumf>, %128, %cst_48 [1] : vector<8x8xf32> to vector<8xf32>
    %130 = vector.shape_cast %129 : vector<8xf32> to vector<8x1xf32>
    %131 = vector.broadcast %130 : vector<8x1xf32> to vector<8x8xf32>
    %132 = arith.subf %128, %131 : vector<8x8xf32>
    %133 = math.exp %132 : vector<8x8xf32>
    %cst_49 = arith.constant dense<0.000000e+00> : vector<8xf32>
    %134 = vector.multi_reduction <add>, %133, %cst_49 [1] : vector<8x8xf32> to vector<8xf32>
    %135 = vector.shape_cast %134 : vector<8xf32> to vector<8x1xf32>
    %136 = tpu.reciprocal %135 {approx = true} : vector<8x1xf32> -> vector<8x1xf32>
    %137 = vector.broadcast %136 : vector<8x1xf32> to vector<8x8xf32>
    %138 = arith.mulf %133, %137 : vector<8x8xf32>
    %cst_50 = arith.constant dense<0.000000e+00> : vector<8x8xf32>
    %139 = tpu.matmul %138, %123, %cst_50 {dimension_numbers = #tpu.dot_dimension_numbers<[1], [1], [0], [0], [0, 0, 1, 0], [], []>} : vector<8x8xf32>, vector<8x8xf32>, vector<8x8xf32> -> vector<8x8xf32>
    %140 = vector.extract_strided_slice %7 {offsets = [40, 0], sizes = [8, 64], strides = [1, 1]} : vector<64x64xf32> to vector<8x64xf32>
    %cst_51 = arith.constant dense<0.000000e+00> : vector<8x64xf32>
    %141 = tpu.matmul %139, %140, %cst_51 {dimension_numbers = #tpu.dot_dimension_numbers<[1], [0], [0], [1], [0, 0, 1, 1], [], []>} : vector<8x8xf32>, vector<8x64xf32>, vector<8x64xf32> -> vector<8x64xf32>
    %142 = arith.addf %120, %141 : vector<8x64xf32>
    %143 = vector.extract_strided_slice %6 {offsets = [48, 0], sizes = [8, 8], strides = [1, 1]} : vector<192x8xf32> to vector<8x8xf32>
    %144 = vector.extract_strided_slice %6 {offsets = [112, 0], sizes = [8, 8], strides = [1, 1]} : vector<192x8xf32> to vector<8x8xf32>
    %145 = vector.extract_strided_slice %6 {offsets = [176, 0], sizes = [8, 8], strides = [1, 1]} : vector<192x8xf32> to vector<8x8xf32>
    %cst_52 = arith.constant dense<0.000000e+00> : vector<8x8xf32>
    %146 = tpu.matmul %143, %144, %cst_52 {dimension_numbers = #tpu.dot_dimension_numbers<[0], [0], [1], [1], [0, 1, 1, 1], [], []>} : vector<8x8xf32>, vector<8x8xf32>, vector<8x8xf32> -> vector<8x8xf32>
    %cst_53 = arith.constant 0.353553385 : f32
    %147 = vector.broadcast %cst_53 : f32 to vector<8x8xf32>
    %148 = arith.mulf %146, %147 : vector<8x8xf32>
    %cst_54 = arith.constant -1.000000e+30 : f32
    %149 = vector.broadcast %cst_54 : f32 to vector<8x8xf32>
    %150 = arith.select %11, %148, %149 : vector<8x8xi1>, vector<8x8xf32>
    %cst_55 = arith.constant dense<0xFF800000> : vector<8xf32>
    %151 = vector.multi_reduction <maximumf>, %150, %cst_55 [1] : vector<8x8xf32> to vector<8xf32>
    %152 = vector.shape_cast %151 : vector<8xf32> to vector<8x1xf32>
    %153 = vector.broadcast %152 : vector<8x1xf32> to vector<8x8xf32>
    %154 = arith.subf %150, %153 : vector<8x8xf32>
    %155 = math.exp %154 : vector<8x8xf32>
    %cst_56 = arith.constant dense<0.000000e+00> : vector<8xf32>
    %156 = vector.multi_reduction <add>, %155, %cst_56 [1] : vector<8x8xf32> to vector<8xf32>
    %157 = vector.shape_cast %156 : vector<8xf32> to vector<8x1xf32>
    %158 = tpu.reciprocal %157 {approx = true} : vector<8x1xf32> -> vector<8x1xf32>
    %159 = vector.broadcast %158 : vector<8x1xf32> to vector<8x8xf32>
    %160 = arith.mulf %155, %159 : vector<8x8xf32>
    %cst_57 = arith.constant dense<0.000000e+00> : vector<8x8xf32>
    %161 = tpu.matmul %160, %145, %cst_57 {dimension_numbers = #tpu.dot_dimension_numbers<[1], [1], [0], [0], [0, 0, 1, 0], [], []>} : vector<8x8xf32>, vector<8x8xf32>, vector<8x8xf32> -> vector<8x8xf32>
    %162 = vector.extract_strided_slice %7 {offsets = [48, 0], sizes = [8, 64], strides = [1, 1]} : vector<64x64xf32> to vector<8x64xf32>
    %cst_58 = arith.constant dense<0.000000e+00> : vector<8x64xf32>
    %163 = tpu.matmul %161, %162, %cst_58 {dimension_numbers = #tpu.dot_dimension_numbers<[1], [0], [0], [1], [0, 0, 1, 1], [], []>} : vector<8x8xf32>, vector<8x64xf32>, vector<8x64xf32> -> vector<8x64xf32>
    %164 = arith.addf %142, %163 : vector<8x64xf32>
    %165 = vector.extract_strided_slice %6 {offsets = [56, 0], sizes = [8, 8], strides = [1, 1]} : vector<192x8xf32> to vector<8x8xf32>
    %166 = vector.extract_strided_slice %6 {offsets = [120, 0], sizes = [8, 8], strides = [1, 1]} : vector<192x8xf32> to vector<8x8xf32>
    %167 = vector.extract_strided_slice %6 {offsets = [184, 0], sizes = [8, 8], strides = [1, 1]} : vector<192x8xf32> to vector<8x8xf32>
    %cst_59 = arith.constant dense<0.000000e+00> : vector<8x8xf32>
    %168 = tpu.matmul %165, %166, %cst_59 {dimension_numbers = #tpu.dot_dimension_numbers<[0], [0], [1], [1], [0, 1, 1, 1], [], []>} : vector<8x8xf32>, vector<8x8xf32>, vector<8x8xf32> -> vector<8x8xf32>
    %cst_60 = arith.constant 0.353553385 : f32
    %169 = vector.broadcast %cst_60 : f32 to vector<8x8xf32>
    %170 = arith.mulf %168, %169 : vector<8x8xf32>
    %cst_61 = arith.constant -1.000000e+30 : f32
    %171 = vector.broadcast %cst_61 : f32 to vector<8x8xf32>
    %172 = arith.select %11, %170, %171 : vector<8x8xi1>, vector<8x8xf32>
    %cst_62 = arith.constant dense<0xFF800000> : vector<8xf32>
    %173 = vector.multi_reduction <maximumf>, %172, %cst_62 [1] : vector<8x8xf32> to vector<8xf32>
    %174 = vector.shape_cast %173 : vector<8xf32> to vector<8x1xf32>
    %175 = vector.broadcast %174 : vector<8x1xf32> to vector<8x8xf32>
    %176 = arith.subf %172, %175 : vector<8x8xf32>
    %177 = math.exp %176 : vector<8x8xf32>
    %cst_63 = arith.constant dense<0.000000e+00> : vector<8xf32>
    %178 = vector.multi_reduction <add>, %177, %cst_63 [1] : vector<8x8xf32> to vector<8xf32>
    %179 = vector.shape_cast %178 : vector<8xf32> to vector<8x1xf32>
    %180 = tpu.reciprocal %179 {approx = true} : vector<8x1xf32> -> vector<8x1xf32>
    %181 = vector.broadcast %180 : vector<8x1xf32> to vector<8x8xf32>
    %182 = arith.mulf %177, %181 : vector<8x8xf32>
    %cst_64 = arith.constant dense<0.000000e+00> : vector<8x8xf32>
    %183 = tpu.matmul %182, %167, %cst_64 {dimension_numbers = #tpu.dot_dimension_numbers<[1], [1], [0], [0], [0, 0, 1, 0], [], []>} : vector<8x8xf32>, vector<8x8xf32>, vector<8x8xf32> -> vector<8x8xf32>
    %184 = vector.extract_strided_slice %7 {offsets = [56, 0], sizes = [8, 64], strides = [1, 1]} : vector<64x64xf32> to vector<8x64xf32>
    %cst_65 = arith.constant dense<0.000000e+00> : vector<8x64xf32>
    %185 = tpu.matmul %183, %184, %cst_65 {dimension_numbers = #tpu.dot_dimension_numbers<[1], [0], [0], [1], [0, 0, 1, 1], [], []>} : vector<8x8xf32>, vector<8x64xf32>, vector<8x64xf32> -> vector<8x64xf32>
    %186 = arith.addf %164, %185 : vector<8x64xf32>
    %187 = vector.broadcast %8 : vector<1x64xf32> to vector<8x64xf32>
    %188 = arith.addf %186, %187 : vector<8x64xf32>
    %189 = arith.addf %1, %188 : vector<8x64xf32>
    %c0_66 = arith.constant 0 : index
    %c0_67 = arith.constant 0 : index
    %190 = vector.load %arg10[%c0_66, %c0_67] : memref<1x64xf32, #tpu.memory_space<vmem>>, vector<1x64xf32>
    %c0_68 = arith.constant 0 : index
    %c0_69 = arith.constant 0 : index
    %191 = vector.load %arg11[%c0_68, %c0_69] : memref<1x64xf32, #tpu.memory_space<vmem>>, vector<1x64xf32>
    %cst_70 = arith.constant dense<0.000000e+00> : vector<8xf32>
    %192 = vector.multi_reduction <add>, %189, %cst_70 [1] : vector<8x64xf32> to vector<8xf32>
    %193 = vector.shape_cast %192 : vector<8xf32> to vector<8x1xf32>
    %cst_71 = arith.constant 6.400000e+01 : f32
    %194 = vector.broadcast %cst_71 : f32 to vector<8x1xf32>
    %195 = arith.divf %193, %194 : vector<8x1xf32>
    %196 = vector.broadcast %195 : vector<8x1xf32> to vector<8x64xf32>
    %197 = arith.subf %189, %196 : vector<8x64xf32>
    %198 = arith.mulf %197, %197 : vector<8x64xf32>
    %cst_72 = arith.constant dense<0.000000e+00> : vector<8xf32>
    %199 = vector.multi_reduction <add>, %198, %cst_72 [1] : vector<8x64xf32> to vector<8xf32>
    %200 = vector.shape_cast %199 : vector<8xf32> to vector<8x1xf32>
    %cst_73 = arith.constant 6.400000e+01 : f32
    %201 = vector.broadcast %cst_73 : f32 to vector<8x1xf32>
    %202 = arith.divf %200, %201 : vector<8x1xf32>
    %cst_74 = arith.constant 9.99999974E-6 : f32
    %203 = vector.broadcast %cst_74 : f32 to vector<8x1xf32>
    %204 = arith.addf %202, %203 : vector<8x1xf32>
    %205 = math.rsqrt %204 : vector<8x1xf32>
    %206 = vector.broadcast %205 : vector<8x1xf32> to vector<8x64xf32>
    %207 = arith.mulf %197, %206 : vector<8x64xf32>
    %208 = vector.broadcast %190 : vector<1x64xf32> to vector<8x64xf32>
    %209 = arith.mulf %207, %208 : vector<8x64xf32>
    %210 = vector.broadcast %191 : vector<1x64xf32> to vector<8x64xf32>
    %211 = arith.addf %209, %210 : vector<8x64xf32>
    %c0_75 = arith.constant 0 : index
    %c0_76 = arith.constant 0 : index
    %212 = vector.load %arg6[%c0_75, %c0_76] : memref<64x128xf32, #tpu.memory_space<vmem>>, vector<64x128xf32>
    %cst_77 = arith.constant dense<0.000000e+00> : vector<8x128xf32>
    %213 = tpu.matmul %211, %212, %cst_77 {dimension_numbers = #tpu.dot_dimension_numbers<[1], [0], [0], [1], [0, 0, 1, 1], [], []>} : vector<8x64xf32>, vector<64x128xf32>, vector<8x128xf32> -> vector<8x128xf32>
    %c0_78 = arith.constant 0 : index
    %c0_79 = arith.constant 0 : index
    %214 = vector.load %arg7[%c0_78, %c0_79] : memref<1x128xf32, #tpu.memory_space<vmem>>, vector<1x128xf32>
    %215 = vector.broadcast %214 : vector<1x128xf32> to vector<8x128xf32>
    %216 = arith.addf %213, %215 : vector<8x128xf32>
    %cst_80 = arith.constant 5.000000e-01 : f32
    %217 = vector.broadcast %cst_80 : f32 to vector<8x128xf32>
    %218 = arith.mulf %217, %216 : vector<8x128xf32>
    %cst_81 = arith.constant 4.471500e-02 : f32
    %219 = vector.broadcast %cst_81 : f32 to vector<8x128xf32>
    %220 = arith.mulf %219, %216 : vector<8x128xf32>
    %221 = arith.mulf %220, %216 : vector<8x128xf32>
    %222 = arith.mulf %221, %216 : vector<8x128xf32>
    %223 = arith.addf %216, %222 : vector<8x128xf32>
    %cst_82 = arith.constant 0.797884583 : f32
    %224 = vector.broadcast %cst_82 : f32 to vector<8x128xf32>
    %225 = arith.mulf %224, %223 : vector<8x128xf32>
    %226 = math.tanh %225 : vector<8x128xf32>
    %cst_83 = arith.constant 1.000000e+00 : f32
    %227 = vector.broadcast %cst_83 : f32 to vector<8x128xf32>
    %228 = arith.addf %227, %226 : vector<8x128xf32>
    %229 = arith.mulf %218, %228 : vector<8x128xf32>
    %c0_84 = arith.constant 0 : index
    %c0_85 = arith.constant 0 : index
    %230 = vector.load %arg8[%c0_84, %c0_85] : memref<128x64xf32, #tpu.memory_space<vmem>>, vector<128x64xf32>
    %cst_86 = arith.constant dense<0.000000e+00> : vector<8x64xf32>
    %231 = tpu.matmul %229, %230, %cst_86 {dimension_numbers = #tpu.dot_dimension_numbers<[1], [0], [0], [1], [0, 0, 1, 1], [], []>} : vector<8x128xf32>, vector<128x64xf32>, vector<8x64xf32> -> vector<8x64xf32>
    %c0_87 = arith.constant 0 : index
    %c0_88 = arith.constant 0 : index
    %232 = vector.load %arg9[%c0_87, %c0_88] : memref<1x64xf32, #tpu.memory_space<vmem>>, vector<1x64xf32>
    %233 = vector.broadcast %232 : vector<1x64xf32> to vector<8x64xf32>
    %234 = arith.addf %231, %233 : vector<8x64xf32>
    %235 = arith.addf %211, %234 : vector<8x64xf32>
    %c0_89 = arith.constant 0 : index
    %c0_90 = arith.constant 0 : index
    %236 = vector.load %arg12[%c0_89, %c0_90] : memref<1x64xf32, #tpu.memory_space<vmem>>, vector<1x64xf32>
    %c0_91 = arith.constant 0 : index
    %c0_92 = arith.constant 0 : index
    %237 = vector.load %arg13[%c0_91, %c0_92] : memref<1x64xf32, #tpu.memory_space<vmem>>, vector<1x64xf32>
    %cst_93 = arith.constant dense<0.000000e+00> : vector<8xf32>
    %238 = vector.multi_reduction <add>, %235, %cst_93 [1] : vector<8x64xf32> to vector<8xf32>
    %239 = vector.shape_cast %238 : vector<8xf32> to vector<8x1xf32>
    %cst_94 = arith.constant 6.400000e+01 : f32
    %240 = vector.broadcast %cst_94 : f32 to vector<8x1xf32>
    %241 = arith.divf %239, %240 : vector<8x1xf32>
    %242 = vector.broadcast %241 : vector<8x1xf32> to vector<8x64xf32>
    %243 = arith.subf %235, %242 : vector<8x64xf32>
    %244 = arith.mulf %243, %243 : vector<8x64xf32>
    %cst_95 = arith.constant dense<0.000000e+00> : vector<8xf32>
    %245 = vector.multi_reduction <add>, %244, %cst_95 [1] : vector<8x64xf32> to vector<8xf32>
    %246 = vector.shape_cast %245 : vector<8xf32> to vector<8x1xf32>
    %cst_96 = arith.constant 6.400000e+01 : f32
    %247 = vector.broadcast %cst_96 : f32 to vector<8x1xf32>
    %248 = arith.divf %246, %247 : vector<8x1xf32>
    %cst_97 = arith.constant 9.99999974E-6 : f32
    %249 = vector.broadcast %cst_97 : f32 to vector<8x1xf32>
    %250 = arith.addf %248, %249 : vector<8x1xf32>
    %251 = math.rsqrt %250 : vector<8x1xf32>
    %252 = vector.broadcast %251 : vector<8x1xf32> to vector<8x64xf32>
    %253 = arith.mulf %243, %252 : vector<8x64xf32>
    %254 = vector.broadcast %236 : vector<1x64xf32> to vector<8x64xf32>
    %255 = arith.mulf %253, %254 : vector<8x64xf32>
    %256 = vector.broadcast %237 : vector<1x64xf32> to vector<8x64xf32>
    %257 = arith.addf %255, %256 : vector<8x64xf32>
    %c0_98 = arith.constant 0 : index
    %c0_99 = arith.constant 0 : index
    %c0_100 = arith.constant 0 : index
    %258 = vector.load %arg14[%c0_98, %c0_99, %c0_100] : memref<1x8x64xf32, #tpu.memory_space<vmem>>, vector<1x8x64xf32>
    %259 = vector.shape_cast %258 : vector<1x8x64xf32> to vector<8x64xf32>
    %260 = vector.shape_cast %257 : vector<8x64xf32> to vector<1x8x64xf32>
    tpu.vector_store %arg14[%c0_98, %c0_99, %c0_100], %260 {strides = array<i32>} : memref<1x8x64xf32, #tpu.memory_space<vmem>>, vector<1x8x64xf32>,
    return
  }
  func.func @transform_0(%arg0: i32) -> (i32, i32, i32) {
    %c0_i32 = arith.constant 0 : i32
    %c0_i32_0 = arith.constant 0 : i32
    %c0_i32_1 = arith.constant 0 : i32
    return %arg0, %c0_i32, %c0_i32_0 : i32, i32, i32
  }
  func.func @transform_1(%arg0: i32) -> (i32, i32) {
    %c0_i32 = arith.constant 0 : i32
    %c0_i32_0 = arith.constant 0 : i32
    %c0_i32_1 = arith.constant 0 : i32
    return %c0_i32, %c0_i32_0 : i32, i32
  }
  func.func @transform_2(%arg0: i32) -> (i32, i32) {
    %c0_i32 = arith.constant 0 : i32
    %c0_i32_0 = arith.constant 0 : i32
    %c0_i32_1 = arith.constant 0 : i32
    return %c0_i32, %c0_i32_0 : i32, i32
  }
  func.func @transform_3(%arg0: i32) -> (i32, i32) {
    %c0_i32 = arith.constant 0 : i32
    %c0_i32_0 = arith.constant 0 : i32
    %c0_i32_1 = arith.constant 0 : i32
    return %c0_i32, %c0_i32_0 : i32, i32
  }
  func.func @transform_4(%arg0: i32) -> (i32, i32) {
    %c0_i32 = arith.constant 0 : i32
    %c0_i32_0 = arith.constant 0 : i32
    %c0_i32_1 = arith.constant 0 : i32
    return %c0_i32, %c0_i32_0 : i32, i32
  }
  func.func @transform_5(%arg0: i32) -> (i32, i32) {
    %c0_i32 = arith.constant 0 : i32
    %c0_i32_0 = arith.constant 0 : i32
    %c0_i32_1 = arith.constant 0 : i32
    return %c0_i32, %c0_i32_0 : i32, i32
  }
  func.func @transform_6(%arg0: i32) -> (i32, i32) {
    %c0_i32 = arith.constant 0 : i32
    %c0_i32_0 = arith.constant 0 : i32
    %c0_i32_1 = arith.constant 0 : i32
    return %c0_i32, %c0_i32_0 : i32, i32
  }
  func.func @transform_7(%arg0: i32) -> (i32, i32) {
    %c0_i32 = arith.constant 0 : i32
    %c0_i32_0 = arith.constant 0 : i32
    %c0_i32_1 = arith.constant 0 : i32
    return %c0_i32, %c0_i32_0 : i32, i32
  }
  func.func @transform_8(%arg0: i32) -> (i32, i32) {
    %c0_i32 = arith.constant 0 : i32
    %c0_i32_0 = arith.constant 0 : i32
    %c0_i32_1 = arith.constant 0 : i32
    return %c0_i32, %c0_i32_0 : i32, i32
  }
  func.func @transform_9(%arg0: i32) -> (i32, i32) {
    %c0_i32 = arith.constant 0 : i32
    %c0_i32_0 = arith.constant 0 : i32
    %c0_i32_1 = arith.constant 0 : i32
    return %c0_i32, %c0_i32_0 : i32, i32
  }
  func.func @transform_10(%arg0: i32) -> (i32, i32) {
    %c0_i32 = arith.constant 0 : i32
    %c0_i32_0 = arith.constant 0 : i32
    %c0_i32_1 = arith.constant 0 : i32
    return %c0_i32, %c0_i32_0 : i32, i32
  }
  func.func @transform_11(%arg0: i32) -> (i32, i32) {
    %c0_i32 = arith.constant 0 : i32
    %c0_i32_0 = arith.constant 0 : i32
    %c0_i32_1 = arith.constant 0 : i32
    return %c0_i32, %c0_i32_0 : i32, i32
  }
  func.func @transform_12(%arg0: i32) -> (i32, i32) {
    %c0_i32 = arith.constant 0 : i32
    %c0_i32_0 = arith.constant 0 : i32
    %c0_i32_1 = arith.constant 0 : i32
    return %c0_i32, %c0_i32_0 : i32, i32
  }
  func.func @transform_13(%arg0: i32) -> (i32, i32, i32) {
    %c0_i32 = arith.constant 0 : i32
    %c0_i32_0 = arith.constant 0 : i32
    %c0_i32_1 = arith.constant 0 : i32
    return %arg0, %c0_i32, %c0_i32_0 : i32, i32, i32
  }
}

module attributes {stable_mosaic.version = 11 : i64} {
  func.func @_decoder_layer_kernel(%arg0: i32, %arg1: memref<1x4x64xf32, #tpu.memory_space<vmem>>, %arg2: memref<1x8x64xf32, #tpu.memory_space<vmem>>, %arg3: memref<192x64xf32, #tpu.memory_space<vmem>>, %arg4: memref<192x1xf32, #tpu.memory_space<vmem>>, %arg5: memref<64x64xf32, #tpu.memory_space<vmem>>, %arg6: memref<1x64xf32, #tpu.memory_space<vmem>>, %arg7: memref<64x64xf32, #tpu.memory_space<vmem>>, %arg8: memref<64x1xf32, #tpu.memory_space<vmem>>, %arg9: memref<128x64xf32, #tpu.memory_space<vmem>>, %arg10: memref<128x1xf32, #tpu.memory_space<vmem>>, %arg11: memref<64x64xf32, #tpu.memory_space<vmem>>, %arg12: memref<1x64xf32, #tpu.memory_space<vmem>>, %arg13: memref<64x128xf32, #tpu.memory_space<vmem>>, %arg14: memref<1x128xf32, #tpu.memory_space<vmem>>, %arg15: memref<128x64xf32, #tpu.memory_space<vmem>>, %arg16: memref<1x64xf32, #tpu.memory_space<vmem>>, %arg17: memref<1x64xf32, #tpu.memory_space<vmem>>, %arg18: memref<1x64xf32, #tpu.memory_space<vmem>>, %arg19: memref<1x64xf32, #tpu.memory_space<vmem>>, %arg20: memref<1x64xf32, #tpu.memory_space<vmem>>, %arg21: memref<1x64xf32, #tpu.memory_space<vmem>>, %arg22: memref<1x64xf32, #tpu.memory_space<vmem>>, %arg23: memref<1x4x64xf32, #tpu.memory_space<vmem>>) attributes {dimension_semantics = [#tpu.dimension_semantics<parallel>], iteration_bounds = array<i64: 2>, scalar_prefetch = 0 : i64, scratch_operands = 0 : i64, tpu.core_type = #tpu.core_type<tc>, window_params = [{transform_indices = @transform_0, window_bounds = array<i64: 1, 4, 64>}, {transform_indices = @transform_1, window_bounds = array<i64: 1, 8, 64>}, {pipeline_mode = #tpu.pipeline_mode<synchronous>, transform_indices = @transform_2, window_bounds = array<i64: 192, 64>}, {pipeline_mode = #tpu.pipeline_mode<synchronous>, transform_indices = @transform_3, window_bounds = array<i64: 192, 1>}, {pipeline_mode = #tpu.pipeline_mode<synchronous>, transform_indices = @transform_4, window_bounds = array<i64: 64, 64>}, {pipeline_mode = #tpu.pipeline_mode<synchronous>, transform_indices = @transform_5, window_bounds = array<i64: 1, 64>}, {pipeline_mode = #tpu.pipeline_mode<synchronous>, transform_indices = @transform_6, window_bounds = array<i64: 64, 64>}, {pipeline_mode = #tpu.pipeline_mode<synchronous>, transform_indices = @transform_7, window_bounds = array<i64: 64, 1>}, {pipeline_mode = #tpu.pipeline_mode<synchronous>, transform_indices = @transform_8, window_bounds = array<i64: 128, 64>}, {pipeline_mode = #tpu.pipeline_mode<synchronous>, transform_indices = @transform_9, window_bounds = array<i64: 128, 1>}, {pipeline_mode = #tpu.pipeline_mode<synchronous>, transform_indices = @transform_10, window_bounds = array<i64: 64, 64>}, {pipeline_mode = #tpu.pipeline_mode<synchronous>, transform_indices = @transform_11, window_bounds = array<i64: 1, 64>}, {pipeline_mode = #tpu.pipeline_mode<synchronous>, transform_indices = @transform_12, window_bounds = array<i64: 64, 128>}, {pipeline_mode = #tpu.pipeline_mode<synchronous>, transform_indices = @transform_13, window_bounds = array<i64: 1, 128>}, {pipeline_mode = #tpu.pipeline_mode<synchronous>, transform_indices = @transform_14, window_bounds = array<i64: 128, 64>}, {pipeline_mode = #tpu.pipeline_mode<synchronous>, transform_indices = @transform_15, window_bounds = array<i64: 1, 64>}, {pipeline_mode = #tpu.pipeline_mode<synchronous>, transform_indices = @transform_16, window_bounds = array<i64: 1, 64>}, {pipeline_mode = #tpu.pipeline_mode<synchronous>, transform_indices = @transform_17, window_bounds = array<i64: 1, 64>}, {pipeline_mode = #tpu.pipeline_mode<synchronous>, transform_indices = @transform_18, window_bounds = array<i64: 1, 64>}, {pipeline_mode = #tpu.pipeline_mode<synchronous>, transform_indices = @transform_19, window_bounds = array<i64: 1, 64>}, {pipeline_mode = #tpu.pipeline_mode<synchronous>, transform_indices = @transform_20, window_bounds = array<i64: 1, 64>}, {pipeline_mode = #tpu.pipeline_mode<synchronous>, transform_indices = @transform_21, window_bounds = array<i64: 1, 64>}, {transform_indices = @transform_22, window_bounds = array<i64: 1, 4, 64>}]} {
    %c0 = arith.constant 0 : index
    %c0_0 = arith.constant 0 : index
    %c0_1 = arith.constant 0 : index
    %0 = vector.load %arg1[%c0, %c0_0, %c0_1] : memref<1x4x64xf32, #tpu.memory_space<vmem>>, vector<1x4x64xf32>
    %1 = vector.shape_cast %0 : vector<1x4x64xf32> to vector<4x64xf32>
    %c0_2 = arith.constant 0 : index
    %c0_3 = arith.constant 0 : index
    %c0_4 = arith.constant 0 : index
    %2 = vector.load %arg2[%c0_2, %c0_3, %c0_4] : memref<1x8x64xf32, #tpu.memory_space<vmem>>, vector<1x8x64xf32>
    %3 = vector.shape_cast %2 : vector<1x8x64xf32> to vector<8x64xf32>
    %c0_5 = arith.constant 0 : index
    %c0_6 = arith.constant 0 : index
    %4 = vector.load %arg3[%c0_5, %c0_6] : memref<192x64xf32, #tpu.memory_space<vmem>>, vector<192x64xf32>
    %cst = arith.constant dense<0.000000e+00> : vector<192x4xf32>
    %5 = tpu.matmul %4, %1, %cst {dimension_numbers = #tpu.dot_dimension_numbers<[1], [1], [0], [0], [0, 0, 1, 0], [], []>} : vector<192x64xf32>, vector<4x64xf32>, vector<192x4xf32> -> vector<192x4xf32>
    %c0_7 = arith.constant 0 : index
    %c0_8 = arith.constant 0 : index
    %6 = vector.load %arg4[%c0_7, %c0_8] : memref<192x1xf32, #tpu.memory_space<vmem>>, vector<192x1xf32>
    %7 = vector.broadcast %6 : vector<192x1xf32> to vector<192x4xf32>
    %8 = arith.addf %5, %7 : vector<192x4xf32>
    %c0_9 = arith.constant 0 : index
    %c0_10 = arith.constant 0 : index
    %9 = vector.load %arg5[%c0_9, %c0_10] : memref<64x64xf32, #tpu.memory_space<vmem>>, vector<64x64xf32>
    %c0_11 = arith.constant 0 : index
    %c0_12 = arith.constant 0 : index
    %10 = vector.load %arg6[%c0_11, %c0_12] : memref<1x64xf32, #tpu.memory_space<vmem>>, vector<1x64xf32>
    %11 = tpu.iota {dimensions = array<i32: 0>} : vector<4x4xi32>
    %12 = tpu.iota {dimensions = array<i32: 1>} : vector<4x4xi32>
    %13 = arith.cmpi sle, %12, %11 : vector<4x4xi32>
    %14 = vector.extract_strided_slice %8 {offsets = [0, 0], sizes = [8, 4], strides = [1, 1]} : vector<192x4xf32> to vector<8x4xf32>
    %15 = vector.extract_strided_slice %8 {offsets = [64, 0], sizes = [8, 4], strides = [1, 1]} : vector<192x4xf32> to vector<8x4xf32>
    %16 = vector.extract_strided_slice %8 {offsets = [128, 0], sizes = [8, 4], strides = [1, 1]} : vector<192x4xf32> to vector<8x4xf32>
    %cst_13 = arith.constant dense<0.000000e+00> : vector<4x4xf32>
    %17 = tpu.matmul %14, %15, %cst_13 {dimension_numbers = #tpu.dot_dimension_numbers<[0], [0], [1], [1], [0, 1, 1, 1], [], []>} : vector<8x4xf32>, vector<8x4xf32>, vector<4x4xf32> -> vector<4x4xf32>
    %cst_14 = arith.constant 0.353553385 : f32
    %18 = vector.broadcast %cst_14 : f32 to vector<4x4xf32>
    %19 = arith.mulf %17, %18 : vector<4x4xf32>
    %cst_15 = arith.constant -1.000000e+30 : f32
    %20 = vector.broadcast %cst_15 : f32 to vector<4x4xf32>
    %21 = arith.select %13, %19, %20 : vector<4x4xi1>, vector<4x4xf32>
    %cst_16 = arith.constant dense<0xFF800000> : vector<4xf32>
    %22 = vector.multi_reduction <maximumf>, %21, %cst_16 [1] : vector<4x4xf32> to vector<4xf32>
    %23 = vector.shape_cast %22 : vector<4xf32> to vector<4x1xf32>
    %24 = vector.broadcast %23 : vector<4x1xf32> to vector<4x4xf32>
    %25 = arith.subf %21, %24 : vector<4x4xf32>
    %26 = math.exp %25 : vector<4x4xf32>
    %cst_17 = arith.constant dense<0.000000e+00> : vector<4xf32>
    %27 = vector.multi_reduction <add>, %26, %cst_17 [1] : vector<4x4xf32> to vector<4xf32>
    %28 = vector.shape_cast %27 : vector<4xf32> to vector<4x1xf32>
    %29 = tpu.reciprocal %28 {approx = true} : vector<4x1xf32> -> vector<4x1xf32>
    %30 = vector.broadcast %29 : vector<4x1xf32> to vector<4x4xf32>
    %31 = arith.mulf %26, %30 : vector<4x4xf32>
    %cst_18 = arith.constant dense<0.000000e+00> : vector<4x8xf32>
    %32 = tpu.matmul %31, %16, %cst_18 {dimension_numbers = #tpu.dot_dimension_numbers<[1], [1], [0], [0], [0, 0, 1, 0], [], []>} : vector<4x4xf32>, vector<8x4xf32>, vector<4x8xf32> -> vector<4x8xf32>
    %33 = vector.extract_strided_slice %9 {offsets = [0, 0], sizes = [8, 64], strides = [1, 1]} : vector<64x64xf32> to vector<8x64xf32>
    %cst_19 = arith.constant dense<0.000000e+00> : vector<4x64xf32>
    %34 = tpu.matmul %32, %33, %cst_19 {dimension_numbers = #tpu.dot_dimension_numbers<[1], [0], [0], [1], [0, 0, 1, 1], [], []>} : vector<4x8xf32>, vector<8x64xf32>, vector<4x64xf32> -> vector<4x64xf32>
    %35 = vector.extract_strided_slice %8 {offsets = [8, 0], sizes = [8, 4], strides = [1, 1]} : vector<192x4xf32> to vector<8x4xf32>
    %36 = vector.extract_strided_slice %8 {offsets = [72, 0], sizes = [8, 4], strides = [1, 1]} : vector<192x4xf32> to vector<8x4xf32>
    %37 = vector.extract_strided_slice %8 {offsets = [136, 0], sizes = [8, 4], strides = [1, 1]} : vector<192x4xf32> to vector<8x4xf32>
    %cst_20 = arith.constant dense<0.000000e+00> : vector<4x4xf32>
    %38 = tpu.matmul %35, %36, %cst_20 {dimension_numbers = #tpu.dot_dimension_numbers<[0], [0], [1], [1], [0, 1, 1, 1], [], []>} : vector<8x4xf32>, vector<8x4xf32>, vector<4x4xf32> -> vector<4x4xf32>
    %cst_21 = arith.constant 0.353553385 : f32
    %39 = vector.broadcast %cst_21 : f32 to vector<4x4xf32>
    %40 = arith.mulf %38, %39 : vector<4x4xf32>
    %cst_22 = arith.constant -1.000000e+30 : f32
    %41 = vector.broadcast %cst_22 : f32 to vector<4x4xf32>
    %42 = arith.select %13, %40, %41 : vector<4x4xi1>, vector<4x4xf32>
    %cst_23 = arith.constant dense<0xFF800000> : vector<4xf32>
    %43 = vector.multi_reduction <maximumf>, %42, %cst_23 [1] : vector<4x4xf32> to vector<4xf32>
    %44 = vector.shape_cast %43 : vector<4xf32> to vector<4x1xf32>
    %45 = vector.broadcast %44 : vector<4x1xf32> to vector<4x4xf32>
    %46 = arith.subf %42, %45 : vector<4x4xf32>
    %47 = math.exp %46 : vector<4x4xf32>
    %cst_24 = arith.constant dense<0.000000e+00> : vector<4xf32>
    %48 = vector.multi_reduction <add>, %47, %cst_24 [1] : vector<4x4xf32> to vector<4xf32>
    %49 = vector.shape_cast %48 : vector<4xf32> to vector<4x1xf32>
    %50 = tpu.reciprocal %49 {approx = true} : vector<4x1xf32> -> vector<4x1xf32>
    %51 = vector.broadcast %50 : vector<4x1xf32> to vector<4x4xf32>
    %52 = arith.mulf %47, %51 : vector<4x4xf32>
    %cst_25 = arith.constant dense<0.000000e+00> : vector<4x8xf32>
    %53 = tpu.matmul %52, %37, %cst_25 {dimension_numbers = #tpu.dot_dimension_numbers<[1], [1], [0], [0], [0, 0, 1, 0], [], []>} : vector<4x4xf32>, vector<8x4xf32>, vector<4x8xf32> -> vector<4x8xf32>
    %54 = vector.extract_strided_slice %9 {offsets = [8, 0], sizes = [8, 64], strides = [1, 1]} : vector<64x64xf32> to vector<8x64xf32>
    %cst_26 = arith.constant dense<0.000000e+00> : vector<4x64xf32>
    %55 = tpu.matmul %53, %54, %cst_26 {dimension_numbers = #tpu.dot_dimension_numbers<[1], [0], [0], [1], [0, 0, 1, 1], [], []>} : vector<4x8xf32>, vector<8x64xf32>, vector<4x64xf32> -> vector<4x64xf32>
    %56 = arith.addf %34, %55 : vector<4x64xf32>
    %57 = vector.extract_strided_slice %8 {offsets = [16, 0], sizes = [8, 4], strides = [1, 1]} : vector<192x4xf32> to vector<8x4xf32>
    %58 = vector.extract_strided_slice %8 {offsets = [80, 0], sizes = [8, 4], strides = [1, 1]} : vector<192x4xf32> to vector<8x4xf32>
    %59 = vector.extract_strided_slice %8 {offsets = [144, 0], sizes = [8, 4], strides = [1, 1]} : vector<192x4xf32> to vector<8x4xf32>
    %cst_27 = arith.constant dense<0.000000e+00> : vector<4x4xf32>
    %60 = tpu.matmul %57, %58, %cst_27 {dimension_numbers = #tpu.dot_dimension_numbers<[0], [0], [1], [1], [0, 1, 1, 1], [], []>} : vector<8x4xf32>, vector<8x4xf32>, vector<4x4xf32> -> vector<4x4xf32>
    %cst_28 = arith.constant 0.353553385 : f32
    %61 = vector.broadcast %cst_28 : f32 to vector<4x4xf32>
    %62 = arith.mulf %60, %61 : vector<4x4xf32>
    %cst_29 = arith.constant -1.000000e+30 : f32
    %63 = vector.broadcast %cst_29 : f32 to vector<4x4xf32>
    %64 = arith.select %13, %62, %63 : vector<4x4xi1>, vector<4x4xf32>
    %cst_30 = arith.constant dense<0xFF800000> : vector<4xf32>
    %65 = vector.multi_reduction <maximumf>, %64, %cst_30 [1] : vector<4x4xf32> to vector<4xf32>
    %66 = vector.shape_cast %65 : vector<4xf32> to vector<4x1xf32>
    %67 = vector.broadcast %66 : vector<4x1xf32> to vector<4x4xf32>
    %68 = arith.subf %64, %67 : vector<4x4xf32>
    %69 = math.exp %68 : vector<4x4xf32>
    %cst_31 = arith.constant dense<0.000000e+00> : vector<4xf32>
    %70 = vector.multi_reduction <add>, %69, %cst_31 [1] : vector<4x4xf32> to vector<4xf32>
    %71 = vector.shape_cast %70 : vector<4xf32> to vector<4x1xf32>
    %72 = tpu.reciprocal %71 {approx = true} : vector<4x1xf32> -> vector<4x1xf32>
    %73 = vector.broadcast %72 : vector<4x1xf32> to vector<4x4xf32>
    %74 = arith.mulf %69, %73 : vector<4x4xf32>
    %cst_32 = arith.constant dense<0.000000e+00> : vector<4x8xf32>
    %75 = tpu.matmul %74, %59, %cst_32 {dimension_numbers = #tpu.dot_dimension_numbers<[1], [1], [0], [0], [0, 0, 1, 0], [], []>} : vector<4x4xf32>, vector<8x4xf32>, vector<4x8xf32> -> vector<4x8xf32>
    %76 = vector.extract_strided_slice %9 {offsets = [16, 0], sizes = [8, 64], strides = [1, 1]} : vector<64x64xf32> to vector<8x64xf32>
    %cst_33 = arith.constant dense<0.000000e+00> : vector<4x64xf32>
    %77 = tpu.matmul %75, %76, %cst_33 {dimension_numbers = #tpu.dot_dimension_numbers<[1], [0], [0], [1], [0, 0, 1, 1], [], []>} : vector<4x8xf32>, vector<8x64xf32>, vector<4x64xf32> -> vector<4x64xf32>
    %78 = arith.addf %56, %77 : vector<4x64xf32>
    %79 = vector.extract_strided_slice %8 {offsets = [24, 0], sizes = [8, 4], strides = [1, 1]} : vector<192x4xf32> to vector<8x4xf32>
    %80 = vector.extract_strided_slice %8 {offsets = [88, 0], sizes = [8, 4], strides = [1, 1]} : vector<192x4xf32> to vector<8x4xf32>
    %81 = vector.extract_strided_slice %8 {offsets = [152, 0], sizes = [8, 4], strides = [1, 1]} : vector<192x4xf32> to vector<8x4xf32>
    %cst_34 = arith.constant dense<0.000000e+00> : vector<4x4xf32>
    %82 = tpu.matmul %79, %80, %cst_34 {dimension_numbers = #tpu.dot_dimension_numbers<[0], [0], [1], [1], [0, 1, 1, 1], [], []>} : vector<8x4xf32>, vector<8x4xf32>, vector<4x4xf32> -> vector<4x4xf32>
    %cst_35 = arith.constant 0.353553385 : f32
    %83 = vector.broadcast %cst_35 : f32 to vector<4x4xf32>
    %84 = arith.mulf %82, %83 : vector<4x4xf32>
    %cst_36 = arith.constant -1.000000e+30 : f32
    %85 = vector.broadcast %cst_36 : f32 to vector<4x4xf32>
    %86 = arith.select %13, %84, %85 : vector<4x4xi1>, vector<4x4xf32>
    %cst_37 = arith.constant dense<0xFF800000> : vector<4xf32>
    %87 = vector.multi_reduction <maximumf>, %86, %cst_37 [1] : vector<4x4xf32> to vector<4xf32>
    %88 = vector.shape_cast %87 : vector<4xf32> to vector<4x1xf32>
    %89 = vector.broadcast %88 : vector<4x1xf32> to vector<4x4xf32>
    %90 = arith.subf %86, %89 : vector<4x4xf32>
    %91 = math.exp %90 : vector<4x4xf32>
    %cst_38 = arith.constant dense<0.000000e+00> : vector<4xf32>
    %92 = vector.multi_reduction <add>, %91, %cst_38 [1] : vector<4x4xf32> to vector<4xf32>
    %93 = vector.shape_cast %92 : vector<4xf32> to vector<4x1xf32>
    %94 = tpu.reciprocal %93 {approx = true} : vector<4x1xf32> -> vector<4x1xf32>
    %95 = vector.broadcast %94 : vector<4x1xf32> to vector<4x4xf32>
    %96 = arith.mulf %91, %95 : vector<4x4xf32>
    %cst_39 = arith.constant dense<0.000000e+00> : vector<4x8xf32>
    %97 = tpu.matmul %96, %81, %cst_39 {dimension_numbers = #tpu.dot_dimension_numbers<[1], [1], [0], [0], [0, 0, 1, 0], [], []>} : vector<4x4xf32>, vector<8x4xf32>, vector<4x8xf32> -> vector<4x8xf32>
    %98 = vector.extract_strided_slice %9 {offsets = [24, 0], sizes = [8, 64], strides = [1, 1]} : vector<64x64xf32> to vector<8x64xf32>
    %cst_40 = arith.constant dense<0.000000e+00> : vector<4x64xf32>
    %99 = tpu.matmul %97, %98, %cst_40 {dimension_numbers = #tpu.dot_dimension_numbers<[1], [0], [0], [1], [0, 0, 1, 1], [], []>} : vector<4x8xf32>, vector<8x64xf32>, vector<4x64xf32> -> vector<4x64xf32>
    %100 = arith.addf %78, %99 : vector<4x64xf32>
    %101 = vector.extract_strided_slice %8 {offsets = [32, 0], sizes = [8, 4], strides = [1, 1]} : vector<192x4xf32> to vector<8x4xf32>
    %102 = vector.extract_strided_slice %8 {offsets = [96, 0], sizes = [8, 4], strides = [1, 1]} : vector<192x4xf32> to vector<8x4xf32>
    %103 = vector.extract_strided_slice %8 {offsets = [160, 0], sizes = [8, 4], strides = [1, 1]} : vector<192x4xf32> to vector<8x4xf32>
    %cst_41 = arith.constant dense<0.000000e+00> : vector<4x4xf32>
    %104 = tpu.matmul %101, %102, %cst_41 {dimension_numbers = #tpu.dot_dimension_numbers<[0], [0], [1], [1], [0, 1, 1, 1], [], []>} : vector<8x4xf32>, vector<8x4xf32>, vector<4x4xf32> -> vector<4x4xf32>
    %cst_42 = arith.constant 0.353553385 : f32
    %105 = vector.broadcast %cst_42 : f32 to vector<4x4xf32>
    %106 = arith.mulf %104, %105 : vector<4x4xf32>
    %cst_43 = arith.constant -1.000000e+30 : f32
    %107 = vector.broadcast %cst_43 : f32 to vector<4x4xf32>
    %108 = arith.select %13, %106, %107 : vector<4x4xi1>, vector<4x4xf32>
    %cst_44 = arith.constant dense<0xFF800000> : vector<4xf32>
    %109 = vector.multi_reduction <maximumf>, %108, %cst_44 [1] : vector<4x4xf32> to vector<4xf32>
    %110 = vector.shape_cast %109 : vector<4xf32> to vector<4x1xf32>
    %111 = vector.broadcast %110 : vector<4x1xf32> to vector<4x4xf32>
    %112 = arith.subf %108, %111 : vector<4x4xf32>
    %113 = math.exp %112 : vector<4x4xf32>
    %cst_45 = arith.constant dense<0.000000e+00> : vector<4xf32>
    %114 = vector.multi_reduction <add>, %113, %cst_45 [1] : vector<4x4xf32> to vector<4xf32>
    %115 = vector.shape_cast %114 : vector<4xf32> to vector<4x1xf32>
    %116 = tpu.reciprocal %115 {approx = true} : vector<4x1xf32> -> vector<4x1xf32>
    %117 = vector.broadcast %116 : vector<4x1xf32> to vector<4x4xf32>
    %118 = arith.mulf %113, %117 : vector<4x4xf32>
    %cst_46 = arith.constant dense<0.000000e+00> : vector<4x8xf32>
    %119 = tpu.matmul %118, %103, %cst_46 {dimension_numbers = #tpu.dot_dimension_numbers<[1], [1], [0], [0], [0, 0, 1, 0], [], []>} : vector<4x4xf32>, vector<8x4xf32>, vector<4x8xf32> -> vector<4x8xf32>
    %120 = vector.extract_strided_slice %9 {offsets = [32, 0], sizes = [8, 64], strides = [1, 1]} : vector<64x64xf32> to vector<8x64xf32>
    %cst_47 = arith.constant dense<0.000000e+00> : vector<4x64xf32>
    %121 = tpu.matmul %119, %120, %cst_47 {dimension_numbers = #tpu.dot_dimension_numbers<[1], [0], [0], [1], [0, 0, 1, 1], [], []>} : vector<4x8xf32>, vector<8x64xf32>, vector<4x64xf32> -> vector<4x64xf32>
    %122 = arith.addf %100, %121 : vector<4x64xf32>
    %123 = vector.extract_strided_slice %8 {offsets = [40, 0], sizes = [8, 4], strides = [1, 1]} : vector<192x4xf32> to vector<8x4xf32>
    %124 = vector.extract_strided_slice %8 {offsets = [104, 0], sizes = [8, 4], strides = [1, 1]} : vector<192x4xf32> to vector<8x4xf32>
    %125 = vector.extract_strided_slice %8 {offsets = [168, 0], sizes = [8, 4], strides = [1, 1]} : vector<192x4xf32> to vector<8x4xf32>
    %cst_48 = arith.constant dense<0.000000e+00> : vector<4x4xf32>
    %126 = tpu.matmul %123, %124, %cst_48 {dimension_numbers = #tpu.dot_dimension_numbers<[0], [0], [1], [1], [0, 1, 1, 1], [], []>} : vector<8x4xf32>, vector<8x4xf32>, vector<4x4xf32> -> vector<4x4xf32>
    %cst_49 = arith.constant 0.353553385 : f32
    %127 = vector.broadcast %cst_49 : f32 to vector<4x4xf32>
    %128 = arith.mulf %126, %127 : vector<4x4xf32>
    %cst_50 = arith.constant -1.000000e+30 : f32
    %129 = vector.broadcast %cst_50 : f32 to vector<4x4xf32>
    %130 = arith.select %13, %128, %129 : vector<4x4xi1>, vector<4x4xf32>
    %cst_51 = arith.constant dense<0xFF800000> : vector<4xf32>
    %131 = vector.multi_reduction <maximumf>, %130, %cst_51 [1] : vector<4x4xf32> to vector<4xf32>
    %132 = vector.shape_cast %131 : vector<4xf32> to vector<4x1xf32>
    %133 = vector.broadcast %132 : vector<4x1xf32> to vector<4x4xf32>
    %134 = arith.subf %130, %133 : vector<4x4xf32>
    %135 = math.exp %134 : vector<4x4xf32>
    %cst_52 = arith.constant dense<0.000000e+00> : vector<4xf32>
    %136 = vector.multi_reduction <add>, %135, %cst_52 [1] : vector<4x4xf32> to vector<4xf32>
    %137 = vector.shape_cast %136 : vector<4xf32> to vector<4x1xf32>
    %138 = tpu.reciprocal %137 {approx = true} : vector<4x1xf32> -> vector<4x1xf32>
    %139 = vector.broadcast %138 : vector<4x1xf32> to vector<4x4xf32>
    %140 = arith.mulf %135, %139 : vector<4x4xf32>
    %cst_53 = arith.constant dense<0.000000e+00> : vector<4x8xf32>
    %141 = tpu.matmul %140, %125, %cst_53 {dimension_numbers = #tpu.dot_dimension_numbers<[1], [1], [0], [0], [0, 0, 1, 0], [], []>} : vector<4x4xf32>, vector<8x4xf32>, vector<4x8xf32> -> vector<4x8xf32>
    %142 = vector.extract_strided_slice %9 {offsets = [40, 0], sizes = [8, 64], strides = [1, 1]} : vector<64x64xf32> to vector<8x64xf32>
    %cst_54 = arith.constant dense<0.000000e+00> : vector<4x64xf32>
    %143 = tpu.matmul %141, %142, %cst_54 {dimension_numbers = #tpu.dot_dimension_numbers<[1], [0], [0], [1], [0, 0, 1, 1], [], []>} : vector<4x8xf32>, vector<8x64xf32>, vector<4x64xf32> -> vector<4x64xf32>
    %144 = arith.addf %122, %143 : vector<4x64xf32>
    %145 = vector.extract_strided_slice %8 {offsets = [48, 0], sizes = [8, 4], strides = [1, 1]} : vector<192x4xf32> to vector<8x4xf32>
    %146 = vector.extract_strided_slice %8 {offsets = [112, 0], sizes = [8, 4], strides = [1, 1]} : vector<192x4xf32> to vector<8x4xf32>
    %147 = vector.extract_strided_slice %8 {offsets = [176, 0], sizes = [8, 4], strides = [1, 1]} : vector<192x4xf32> to vector<8x4xf32>
    %cst_55 = arith.constant dense<0.000000e+00> : vector<4x4xf32>
    %148 = tpu.matmul %145, %146, %cst_55 {dimension_numbers = #tpu.dot_dimension_numbers<[0], [0], [1], [1], [0, 1, 1, 1], [], []>} : vector<8x4xf32>, vector<8x4xf32>, vector<4x4xf32> -> vector<4x4xf32>
    %cst_56 = arith.constant 0.353553385 : f32
    %149 = vector.broadcast %cst_56 : f32 to vector<4x4xf32>
    %150 = arith.mulf %148, %149 : vector<4x4xf32>
    %cst_57 = arith.constant -1.000000e+30 : f32
    %151 = vector.broadcast %cst_57 : f32 to vector<4x4xf32>
    %152 = arith.select %13, %150, %151 : vector<4x4xi1>, vector<4x4xf32>
    %cst_58 = arith.constant dense<0xFF800000> : vector<4xf32>
    %153 = vector.multi_reduction <maximumf>, %152, %cst_58 [1] : vector<4x4xf32> to vector<4xf32>
    %154 = vector.shape_cast %153 : vector<4xf32> to vector<4x1xf32>
    %155 = vector.broadcast %154 : vector<4x1xf32> to vector<4x4xf32>
    %156 = arith.subf %152, %155 : vector<4x4xf32>
    %157 = math.exp %156 : vector<4x4xf32>
    %cst_59 = arith.constant dense<0.000000e+00> : vector<4xf32>
    %158 = vector.multi_reduction <add>, %157, %cst_59 [1] : vector<4x4xf32> to vector<4xf32>
    %159 = vector.shape_cast %158 : vector<4xf32> to vector<4x1xf32>
    %160 = tpu.reciprocal %159 {approx = true} : vector<4x1xf32> -> vector<4x1xf32>
    %161 = vector.broadcast %160 : vector<4x1xf32> to vector<4x4xf32>
    %162 = arith.mulf %157, %161 : vector<4x4xf32>
    %cst_60 = arith.constant dense<0.000000e+00> : vector<4x8xf32>
    %163 = tpu.matmul %162, %147, %cst_60 {dimension_numbers = #tpu.dot_dimension_numbers<[1], [1], [0], [0], [0, 0, 1, 0], [], []>} : vector<4x4xf32>, vector<8x4xf32>, vector<4x8xf32> -> vector<4x8xf32>
    %164 = vector.extract_strided_slice %9 {offsets = [48, 0], sizes = [8, 64], strides = [1, 1]} : vector<64x64xf32> to vector<8x64xf32>
    %cst_61 = arith.constant dense<0.000000e+00> : vector<4x64xf32>
    %165 = tpu.matmul %163, %164, %cst_61 {dimension_numbers = #tpu.dot_dimension_numbers<[1], [0], [0], [1], [0, 0, 1, 1], [], []>} : vector<4x8xf32>, vector<8x64xf32>, vector<4x64xf32> -> vector<4x64xf32>
    %166 = arith.addf %144, %165 : vector<4x64xf32>
    %167 = vector.extract_strided_slice %8 {offsets = [56, 0], sizes = [8, 4], strides = [1, 1]} : vector<192x4xf32> to vector<8x4xf32>
    %168 = vector.extract_strided_slice %8 {offsets = [120, 0], sizes = [8, 4], strides = [1, 1]} : vector<192x4xf32> to vector<8x4xf32>
    %169 = vector.extract_strided_slice %8 {offsets = [184, 0], sizes = [8, 4], strides = [1, 1]} : vector<192x4xf32> to vector<8x4xf32>
    %cst_62 = arith.constant dense<0.000000e+00> : vector<4x4xf32>
    %170 = tpu.matmul %167, %168, %cst_62 {dimension_numbers = #tpu.dot_dimension_numbers<[0], [0], [1], [1], [0, 1, 1, 1], [], []>} : vector<8x4xf32>, vector<8x4xf32>, vector<4x4xf32> -> vector<4x4xf32>
    %cst_63 = arith.constant 0.353553385 : f32
    %171 = vector.broadcast %cst_63 : f32 to vector<4x4xf32>
    %172 = arith.mulf %170, %171 : vector<4x4xf32>
    %cst_64 = arith.constant -1.000000e+30 : f32
    %173 = vector.broadcast %cst_64 : f32 to vector<4x4xf32>
    %174 = arith.select %13, %172, %173 : vector<4x4xi1>, vector<4x4xf32>
    %cst_65 = arith.constant dense<0xFF800000> : vector<4xf32>
    %175 = vector.multi_reduction <maximumf>, %174, %cst_65 [1] : vector<4x4xf32> to vector<4xf32>
    %176 = vector.shape_cast %175 : vector<4xf32> to vector<4x1xf32>
    %177 = vector.broadcast %176 : vector<4x1xf32> to vector<4x4xf32>
    %178 = arith.subf %174, %177 : vector<4x4xf32>
    %179 = math.exp %178 : vector<4x4xf32>
    %cst_66 = arith.constant dense<0.000000e+00> : vector<4xf32>
    %180 = vector.multi_reduction <add>, %179, %cst_66 [1] : vector<4x4xf32> to vector<4xf32>
    %181 = vector.shape_cast %180 : vector<4xf32> to vector<4x1xf32>
    %182 = tpu.reciprocal %181 {approx = true} : vector<4x1xf32> -> vector<4x1xf32>
    %183 = vector.broadcast %182 : vector<4x1xf32> to vector<4x4xf32>
    %184 = arith.mulf %179, %183 : vector<4x4xf32>
    %cst_67 = arith.constant dense<0.000000e+00> : vector<4x8xf32>
    %185 = tpu.matmul %184, %169, %cst_67 {dimension_numbers = #tpu.dot_dimension_numbers<[1], [1], [0], [0], [0, 0, 1, 0], [], []>} : vector<4x4xf32>, vector<8x4xf32>, vector<4x8xf32> -> vector<4x8xf32>
    %186 = vector.extract_strided_slice %9 {offsets = [56, 0], sizes = [8, 64], strides = [1, 1]} : vector<64x64xf32> to vector<8x64xf32>
    %cst_68 = arith.constant dense<0.000000e+00> : vector<4x64xf32>
    %187 = tpu.matmul %185, %186, %cst_68 {dimension_numbers = #tpu.dot_dimension_numbers<[1], [0], [0], [1], [0, 0, 1, 1], [], []>} : vector<4x8xf32>, vector<8x64xf32>, vector<4x64xf32> -> vector<4x64xf32>
    %188 = arith.addf %166, %187 : vector<4x64xf32>
    %189 = vector.broadcast %10 : vector<1x64xf32> to vector<4x64xf32>
    %190 = arith.addf %188, %189 : vector<4x64xf32>
    %191 = arith.addf %1, %190 : vector<4x64xf32>
    %c0_69 = arith.constant 0 : index
    %c0_70 = arith.constant 0 : index
    %192 = vector.load %arg17[%c0_69, %c0_70] : memref<1x64xf32, #tpu.memory_space<vmem>>, vector<1x64xf32>
    %c0_71 = arith.constant 0 : index
    %c0_72 = arith.constant 0 : index
    %193 = vector.load %arg18[%c0_71, %c0_72] : memref<1x64xf32, #tpu.memory_space<vmem>>, vector<1x64xf32>
    %cst_73 = arith.constant dense<0.000000e+00> : vector<4xf32>
    %194 = vector.multi_reduction <add>, %191, %cst_73 [1] : vector<4x64xf32> to vector<4xf32>
    %195 = vector.shape_cast %194 : vector<4xf32> to vector<4x1xf32>
    %cst_74 = arith.constant 6.400000e+01 : f32
    %196 = vector.broadcast %cst_74 : f32 to vector<4x1xf32>
    %197 = arith.divf %195, %196 : vector<4x1xf32>
    %198 = vector.broadcast %197 : vector<4x1xf32> to vector<4x64xf32>
    %199 = arith.subf %191, %198 : vector<4x64xf32>
    %200 = arith.mulf %199, %199 : vector<4x64xf32>
    %cst_75 = arith.constant dense<0.000000e+00> : vector<4xf32>
    %201 = vector.multi_reduction <add>, %200, %cst_75 [1] : vector<4x64xf32> to vector<4xf32>
    %202 = vector.shape_cast %201 : vector<4xf32> to vector<4x1xf32>
    %cst_76 = arith.constant 6.400000e+01 : f32
    %203 = vector.broadcast %cst_76 : f32 to vector<4x1xf32>
    %204 = arith.divf %202, %203 : vector<4x1xf32>
    %cst_77 = arith.constant 9.99999974E-6 : f32
    %205 = vector.broadcast %cst_77 : f32 to vector<4x1xf32>
    %206 = arith.addf %204, %205 : vector<4x1xf32>
    %207 = math.rsqrt %206 : vector<4x1xf32>
    %208 = vector.broadcast %207 : vector<4x1xf32> to vector<4x64xf32>
    %209 = arith.mulf %199, %208 : vector<4x64xf32>
    %210 = vector.broadcast %192 : vector<1x64xf32> to vector<4x64xf32>
    %211 = arith.mulf %209, %210 : vector<4x64xf32>
    %212 = vector.broadcast %193 : vector<1x64xf32> to vector<4x64xf32>
    %213 = arith.addf %211, %212 : vector<4x64xf32>
    %c0_78 = arith.constant 0 : index
    %c0_79 = arith.constant 0 : index
    %214 = vector.load %arg7[%c0_78, %c0_79] : memref<64x64xf32, #tpu.memory_space<vmem>>, vector<64x64xf32>
    %cst_80 = arith.constant dense<0.000000e+00> : vector<64x4xf32>
    %215 = tpu.matmul %214, %213, %cst_80 {dimension_numbers = #tpu.dot_dimension_numbers<[1], [1], [0], [0], [0, 0, 1, 0], [], []>} : vector<64x64xf32>, vector<4x64xf32>, vector<64x4xf32> -> vector<64x4xf32>
    %c0_81 = arith.constant 0 : index
    %c0_82 = arith.constant 0 : index
    %216 = vector.load %arg8[%c0_81, %c0_82] : memref<64x1xf32, #tpu.memory_space<vmem>>, vector<64x1xf32>
    %217 = vector.broadcast %216 : vector<64x1xf32> to vector<64x4xf32>
    %218 = arith.addf %215, %217 : vector<64x4xf32>
    %c0_83 = arith.constant 0 : index
    %c0_84 = arith.constant 0 : index
    %219 = vector.load %arg9[%c0_83, %c0_84] : memref<128x64xf32, #tpu.memory_space<vmem>>, vector<128x64xf32>
    %cst_85 = arith.constant dense<0.000000e+00> : vector<128x8xf32>
    %220 = tpu.matmul %219, %3, %cst_85 {dimension_numbers = #tpu.dot_dimension_numbers<[1], [1], [0], [0], [0, 0, 1, 0], [], []>} : vector<128x64xf32>, vector<8x64xf32>, vector<128x8xf32> -> vector<128x8xf32>
    %c0_86 = arith.constant 0 : index
    %c0_87 = arith.constant 0 : index
    %221 = vector.load %arg10[%c0_86, %c0_87] : memref<128x1xf32, #tpu.memory_space<vmem>>, vector<128x1xf32>
    %222 = vector.broadcast %221 : vector<128x1xf32> to vector<128x8xf32>
    %223 = arith.addf %220, %222 : vector<128x8xf32>
    %c0_88 = arith.constant 0 : index
    %c0_89 = arith.constant 0 : index
    %224 = vector.load %arg11[%c0_88, %c0_89] : memref<64x64xf32, #tpu.memory_space<vmem>>, vector<64x64xf32>
    %c0_90 = arith.constant 0 : index
    %c0_91 = arith.constant 0 : index
    %225 = vector.load %arg12[%c0_90, %c0_91] : memref<1x64xf32, #tpu.memory_space<vmem>>, vector<1x64xf32>
    %226 = tpu.iota {dimensions = array<i32: 0>} : vector<4x8xi32>
    %227 = tpu.iota {dimensions = array<i32: 1>} : vector<4x8xi32>
    %228 = arith.cmpi sle, %227, %226 : vector<4x8xi32>
    %229 = vector.extract_strided_slice %218 {offsets = [0, 0], sizes = [8, 4], strides = [1, 1]} : vector<64x4xf32> to vector<8x4xf32>
    %230 = vector.extract_strided_slice %223 {offsets = [0, 0], sizes = [8, 8], strides = [1, 1]} : vector<128x8xf32> to vector<8x8xf32>
    %231 = vector.extract_strided_slice %223 {offsets = [64, 0], sizes = [8, 8], strides = [1, 1]} : vector<128x8xf32> to vector<8x8xf32>
    %cst_92 = arith.constant dense<0.000000e+00> : vector<4x8xf32>
    %232 = tpu.matmul %229, %230, %cst_92 {dimension_numbers = #tpu.dot_dimension_numbers<[0], [0], [1], [1], [0, 1, 1, 1], [], []>} : vector<8x4xf32>, vector<8x8xf32>, vector<4x8xf32> -> vector<4x8xf32>
    %cst_93 = arith.constant 0.353553385 : f32
    %233 = vector.broadcast %cst_93 : f32 to vector<4x8xf32>
    %234 = arith.mulf %232, %233 : vector<4x8xf32>
    %cst_94 = arith.constant -1.000000e+30 : f32
    %235 = vector.broadcast %cst_94 : f32 to vector<4x8xf32>
    %236 = arith.select %228, %234, %235 : vector<4x8xi1>, vector<4x8xf32>
    %cst_95 = arith.constant dense<0xFF800000> : vector<4xf32>
    %237 = vector.multi_reduction <maximumf>, %236, %cst_95 [1] : vector<4x8xf32> to vector<4xf32>
    %238 = vector.shape_cast %237 : vector<4xf32> to vector<4x1xf32>
    %239 = vector.broadcast %238 : vector<4x1xf32> to vector<4x8xf32>
    %240 = arith.subf %236, %239 : vector<4x8xf32>
    %241 = math.exp %240 : vector<4x8xf32>
    %cst_96 = arith.constant dense<0.000000e+00> : vector<4xf32>
    %242 = vector.multi_reduction <add>, %241, %cst_96 [1] : vector<4x8xf32> to vector<4xf32>
    %243 = vector.shape_cast %242 : vector<4xf32> to vector<4x1xf32>
    %244 = tpu.reciprocal %243 {approx = true} : vector<4x1xf32> -> vector<4x1xf32>
    %245 = vector.broadcast %244 : vector<4x1xf32> to vector<4x8xf32>
    %246 = arith.mulf %241, %245 : vector<4x8xf32>
    %cst_97 = arith.constant dense<0.000000e+00> : vector<4x8xf32>
    %247 = tpu.matmul %246, %231, %cst_97 {dimension_numbers = #tpu.dot_dimension_numbers<[1], [1], [0], [0], [0, 0, 1, 0], [], []>} : vector<4x8xf32>, vector<8x8xf32>, vector<4x8xf32> -> vector<4x8xf32>
    %248 = vector.extract_strided_slice %224 {offsets = [0, 0], sizes = [8, 64], strides = [1, 1]} : vector<64x64xf32> to vector<8x64xf32>
    %cst_98 = arith.constant dense<0.000000e+00> : vector<4x64xf32>
    %249 = tpu.matmul %247, %248, %cst_98 {dimension_numbers = #tpu.dot_dimension_numbers<[1], [0], [0], [1], [0, 0, 1, 1], [], []>} : vector<4x8xf32>, vector<8x64xf32>, vector<4x64xf32> -> vector<4x64xf32>
    %250 = vector.extract_strided_slice %218 {offsets = [8, 0], sizes = [8, 4], strides = [1, 1]} : vector<64x4xf32> to vector<8x4xf32>
    %251 = vector.extract_strided_slice %223 {offsets = [8, 0], sizes = [8, 8], strides = [1, 1]} : vector<128x8xf32> to vector<8x8xf32>
    %252 = vector.extract_strided_slice %223 {offsets = [72, 0], sizes = [8, 8], strides = [1, 1]} : vector<128x8xf32> to vector<8x8xf32>
    %cst_99 = arith.constant dense<0.000000e+00> : vector<4x8xf32>
    %253 = tpu.matmul %250, %251, %cst_99 {dimension_numbers = #tpu.dot_dimension_numbers<[0], [0], [1], [1], [0, 1, 1, 1], [], []>} : vector<8x4xf32>, vector<8x8xf32>, vector<4x8xf32> -> vector<4x8xf32>
    %cst_100 = arith.constant 0.353553385 : f32
    %254 = vector.broadcast %cst_100 : f32 to vector<4x8xf32>
    %255 = arith.mulf %253, %254 : vector<4x8xf32>
    %cst_101 = arith.constant -1.000000e+30 : f32
    %256 = vector.broadcast %cst_101 : f32 to vector<4x8xf32>
    %257 = arith.select %228, %255, %256 : vector<4x8xi1>, vector<4x8xf32>
    %cst_102 = arith.constant dense<0xFF800000> : vector<4xf32>
    %258 = vector.multi_reduction <maximumf>, %257, %cst_102 [1] : vector<4x8xf32> to vector<4xf32>
    %259 = vector.shape_cast %258 : vector<4xf32> to vector<4x1xf32>
    %260 = vector.broadcast %259 : vector<4x1xf32> to vector<4x8xf32>
    %261 = arith.subf %257, %260 : vector<4x8xf32>
    %262 = math.exp %261 : vector<4x8xf32>
    %cst_103 = arith.constant dense<0.000000e+00> : vector<4xf32>
    %263 = vector.multi_reduction <add>, %262, %cst_103 [1] : vector<4x8xf32> to vector<4xf32>
    %264 = vector.shape_cast %263 : vector<4xf32> to vector<4x1xf32>
    %265 = tpu.reciprocal %264 {approx = true} : vector<4x1xf32> -> vector<4x1xf32>
    %266 = vector.broadcast %265 : vector<4x1xf32> to vector<4x8xf32>
    %267 = arith.mulf %262, %266 : vector<4x8xf32>
    %cst_104 = arith.constant dense<0.000000e+00> : vector<4x8xf32>
    %268 = tpu.matmul %267, %252, %cst_104 {dimension_numbers = #tpu.dot_dimension_numbers<[1], [1], [0], [0], [0, 0, 1, 0], [], []>} : vector<4x8xf32>, vector<8x8xf32>, vector<4x8xf32> -> vector<4x8xf32>
    %269 = vector.extract_strided_slice %224 {offsets = [8, 0], sizes = [8, 64], strides = [1, 1]} : vector<64x64xf32> to vector<8x64xf32>
    %cst_105 = arith.constant dense<0.000000e+00> : vector<4x64xf32>
    %270 = tpu.matmul %268, %269, %cst_105 {dimension_numbers = #tpu.dot_dimension_numbers<[1], [0], [0], [1], [0, 0, 1, 1], [], []>} : vector<4x8xf32>, vector<8x64xf32>, vector<4x64xf32> -> vector<4x64xf32>
    %271 = arith.addf %249, %270 : vector<4x64xf32>
    %272 = vector.extract_strided_slice %218 {offsets = [16, 0], sizes = [8, 4], strides = [1, 1]} : vector<64x4xf32> to vector<8x4xf32>
    %273 = vector.extract_strided_slice %223 {offsets = [16, 0], sizes = [8, 8], strides = [1, 1]} : vector<128x8xf32> to vector<8x8xf32>
    %274 = vector.extract_strided_slice %223 {offsets = [80, 0], sizes = [8, 8], strides = [1, 1]} : vector<128x8xf32> to vector<8x8xf32>
    %cst_106 = arith.constant dense<0.000000e+00> : vector<4x8xf32>
    %275 = tpu.matmul %272, %273, %cst_106 {dimension_numbers = #tpu.dot_dimension_numbers<[0], [0], [1], [1], [0, 1, 1, 1], [], []>} : vector<8x4xf32>, vector<8x8xf32>, vector<4x8xf32> -> vector<4x8xf32>
    %cst_107 = arith.constant 0.353553385 : f32
    %276 = vector.broadcast %cst_107 : f32 to vector<4x8xf32>
    %277 = arith.mulf %275, %276 : vector<4x8xf32>
    %cst_108 = arith.constant -1.000000e+30 : f32
    %278 = vector.broadcast %cst_108 : f32 to vector<4x8xf32>
    %279 = arith.select %228, %277, %278 : vector<4x8xi1>, vector<4x8xf32>
    %cst_109 = arith.constant dense<0xFF800000> : vector<4xf32>
    %280 = vector.multi_reduction <maximumf>, %279, %cst_109 [1] : vector<4x8xf32> to vector<4xf32>
    %281 = vector.shape_cast %280 : vector<4xf32> to vector<4x1xf32>
    %282 = vector.broadcast %281 : vector<4x1xf32> to vector<4x8xf32>
    %283 = arith.subf %279, %282 : vector<4x8xf32>
    %284 = math.exp %283 : vector<4x8xf32>
    %cst_110 = arith.constant dense<0.000000e+00> : vector<4xf32>
    %285 = vector.multi_reduction <add>, %284, %cst_110 [1] : vector<4x8xf32> to vector<4xf32>
    %286 = vector.shape_cast %285 : vector<4xf32> to vector<4x1xf32>
    %287 = tpu.reciprocal %286 {approx = true} : vector<4x1xf32> -> vector<4x1xf32>
    %288 = vector.broadcast %287 : vector<4x1xf32> to vector<4x8xf32>
    %289 = arith.mulf %284, %288 : vector<4x8xf32>
    %cst_111 = arith.constant dense<0.000000e+00> : vector<4x8xf32>
    %290 = tpu.matmul %289, %274, %cst_111 {dimension_numbers = #tpu.dot_dimension_numbers<[1], [1], [0], [0], [0, 0, 1, 0], [], []>} : vector<4x8xf32>, vector<8x8xf32>, vector<4x8xf32> -> vector<4x8xf32>
    %291 = vector.extract_strided_slice %224 {offsets = [16, 0], sizes = [8, 64], strides = [1, 1]} : vector<64x64xf32> to vector<8x64xf32>
    %cst_112 = arith.constant dense<0.000000e+00> : vector<4x64xf32>
    %292 = tpu.matmul %290, %291, %cst_112 {dimension_numbers = #tpu.dot_dimension_numbers<[1], [0], [0], [1], [0, 0, 1, 1], [], []>} : vector<4x8xf32>, vector<8x64xf32>, vector<4x64xf32> -> vector<4x64xf32>
    %293 = arith.addf %271, %292 : vector<4x64xf32>
    %294 = vector.extract_strided_slice %218 {offsets = [24, 0], sizes = [8, 4], strides = [1, 1]} : vector<64x4xf32> to vector<8x4xf32>
    %295 = vector.extract_strided_slice %223 {offsets = [24, 0], sizes = [8, 8], strides = [1, 1]} : vector<128x8xf32> to vector<8x8xf32>
    %296 = vector.extract_strided_slice %223 {offsets = [88, 0], sizes = [8, 8], strides = [1, 1]} : vector<128x8xf32> to vector<8x8xf32>
    %cst_113 = arith.constant dense<0.000000e+00> : vector<4x8xf32>
    %297 = tpu.matmul %294, %295, %cst_113 {dimension_numbers = #tpu.dot_dimension_numbers<[0], [0], [1], [1], [0, 1, 1, 1], [], []>} : vector<8x4xf32>, vector<8x8xf32>, vector<4x8xf32> -> vector<4x8xf32>
    %cst_114 = arith.constant 0.353553385 : f32
    %298 = vector.broadcast %cst_114 : f32 to vector<4x8xf32>
    %299 = arith.mulf %297, %298 : vector<4x8xf32>
    %cst_115 = arith.constant -1.000000e+30 : f32
    %300 = vector.broadcast %cst_115 : f32 to vector<4x8xf32>
    %301 = arith.select %228, %299, %300 : vector<4x8xi1>, vector<4x8xf32>
    %cst_116 = arith.constant dense<0xFF800000> : vector<4xf32>
    %302 = vector.multi_reduction <maximumf>, %301, %cst_116 [1] : vector<4x8xf32> to vector<4xf32>
    %303 = vector.shape_cast %302 : vector<4xf32> to vector<4x1xf32>
    %304 = vector.broadcast %303 : vector<4x1xf32> to vector<4x8xf32>
    %305 = arith.subf %301, %304 : vector<4x8xf32>
    %306 = math.exp %305 : vector<4x8xf32>
    %cst_117 = arith.constant dense<0.000000e+00> : vector<4xf32>
    %307 = vector.multi_reduction <add>, %306, %cst_117 [1] : vector<4x8xf32> to vector<4xf32>
    %308 = vector.shape_cast %307 : vector<4xf32> to vector<4x1xf32>
    %309 = tpu.reciprocal %308 {approx = true} : vector<4x1xf32> -> vector<4x1xf32>
    %310 = vector.broadcast %309 : vector<4x1xf32> to vector<4x8xf32>
    %311 = arith.mulf %306, %310 : vector<4x8xf32>
    %cst_118 = arith.constant dense<0.000000e+00> : vector<4x8xf32>
    %312 = tpu.matmul %311, %296, %cst_118 {dimension_numbers = #tpu.dot_dimension_numbers<[1], [1], [0], [0], [0, 0, 1, 0], [], []>} : vector<4x8xf32>, vector<8x8xf32>, vector<4x8xf32> -> vector<4x8xf32>
    %313 = vector.extract_strided_slice %224 {offsets = [24, 0], sizes = [8, 64], strides = [1, 1]} : vector<64x64xf32> to vector<8x64xf32>
    %cst_119 = arith.constant dense<0.000000e+00> : vector<4x64xf32>
    %314 = tpu.matmul %312, %313, %cst_119 {dimension_numbers = #tpu.dot_dimension_numbers<[1], [0], [0], [1], [0, 0, 1, 1], [], []>} : vector<4x8xf32>, vector<8x64xf32>, vector<4x64xf32> -> vector<4x64xf32>
    %315 = arith.addf %293, %314 : vector<4x64xf32>
    %316 = vector.extract_strided_slice %218 {offsets = [32, 0], sizes = [8, 4], strides = [1, 1]} : vector<64x4xf32> to vector<8x4xf32>
    %317 = vector.extract_strided_slice %223 {offsets = [32, 0], sizes = [8, 8], strides = [1, 1]} : vector<128x8xf32> to vector<8x8xf32>
    %318 = vector.extract_strided_slice %223 {offsets = [96, 0], sizes = [8, 8], strides = [1, 1]} : vector<128x8xf32> to vector<8x8xf32>
    %cst_120 = arith.constant dense<0.000000e+00> : vector<4x8xf32>
    %319 = tpu.matmul %316, %317, %cst_120 {dimension_numbers = #tpu.dot_dimension_numbers<[0], [0], [1], [1], [0, 1, 1, 1], [], []>} : vector<8x4xf32>, vector<8x8xf32>, vector<4x8xf32> -> vector<4x8xf32>
    %cst_121 = arith.constant 0.353553385 : f32
    %320 = vector.broadcast %cst_121 : f32 to vector<4x8xf32>
    %321 = arith.mulf %319, %320 : vector<4x8xf32>
    %cst_122 = arith.constant -1.000000e+30 : f32
    %322 = vector.broadcast %cst_122 : f32 to vector<4x8xf32>
    %323 = arith.select %228, %321, %322 : vector<4x8xi1>, vector<4x8xf32>
    %cst_123 = arith.constant dense<0xFF800000> : vector<4xf32>
    %324 = vector.multi_reduction <maximumf>, %323, %cst_123 [1] : vector<4x8xf32> to vector<4xf32>
    %325 = vector.shape_cast %324 : vector<4xf32> to vector<4x1xf32>
    %326 = vector.broadcast %325 : vector<4x1xf32> to vector<4x8xf32>
    %327 = arith.subf %323, %326 : vector<4x8xf32>
    %328 = math.exp %327 : vector<4x8xf32>
    %cst_124 = arith.constant dense<0.000000e+00> : vector<4xf32>
    %329 = vector.multi_reduction <add>, %328, %cst_124 [1] : vector<4x8xf32> to vector<4xf32>
    %330 = vector.shape_cast %329 : vector<4xf32> to vector<4x1xf32>
    %331 = tpu.reciprocal %330 {approx = true} : vector<4x1xf32> -> vector<4x1xf32>
    %332 = vector.broadcast %331 : vector<4x1xf32> to vector<4x8xf32>
    %333 = arith.mulf %328, %332 : vector<4x8xf32>
    %cst_125 = arith.constant dense<0.000000e+00> : vector<4x8xf32>
    %334 = tpu.matmul %333, %318, %cst_125 {dimension_numbers = #tpu.dot_dimension_numbers<[1], [1], [0], [0], [0, 0, 1, 0], [], []>} : vector<4x8xf32>, vector<8x8xf32>, vector<4x8xf32> -> vector<4x8xf32>
    %335 = vector.extract_strided_slice %224 {offsets = [32, 0], sizes = [8, 64], strides = [1, 1]} : vector<64x64xf32> to vector<8x64xf32>
    %cst_126 = arith.constant dense<0.000000e+00> : vector<4x64xf32>
    %336 = tpu.matmul %334, %335, %cst_126 {dimension_numbers = #tpu.dot_dimension_numbers<[1], [0], [0], [1], [0, 0, 1, 1], [], []>} : vector<4x8xf32>, vector<8x64xf32>, vector<4x64xf32> -> vector<4x64xf32>
    %337 = arith.addf %315, %336 : vector<4x64xf32>
    %338 = vector.extract_strided_slice %218 {offsets = [40, 0], sizes = [8, 4], strides = [1, 1]} : vector<64x4xf32> to vector<8x4xf32>
    %339 = vector.extract_strided_slice %223 {offsets = [40, 0], sizes = [8, 8], strides = [1, 1]} : vector<128x8xf32> to vector<8x8xf32>
    %340 = vector.extract_strided_slice %223 {offsets = [104, 0], sizes = [8, 8], strides = [1, 1]} : vector<128x8xf32> to vector<8x8xf32>
    %cst_127 = arith.constant dense<0.000000e+00> : vector<4x8xf32>
    %341 = tpu.matmul %338, %339, %cst_127 {dimension_numbers = #tpu.dot_dimension_numbers<[0], [0], [1], [1], [0, 1, 1, 1], [], []>} : vector<8x4xf32>, vector<8x8xf32>, vector<4x8xf32> -> vector<4x8xf32>
    %cst_128 = arith.constant 0.353553385 : f32
    %342 = vector.broadcast %cst_128 : f32 to vector<4x8xf32>
    %343 = arith.mulf %341, %342 : vector<4x8xf32>
    %cst_129 = arith.constant -1.000000e+30 : f32
    %344 = vector.broadcast %cst_129 : f32 to vector<4x8xf32>
    %345 = arith.select %228, %343, %344 : vector<4x8xi1>, vector<4x8xf32>
    %cst_130 = arith.constant dense<0xFF800000> : vector<4xf32>
    %346 = vector.multi_reduction <maximumf>, %345, %cst_130 [1] : vector<4x8xf32> to vector<4xf32>
    %347 = vector.shape_cast %346 : vector<4xf32> to vector<4x1xf32>
    %348 = vector.broadcast %347 : vector<4x1xf32> to vector<4x8xf32>
    %349 = arith.subf %345, %348 : vector<4x8xf32>
    %350 = math.exp %349 : vector<4x8xf32>
    %cst_131 = arith.constant dense<0.000000e+00> : vector<4xf32>
    %351 = vector.multi_reduction <add>, %350, %cst_131 [1] : vector<4x8xf32> to vector<4xf32>
    %352 = vector.shape_cast %351 : vector<4xf32> to vector<4x1xf32>
    %353 = tpu.reciprocal %352 {approx = true} : vector<4x1xf32> -> vector<4x1xf32>
    %354 = vector.broadcast %353 : vector<4x1xf32> to vector<4x8xf32>
    %355 = arith.mulf %350, %354 : vector<4x8xf32>
    %cst_132 = arith.constant dense<0.000000e+00> : vector<4x8xf32>
    %356 = tpu.matmul %355, %340, %cst_132 {dimension_numbers = #tpu.dot_dimension_numbers<[1], [1], [0], [0], [0, 0, 1, 0], [], []>} : vector<4x8xf32>, vector<8x8xf32>, vector<4x8xf32> -> vector<4x8xf32>
    %357 = vector.extract_strided_slice %224 {offsets = [40, 0], sizes = [8, 64], strides = [1, 1]} : vector<64x64xf32> to vector<8x64xf32>
    %cst_133 = arith.constant dense<0.000000e+00> : vector<4x64xf32>
    %358 = tpu.matmul %356, %357, %cst_133 {dimension_numbers = #tpu.dot_dimension_numbers<[1], [0], [0], [1], [0, 0, 1, 1], [], []>} : vector<4x8xf32>, vector<8x64xf32>, vector<4x64xf32> -> vector<4x64xf32>
    %359 = arith.addf %337, %358 : vector<4x64xf32>
    %360 = vector.extract_strided_slice %218 {offsets = [48, 0], sizes = [8, 4], strides = [1, 1]} : vector<64x4xf32> to vector<8x4xf32>
    %361 = vector.extract_strided_slice %223 {offsets = [48, 0], sizes = [8, 8], strides = [1, 1]} : vector<128x8xf32> to vector<8x8xf32>
    %362 = vector.extract_strided_slice %223 {offsets = [112, 0], sizes = [8, 8], strides = [1, 1]} : vector<128x8xf32> to vector<8x8xf32>
    %cst_134 = arith.constant dense<0.000000e+00> : vector<4x8xf32>
    %363 = tpu.matmul %360, %361, %cst_134 {dimension_numbers = #tpu.dot_dimension_numbers<[0], [0], [1], [1], [0, 1, 1, 1], [], []>} : vector<8x4xf32>, vector<8x8xf32>, vector<4x8xf32> -> vector<4x8xf32>
    %cst_135 = arith.constant 0.353553385 : f32
    %364 = vector.broadcast %cst_135 : f32 to vector<4x8xf32>
    %365 = arith.mulf %363, %364 : vector<4x8xf32>
    %cst_136 = arith.constant -1.000000e+30 : f32
    %366 = vector.broadcast %cst_136 : f32 to vector<4x8xf32>
    %367 = arith.select %228, %365, %366 : vector<4x8xi1>, vector<4x8xf32>
    %cst_137 = arith.constant dense<0xFF800000> : vector<4xf32>
    %368 = vector.multi_reduction <maximumf>, %367, %cst_137 [1] : vector<4x8xf32> to vector<4xf32>
    %369 = vector.shape_cast %368 : vector<4xf32> to vector<4x1xf32>
    %370 = vector.broadcast %369 : vector<4x1xf32> to vector<4x8xf32>
    %371 = arith.subf %367, %370 : vector<4x8xf32>
    %372 = math.exp %371 : vector<4x8xf32>
    %cst_138 = arith.constant dense<0.000000e+00> : vector<4xf32>
    %373 = vector.multi_reduction <add>, %372, %cst_138 [1] : vector<4x8xf32> to vector<4xf32>
    %374 = vector.shape_cast %373 : vector<4xf32> to vector<4x1xf32>
    %375 = tpu.reciprocal %374 {approx = true} : vector<4x1xf32> -> vector<4x1xf32>
    %376 = vector.broadcast %375 : vector<4x1xf32> to vector<4x8xf32>
    %377 = arith.mulf %372, %376 : vector<4x8xf32>
    %cst_139 = arith.constant dense<0.000000e+00> : vector<4x8xf32>
    %378 = tpu.matmul %377, %362, %cst_139 {dimension_numbers = #tpu.dot_dimension_numbers<[1], [1], [0], [0], [0, 0, 1, 0], [], []>} : vector<4x8xf32>, vector<8x8xf32>, vector<4x8xf32> -> vector<4x8xf32>
    %379 = vector.extract_strided_slice %224 {offsets = [48, 0], sizes = [8, 64], strides = [1, 1]} : vector<64x64xf32> to vector<8x64xf32>
    %cst_140 = arith.constant dense<0.000000e+00> : vector<4x64xf32>
    %380 = tpu.matmul %378, %379, %cst_140 {dimension_numbers = #tpu.dot_dimension_numbers<[1], [0], [0], [1], [0, 0, 1, 1], [], []>} : vector<4x8xf32>, vector<8x64xf32>, vector<4x64xf32> -> vector<4x64xf32>
    %381 = arith.addf %359, %380 : vector<4x64xf32>
    %382 = vector.extract_strided_slice %218 {offsets = [56, 0], sizes = [8, 4], strides = [1, 1]} : vector<64x4xf32> to vector<8x4xf32>
    %383 = vector.extract_strided_slice %223 {offsets = [56, 0], sizes = [8, 8], strides = [1, 1]} : vector<128x8xf32> to vector<8x8xf32>
    %384 = vector.extract_strided_slice %223 {offsets = [120, 0], sizes = [8, 8], strides = [1, 1]} : vector<128x8xf32> to vector<8x8xf32>
    %cst_141 = arith.constant dense<0.000000e+00> : vector<4x8xf32>
    %385 = tpu.matmul %382, %383, %cst_141 {dimension_numbers = #tpu.dot_dimension_numbers<[0], [0], [1], [1], [0, 1, 1, 1], [], []>} : vector<8x4xf32>, vector<8x8xf32>, vector<4x8xf32> -> vector<4x8xf32>
    %cst_142 = arith.constant 0.353553385 : f32
    %386 = vector.broadcast %cst_142 : f32 to vector<4x8xf32>
    %387 = arith.mulf %385, %386 : vector<4x8xf32>
    %cst_143 = arith.constant -1.000000e+30 : f32
    %388 = vector.broadcast %cst_143 : f32 to vector<4x8xf32>
    %389 = arith.select %228, %387, %388 : vector<4x8xi1>, vector<4x8xf32>
    %cst_144 = arith.constant dense<0xFF800000> : vector<4xf32>
    %390 = vector.multi_reduction <maximumf>, %389, %cst_144 [1] : vector<4x8xf32> to vector<4xf32>
    %391 = vector.shape_cast %390 : vector<4xf32> to vector<4x1xf32>
    %392 = vector.broadcast %391 : vector<4x1xf32> to vector<4x8xf32>
    %393 = arith.subf %389, %392 : vector<4x8xf32>
    %394 = math.exp %393 : vector<4x8xf32>
    %cst_145 = arith.constant dense<0.000000e+00> : vector<4xf32>
    %395 = vector.multi_reduction <add>, %394, %cst_145 [1] : vector<4x8xf32> to vector<4xf32>
    %396 = vector.shape_cast %395 : vector<4xf32> to vector<4x1xf32>
    %397 = tpu.reciprocal %396 {approx = true} : vector<4x1xf32> -> vector<4x1xf32>
    %398 = vector.broadcast %397 : vector<4x1xf32> to vector<4x8xf32>
    %399 = arith.mulf %394, %398 : vector<4x8xf32>
    %cst_146 = arith.constant dense<0.000000e+00> : vector<4x8xf32>
    %400 = tpu.matmul %399, %384, %cst_146 {dimension_numbers = #tpu.dot_dimension_numbers<[1], [1], [0], [0], [0, 0, 1, 0], [], []>} : vector<4x8xf32>, vector<8x8xf32>, vector<4x8xf32> -> vector<4x8xf32>
    %401 = vector.extract_strided_slice %224 {offsets = [56, 0], sizes = [8, 64], strides = [1, 1]} : vector<64x64xf32> to vector<8x64xf32>
    %cst_147 = arith.constant dense<0.000000e+00> : vector<4x64xf32>
    %402 = tpu.matmul %400, %401, %cst_147 {dimension_numbers = #tpu.dot_dimension_numbers<[1], [0], [0], [1], [0, 0, 1, 1], [], []>} : vector<4x8xf32>, vector<8x64xf32>, vector<4x64xf32> -> vector<4x64xf32>
    %403 = arith.addf %381, %402 : vector<4x64xf32>
    %404 = vector.broadcast %225 : vector<1x64xf32> to vector<4x64xf32>
    %405 = arith.addf %403, %404 : vector<4x64xf32>
    %406 = arith.addf %213, %405 : vector<4x64xf32>
    %c0_148 = arith.constant 0 : index
    %c0_149 = arith.constant 0 : index
    %407 = vector.load %arg19[%c0_148, %c0_149] : memref<1x64xf32, #tpu.memory_space<vmem>>, vector<1x64xf32>
    %c0_150 = arith.constant 0 : index
    %c0_151 = arith.constant 0 : index
    %408 = vector.load %arg20[%c0_150, %c0_151] : memref<1x64xf32, #tpu.memory_space<vmem>>, vector<1x64xf32>
    %cst_152 = arith.constant dense<0.000000e+00> : vector<4xf32>
    %409 = vector.multi_reduction <add>, %406, %cst_152 [1] : vector<4x64xf32> to vector<4xf32>
    %410 = vector.shape_cast %409 : vector<4xf32> to vector<4x1xf32>
    %cst_153 = arith.constant 6.400000e+01 : f32
    %411 = vector.broadcast %cst_153 : f32 to vector<4x1xf32>
    %412 = arith.divf %410, %411 : vector<4x1xf32>
    %413 = vector.broadcast %412 : vector<4x1xf32> to vector<4x64xf32>
    %414 = arith.subf %406, %413 : vector<4x64xf32>
    %415 = arith.mulf %414, %414 : vector<4x64xf32>
    %cst_154 = arith.constant dense<0.000000e+00> : vector<4xf32>
    %416 = vector.multi_reduction <add>, %415, %cst_154 [1] : vector<4x64xf32> to vector<4xf32>
    %417 = vector.shape_cast %416 : vector<4xf32> to vector<4x1xf32>
    %cst_155 = arith.constant 6.400000e+01 : f32
    %418 = vector.broadcast %cst_155 : f32 to vector<4x1xf32>
    %419 = arith.divf %417, %418 : vector<4x1xf32>
    %cst_156 = arith.constant 9.99999974E-6 : f32
    %420 = vector.broadcast %cst_156 : f32 to vector<4x1xf32>
    %421 = arith.addf %419, %420 : vector<4x1xf32>
    %422 = math.rsqrt %421 : vector<4x1xf32>
    %423 = vector.broadcast %422 : vector<4x1xf32> to vector<4x64xf32>
    %424 = arith.mulf %414, %423 : vector<4x64xf32>
    %425 = vector.broadcast %407 : vector<1x64xf32> to vector<4x64xf32>
    %426 = arith.mulf %424, %425 : vector<4x64xf32>
    %427 = vector.broadcast %408 : vector<1x64xf32> to vector<4x64xf32>
    %428 = arith.addf %426, %427 : vector<4x64xf32>
    %c0_157 = arith.constant 0 : index
    %c0_158 = arith.constant 0 : index
    %429 = vector.load %arg13[%c0_157, %c0_158] : memref<64x128xf32, #tpu.memory_space<vmem>>, vector<64x128xf32>
    %cst_159 = arith.constant dense<0.000000e+00> : vector<4x128xf32>
    %430 = tpu.matmul %428, %429, %cst_159 {dimension_numbers = #tpu.dot_dimension_numbers<[1], [0], [0], [1], [0, 0, 1, 1], [], []>} : vector<4x64xf32>, vector<64x128xf32>, vector<4x128xf32> -> vector<4x128xf32>
    %c0_160 = arith.constant 0 : index
    %c0_161 = arith.constant 0 : index
    %431 = vector.load %arg14[%c0_160, %c0_161] : memref<1x128xf32, #tpu.memory_space<vmem>>, vector<1x128xf32>
    %432 = vector.broadcast %431 : vector<1x128xf32> to vector<4x128xf32>
    %433 = arith.addf %430, %432 : vector<4x128xf32>
    %cst_162 = arith.constant 5.000000e-01 : f32
    %434 = vector.broadcast %cst_162 : f32 to vector<4x128xf32>
    %435 = arith.mulf %434, %433 : vector<4x128xf32>
    %cst_163 = arith.constant 4.471500e-02 : f32
    %436 = vector.broadcast %cst_163 : f32 to vector<4x128xf32>
    %437 = arith.mulf %436, %433 : vector<4x128xf32>
    %438 = arith.mulf %437, %433 : vector<4x128xf32>
    %439 = arith.mulf %438, %433 : vector<4x128xf32>
    %440 = arith.addf %433, %439 : vector<4x128xf32>
    %cst_164 = arith.constant 0.797884583 : f32
    %441 = vector.broadcast %cst_164 : f32 to vector<4x128xf32>
    %442 = arith.mulf %441, %440 : vector<4x128xf32>
    %443 = math.tanh %442 : vector<4x128xf32>
    %cst_165 = arith.constant 1.000000e+00 : f32
    %444 = vector.broadcast %cst_165 : f32 to vector<4x128xf32>
    %445 = arith.addf %444, %443 : vector<4x128xf32>
    %446 = arith.mulf %435, %445 : vector<4x128xf32>
    %c0_166 = arith.constant 0 : index
    %c0_167 = arith.constant 0 : index
    %447 = vector.load %arg15[%c0_166, %c0_167] : memref<128x64xf32, #tpu.memory_space<vmem>>, vector<128x64xf32>
    %cst_168 = arith.constant dense<0.000000e+00> : vector<4x64xf32>
    %448 = tpu.matmul %446, %447, %cst_168 {dimension_numbers = #tpu.dot_dimension_numbers<[1], [0], [0], [1], [0, 0, 1, 1], [], []>} : vector<4x128xf32>, vector<128x64xf32>, vector<4x64xf32> -> vector<4x64xf32>
    %c0_169 = arith.constant 0 : index
    %c0_170 = arith.constant 0 : index
    %449 = vector.load %arg16[%c0_169, %c0_170] : memref<1x64xf32, #tpu.memory_space<vmem>>, vector<1x64xf32>
    %450 = vector.broadcast %449 : vector<1x64xf32> to vector<4x64xf32>
    %451 = arith.addf %448, %450 : vector<4x64xf32>
    %452 = arith.addf %428, %451 : vector<4x64xf32>
    %c0_171 = arith.constant 0 : index
    %c0_172 = arith.constant 0 : index
    %453 = vector.load %arg21[%c0_171, %c0_172] : memref<1x64xf32, #tpu.memory_space<vmem>>, vector<1x64xf32>
    %c0_173 = arith.constant 0 : index
    %c0_174 = arith.constant 0 : index
    %454 = vector.load %arg22[%c0_173, %c0_174] : memref<1x64xf32, #tpu.memory_space<vmem>>, vector<1x64xf32>
    %cst_175 = arith.constant dense<0.000000e+00> : vector<4xf32>
    %455 = vector.multi_reduction <add>, %452, %cst_175 [1] : vector<4x64xf32> to vector<4xf32>
    %456 = vector.shape_cast %455 : vector<4xf32> to vector<4x1xf32>
    %cst_176 = arith.constant 6.400000e+01 : f32
    %457 = vector.broadcast %cst_176 : f32 to vector<4x1xf32>
    %458 = arith.divf %456, %457 : vector<4x1xf32>
    %459 = vector.broadcast %458 : vector<4x1xf32> to vector<4x64xf32>
    %460 = arith.subf %452, %459 : vector<4x64xf32>
    %461 = arith.mulf %460, %460 : vector<4x64xf32>
    %cst_177 = arith.constant dense<0.000000e+00> : vector<4xf32>
    %462 = vector.multi_reduction <add>, %461, %cst_177 [1] : vector<4x64xf32> to vector<4xf32>
    %463 = vector.shape_cast %462 : vector<4xf32> to vector<4x1xf32>
    %cst_178 = arith.constant 6.400000e+01 : f32
    %464 = vector.broadcast %cst_178 : f32 to vector<4x1xf32>
    %465 = arith.divf %463, %464 : vector<4x1xf32>
    %cst_179 = arith.constant 9.99999974E-6 : f32
    %466 = vector.broadcast %cst_179 : f32 to vector<4x1xf32>
    %467 = arith.addf %465, %466 : vector<4x1xf32>
    %468 = math.rsqrt %467 : vector<4x1xf32>
    %469 = vector.broadcast %468 : vector<4x1xf32> to vector<4x64xf32>
    %470 = arith.mulf %460, %469 : vector<4x64xf32>
    %471 = vector.broadcast %453 : vector<1x64xf32> to vector<4x64xf32>
    %472 = arith.mulf %470, %471 : vector<4x64xf32>
    %473 = vector.broadcast %454 : vector<1x64xf32> to vector<4x64xf32>
    %474 = arith.addf %472, %473 : vector<4x64xf32>
    %c0_180 = arith.constant 0 : index
    %c0_181 = arith.constant 0 : index
    %c0_182 = arith.constant 0 : index
    %475 = vector.load %arg23[%c0_180, %c0_181, %c0_182] : memref<1x4x64xf32, #tpu.memory_space<vmem>>, vector<1x4x64xf32>
    %476 = vector.shape_cast %475 : vector<1x4x64xf32> to vector<4x64xf32>
    %477 = vector.shape_cast %474 : vector<4x64xf32> to vector<1x4x64xf32>
    tpu.vector_store %arg23[%c0_180, %c0_181, %c0_182], %477 {strides = array<i32>} : memref<1x4x64xf32, #tpu.memory_space<vmem>>, vector<1x4x64xf32>,
    return
  }
  func.func @transform_0(%arg0: i32) -> (i32, i32, i32) {
    %c0_i32 = arith.constant 0 : i32
    %c0_i32_0 = arith.constant 0 : i32
    %c0_i32_1 = arith.constant 0 : i32
    return %arg0, %c0_i32, %c0_i32_0 : i32, i32, i32
  }
  func.func @transform_1(%arg0: i32) -> (i32, i32, i32) {
    %c0_i32 = arith.constant 0 : i32
    %c0_i32_0 = arith.constant 0 : i32
    %c0_i32_1 = arith.constant 0 : i32
    return %arg0, %c0_i32, %c0_i32_0 : i32, i32, i32
  }
  func.func @transform_2(%arg0: i32) -> (i32, i32) {
    %c0_i32 = arith.constant 0 : i32
    %c0_i32_0 = arith.constant 0 : i32
    %c0_i32_1 = arith.constant 0 : i32
    return %c0_i32, %c0_i32_0 : i32, i32
  }
  func.func @transform_3(%arg0: i32) -> (i32, i32) {
    %c0_i32 = arith.constant 0 : i32
    %c0_i32_0 = arith.constant 0 : i32
    %c0_i32_1 = arith.constant 0 : i32
    return %c0_i32, %c0_i32_0 : i32, i32
  }
  func.func @transform_4(%arg0: i32) -> (i32, i32) {
    %c0_i32 = arith.constant 0 : i32
    %c0_i32_0 = arith.constant 0 : i32
    %c0_i32_1 = arith.constant 0 : i32
    return %c0_i32, %c0_i32_0 : i32, i32
  }
  func.func @transform_5(%arg0: i32) -> (i32, i32) {
    %c0_i32 = arith.constant 0 : i32
    %c0_i32_0 = arith.constant 0 : i32
    %c0_i32_1 = arith.constant 0 : i32
    return %c0_i32, %c0_i32_0 : i32, i32
  }
  func.func @transform_6(%arg0: i32) -> (i32, i32) {
    %c0_i32 = arith.constant 0 : i32
    %c0_i32_0 = arith.constant 0 : i32
    %c0_i32_1 = arith.constant 0 : i32
    return %c0_i32, %c0_i32_0 : i32, i32
  }
  func.func @transform_7(%arg0: i32) -> (i32, i32) {
    %c0_i32 = arith.constant 0 : i32
    %c0_i32_0 = arith.constant 0 : i32
    %c0_i32_1 = arith.constant 0 : i32
    return %c0_i32, %c0_i32_0 : i32, i32
  }
  func.func @transform_8(%arg0: i32) -> (i32, i32) {
    %c0_i32 = arith.constant 0 : i32
    %c0_i32_0 = arith.constant 0 : i32
    %c0_i32_1 = arith.constant 0 : i32
    return %c0_i32, %c0_i32_0 : i32, i32
  }
  func.func @transform_9(%arg0: i32) -> (i32, i32) {
    %c0_i32 = arith.constant 0 : i32
    %c0_i32_0 = arith.constant 0 : i32
    %c0_i32_1 = arith.constant 0 : i32
    return %c0_i32, %c0_i32_0 : i32, i32
  }
  func.func @transform_10(%arg0: i32) -> (i32, i32) {
    %c0_i32 = arith.constant 0 : i32
    %c0_i32_0 = arith.constant 0 : i32
    %c0_i32_1 = arith.constant 0 : i32
    return %c0_i32, %c0_i32_0 : i32, i32
  }
  func.func @transform_11(%arg0: i32) -> (i32, i32) {
    %c0_i32 = arith.constant 0 : i32
    %c0_i32_0 = arith.constant 0 : i32
    %c0_i32_1 = arith.constant 0 : i32
    return %c0_i32, %c0_i32_0 : i32, i32
  }
  func.func @transform_12(%arg0: i32) -> (i32, i32) {
    %c0_i32 = arith.constant 0 : i32
    %c0_i32_0 = arith.constant 0 : i32
    %c0_i32_1 = arith.constant 0 : i32
    return %c0_i32, %c0_i32_0 : i32, i32
  }
  func.func @transform_13(%arg0: i32) -> (i32, i32) {
    %c0_i32 = arith.constant 0 : i32
    %c0_i32_0 = arith.constant 0 : i32
    %c0_i32_1 = arith.constant 0 : i32
    return %c0_i32, %c0_i32_0 : i32, i32
  }
  func.func @transform_14(%arg0: i32) -> (i32, i32) {
    %c0_i32 = arith.constant 0 : i32
    %c0_i32_0 = arith.constant 0 : i32
    %c0_i32_1 = arith.constant 0 : i32
    return %c0_i32, %c0_i32_0 : i32, i32
  }
  func.func @transform_15(%arg0: i32) -> (i32, i32) {
    %c0_i32 = arith.constant 0 : i32
    %c0_i32_0 = arith.constant 0 : i32
    %c0_i32_1 = arith.constant 0 : i32
    return %c0_i32, %c0_i32_0 : i32, i32
  }
  func.func @transform_16(%arg0: i32) -> (i32, i32) {
    %c0_i32 = arith.constant 0 : i32
    %c0_i32_0 = arith.constant 0 : i32
    %c0_i32_1 = arith.constant 0 : i32
    return %c0_i32, %c0_i32_0 : i32, i32
  }
  func.func @transform_17(%arg0: i32) -> (i32, i32) {
    %c0_i32 = arith.constant 0 : i32
    %c0_i32_0 = arith.constant 0 : i32
    %c0_i32_1 = arith.constant 0 : i32
    return %c0_i32, %c0_i32_0 : i32, i32
  }
  func.func @transform_18(%arg0: i32) -> (i32, i32) {
    %c0_i32 = arith.constant 0 : i32
    %c0_i32_0 = arith.constant 0 : i32
    %c0_i32_1 = arith.constant 0 : i32
    return %c0_i32, %c0_i32_0 : i32, i32
  }
  func.func @transform_19(%arg0: i32) -> (i32, i32) {
    %c0_i32 = arith.constant 0 : i32
    %c0_i32_0 = arith.constant 0 : i32
    %c0_i32_1 = arith.constant 0 : i32
    return %c0_i32, %c0_i32_0 : i32, i32
  }
  func.func @transform_20(%arg0: i32) -> (i32, i32) {
    %c0_i32 = arith.constant 0 : i32
    %c0_i32_0 = arith.constant 0 : i32
    %c0_i32_1 = arith.constant 0 : i32
    return %c0_i32, %c0_i32_0 : i32, i32
  }
  func.func @transform_21(%arg0: i32) -> (i32, i32) {
    %c0_i32 = arith.constant 0 : i32
    %c0_i32_0 = arith.constant 0 : i32
    %c0_i32_1 = arith.constant 0 : i32
    return %c0_i32, %c0_i32_0 : i32, i32
  }
  func.func @transform_22(%arg0: i32) -> (i32, i32, i32) {
    %c0_i32 = arith.constant 0 : i32
    %c0_i32_0 = arith.constant 0 : i32
    %c0_i32_1 = arith.constant 0 : i32
    return %arg0, %c0_i32, %c0_i32_0 : i32, i32, i32
  }
}

module attributes {stable_mosaic.version = 11 : i64} {
  func.func @_head_kernel(%arg0: i32, %arg1: memref<1x4x64xf32, #tpu.memory_space<vmem>>, %arg2: memref<64x32xf32, #tpu.memory_space<vmem>>, %arg3: memref<1x32xf32, #tpu.memory_space<vmem>>, %arg4: memref<32x12xf32, #tpu.memory_space<vmem>>, %arg5: memref<1x12xf32, #tpu.memory_space<vmem>>, %arg6: memref<1x4x12xf32, #tpu.memory_space<vmem>>) attributes {dimension_semantics = [#tpu.dimension_semantics<parallel>], iteration_bounds = array<i64: 2>, scalar_prefetch = 0 : i64, scratch_operands = 0 : i64, tpu.core_type = #tpu.core_type<tc>, window_params = [{transform_indices = @transform_0, window_bounds = array<i64: 1, 4, 64>}, {pipeline_mode = #tpu.pipeline_mode<synchronous>, transform_indices = @transform_1, window_bounds = array<i64: 64, 32>}, {pipeline_mode = #tpu.pipeline_mode<synchronous>, transform_indices = @transform_2, window_bounds = array<i64: 1, 32>}, {pipeline_mode = #tpu.pipeline_mode<synchronous>, transform_indices = @transform_3, window_bounds = array<i64: 32, 12>}, {pipeline_mode = #tpu.pipeline_mode<synchronous>, transform_indices = @transform_4, window_bounds = array<i64: 1, 12>}, {transform_indices = @transform_5, window_bounds = array<i64: 1, 4, 12>}]} {
    %c0 = arith.constant 0 : index
    %c0_0 = arith.constant 0 : index
    %c0_1 = arith.constant 0 : index
    %0 = vector.load %arg1[%c0, %c0_0, %c0_1] : memref<1x4x64xf32, #tpu.memory_space<vmem>>, vector<1x4x64xf32>
    %1 = vector.shape_cast %0 : vector<1x4x64xf32> to vector<4x64xf32>
    %c0_2 = arith.constant 0 : index
    %c0_3 = arith.constant 0 : index
    %2 = vector.load %arg2[%c0_2, %c0_3] : memref<64x32xf32, #tpu.memory_space<vmem>>, vector<64x32xf32>
    %cst = arith.constant dense<0.000000e+00> : vector<4x32xf32>
    %3 = tpu.matmul %1, %2, %cst {dimension_numbers = #tpu.dot_dimension_numbers<[1], [0], [0], [1], [0, 0, 1, 1], [], []>} : vector<4x64xf32>, vector<64x32xf32>, vector<4x32xf32> -> vector<4x32xf32>
    %c0_4 = arith.constant 0 : index
    %c0_5 = arith.constant 0 : index
    %4 = vector.load %arg3[%c0_4, %c0_5] : memref<1x32xf32, #tpu.memory_space<vmem>>, vector<1x32xf32>
    %5 = vector.broadcast %4 : vector<1x32xf32> to vector<4x32xf32>
    %6 = arith.addf %3, %5 : vector<4x32xf32>
    %cst_6 = arith.constant 0.000000e+00 : f32
    %7 = vector.broadcast %cst_6 : f32 to vector<4x32xf32>
    %8 = arith.maximumf %6, %7 : vector<4x32xf32>
    %c0_7 = arith.constant 0 : index
    %c0_8 = arith.constant 0 : index
    %9 = vector.load %arg4[%c0_7, %c0_8] : memref<32x12xf32, #tpu.memory_space<vmem>>, vector<32x12xf32>
    %cst_9 = arith.constant dense<0.000000e+00> : vector<4x12xf32>
    %10 = tpu.matmul %8, %9, %cst_9 {dimension_numbers = #tpu.dot_dimension_numbers<[1], [0], [0], [1], [0, 0, 1, 1], [], []>} : vector<4x32xf32>, vector<32x12xf32>, vector<4x12xf32> -> vector<4x12xf32>
    %c0_10 = arith.constant 0 : index
    %c0_11 = arith.constant 0 : index
    %11 = vector.load %arg5[%c0_10, %c0_11] : memref<1x12xf32, #tpu.memory_space<vmem>>, vector<1x12xf32>
    %12 = vector.broadcast %11 : vector<1x12xf32> to vector<4x12xf32>
    %13 = arith.addf %10, %12 : vector<4x12xf32>
    %14 = arith.cmpf one, %13, %13 : vector<4x12xf32>
    %cst_12 = arith.constant -1.000000e+01 : f32
    %cst_13 = arith.constant 1.000000e+01 : f32
    %15 = vector.broadcast %cst_12 : f32 to vector<4x12xf32>
    %16 = arith.maximumf %15, %13 : vector<4x12xf32>
    %17 = vector.broadcast %cst_13 : f32 to vector<4x12xf32>
    %18 = arith.minimumf %17, %16 : vector<4x12xf32>
    %cst_14 = arith.constant 0.000000e+00 : f32
    %19 = vector.broadcast %cst_14 : f32 to vector<4x12xf32>
    %20 = arith.select %14, %19, %18 : vector<4x12xi1>, vector<4x12xf32>
    %c0_15 = arith.constant 0 : index
    %c0_16 = arith.constant 0 : index
    %c0_17 = arith.constant 0 : index
    %21 = vector.load %arg6[%c0_15, %c0_16, %c0_17] : memref<1x4x12xf32, #tpu.memory_space<vmem>>, vector<1x4x12xf32>
    %22 = vector.shape_cast %21 : vector<1x4x12xf32> to vector<4x12xf32>
    %23 = vector.shape_cast %20 : vector<4x12xf32> to vector<1x4x12xf32>
    tpu.vector_store %arg6[%c0_15, %c0_16, %c0_17], %23 {strides = array<i32>} : memref<1x4x12xf32, #tpu.memory_space<vmem>>, vector<1x4x12xf32>,
    return
  }
  func.func @transform_0(%arg0: i32) -> (i32, i32, i32) {
    %c0_i32 = arith.constant 0 : i32
    %c0_i32_0 = arith.constant 0 : i32
    %c0_i32_1 = arith.constant 0 : i32
    return %arg0, %c0_i32, %c0_i32_0 : i32, i32, i32
  }
  func.func @transform_1(%arg0: i32) -> (i32, i32) {
    %c0_i32 = arith.constant 0 : i32
    %c0_i32_0 = arith.constant 0 : i32
    %c0_i32_1 = arith.constant 0 : i32
    return %c0_i32, %c0_i32_0 : i32, i32
  }
  func.func @transform_2(%arg0: i32) -> (i32, i32) {
    %c0_i32 = arith.constant 0 : i32
    %c0_i32_0 = arith.constant 0 : i32
    %c0_i32_1 = arith.constant 0 : i32
    return %c0_i32, %c0_i32_0 : i32, i32
  }
  func.func @transform_3(%arg0: i32) -> (i32, i32) {
    %c0_i32 = arith.constant 0 : i32
    %c0_i32_0 = arith.constant 0 : i32
    %c0_i32_1 = arith.constant 0 : i32
    return %c0_i32, %c0_i32_0 : i32, i32
  }
  func.func @transform_4(%arg0: i32) -> (i32, i32) {
    %c0_i32 = arith.constant 0 : i32
    %c0_i32_0 = arith.constant 0 : i32
    %c0_i32_1 = arith.constant 0 : i32
    return %c0_i32, %c0_i32_0 : i32, i32
  }
  func.func @transform_5(%arg0: i32) -> (i32, i32, i32) {
    %c0_i32 = arith.constant 0 : i32
    %c0_i32_0 = arith.constant 0 : i32
    %c0_i32_1 = arith.constant 0 : i32
    return %arg0, %c0_i32, %c0_i32_0 : i32, i32, i32
  }
}

</mosaic_0001>

<bundles_post_ra>
// kernel: transformer_forward.10
= control target key start
LH: loop header
LB: loop body
LE: loop exit
PB: predicated region body
PF: predicated region fallthrough
CT: control target
= control target key end

     0   :  { %s547_s18 = smov 0   ;;  %s597_s0 = inlined_call_operand.vmem [shape: f32[2,4,26], index: 0, kind: input, shape index: {}]   ;;  %s598_s1 = inlined_call_operand.vmem [shape: f32[26,32], index: 1, kind: input, shape index: {}]   ;;  %s599_s2 = inlined_call_operand.vmem [shape: f32[1,32], index: 2, kind: input, shape index: {}]   ;;  %s600_s3 = inlined_call_operand.vmem [shape: f32[32,64], index: 3, kind: input, shape index: {}]   ;;  %s601_s4 = inlined_call_operand.vmem [shape: f32[1,64], index: 4, kind: input, shape index: {}]   ;;  %s602_s5 = inlined_call_operand.vmem [shape: f32[2,4,64], index: 5, kind: output, shape index: {}]  }
   0x1 LB: > { %s451_s19 = sadd.s32 4294967295, %s513_s18   ;;  %p455_p0 = scmp.ge.s32.totalorder %s513_s18, 1  ;;  %s513_s18 = sphi %s547_s18, %s15_s18  }
   0x2   : > { %p186_p1 = scmp.lt.s32.totalorder %s513_s18, 3 }
   0x4   : > { %p187_p2 = pnand %p455_p0, %p186_p1 }
   0x5   : > { %p212_p3 = scmp.lt.s32.totalorder (!%p187_p2), %s451_s19, 1 }
   0x6   : > { %190 = sbr.rel (%p187_p2) target bundleno = 413 (0x19d), region = 40 }
   0xb   : > { %v224_v0 = vld [vmem:[%s598_s1 + $0x18] sm:$0x3]  ;;  %vm236_vm0 = vcmask 1041408   ;;  %v515_v1 = vmov 0.0   ;;  %v223_v2 = vld [vmem:[%s598_s1 + $0x10] sm:$0xff]  ;;  %vm516_vm1 = vmmov 0  }
   0xc   : > { %475 = vmatprep.subr.mxu0 %v515_v1  ;;  %486 = vmatprep.subr.mxu1 %v515_v1  ;;  %v314_v3 = vld [vmem:[%s600_s3 + $0x18] sm:$0xff]  ;;  %v222_v4 = vld [vmem:[%s598_s1 + $0x8] sm:$0xff]  ;;  %s604_s19 = smov (!%p212_p3, %s451_s19), 1  ;;  %v221_v5 = vld [vmem:[%s598_s1] sm:$0xff]  ;;  %vm232_vm2 = vcmask 211968   ;;  %vm322_vm3 = vcmask 261120  }
   0xd   : > { %476 = vmatpush3.msk.msra.mxu0 %vm236_vm0, %v224_v0  ;;  %483 = vmatprep.mubr.msk.f32.mxu0 %vm516_vm1, %v515_v1  ;;  %s456_s30 = sshll.u32 %s604_s19, 2  ;;  %v313_v7 = vld [vmem:[%s600_s3 + $0x10] sm:$0xff]  ;;  %v312_v8 = vld [vmem:[%s600_s3 + $0x8] sm:$0xff]  ;;  %v311_v9 = vld [vmem:[%s600_s3] sm:$0xff]  ;;  %vm396_vm4 = vcmask 519168  }
   0xe   : > { %477 = vmatprep.subr.mxu0 %v515_v1  ;;  %487 = vmatpush3.msra.mxu1 %v314_v3  ;;  %s215_s8 = scalar_lea.vmem %s597_s0, %s456_s30  ;;  %v458_v10 = vld [vmem:[%s599_s2] ss:$0 sm:$0xff]  ;;  %s219_s22 = scalar_lea.vmem %s602_s5, %s456_s30 }
   0xf   : > { %478 = vmatpush3.msra.mxu0 %v223_v2  ;;  %488 = vmatprep.subr.mxu1 %v515_v1  ;;  %v220_v6 = vld [vmem:[%s215_s8] sm:$0xf] }
  0x10   : > { %479 = vmatprep.subr.mxu0 %v515_v1  ;;  %494 = vmatprep.mubr.msk.f32.mxu1 %vm516_vm1, %v515_v1  ;;  %v461_v15 = vld [vmem:[%s601_s4] ss:$0 sm:$0xff] }
  0x11   : > { %480 = vmatpush3.msra.mxu0 %v222_v4  ;;  %489 = vmatpush3.msra.mxu1 %v313_v7 }
  0x12   : > { %481 = vmatprep.subr.mxu0 %v515_v1  ;;  %490 = vmatprep.subr.mxu1 %v515_v1 }
  0x13   : > { %482 = vmatpush3.msra.mxu0 %v221_v5  ;;  %491 = vmatpush3.msra.mxu1 %v312_v8 }
  0x14   : > { %484 = vmatmul.mubr.msk.f32.vlgmr.msra.gmra.mxu0 %vm232_vm2, %v220_v6  ;;  %492 = vmatprep.subr.mxu1 %v515_v1 }
  0x15   : > { %493 = vmatpush3.msra.mxu1 %v311_v9 }
  0xd4   : > { %v306_v11 = vpop.f32.mrf.mxu0 }
  0xd5   : > { %v307_v12 = vadd.f32 %v458_v10, %v306_v11 }
  0xd6   : > { %v485_v13 = vpop.f32.mrf.mxu0 }
  0xd7   : > { %v310_v14 = vmax.f32 %v307_v12, 0.0 }
  0xd9   : > { %495 = vmatmul.mubr.msk.f32.vlgmr.msra.gmra.mxu1 %vm322_vm3, %v310_v14 }
 0x199   : > { %v392_v16 = vpop.f32.mrf.mxu1 }
 0x19a   : > { %v393_v17 = vadd.f32 %v461_v15, %v392_v16 }
 0x19b   : > { %v496_v18 = vpop.f32.mrf.mxu1 }
 0x19c   : > { %397 = vst.msk [vmem:[%s219_s22] sm:$0xf] %vm396_vm4, %v393_v17 }
 0x19d PF: > { %s15_s18 = sadd.s32 1, %s513_s18  }
 0x19e   : > { %p12_p4 = scmp.ge.s32.totalorder %s15_s18, 4  }
 0x1a0   :  { %14 = sbr.rel (!%p12_p4) target bundleno = 1 (0x1), region = 70 }

// kernel: transformer_forward.7
= control target key start
LH: loop header
LB: loop body
LE: loop exit
PB: predicated region body
PF: predicated region fallthrough
CT: control target
= control target key end

     0   :  { %s581_s21 = smov 0   ;;  %s634_s0 = inlined_call_operand.vmem [shape: f32[2,8,26], index: 0, kind: input, shape index: {}]   ;;  %s635_s1 = inlined_call_operand.vmem [shape: f32[26,32], index: 1, kind: input, shape index: {}]   ;;  %s636_s2 = inlined_call_operand.vmem [shape: f32[1,32], index: 2, kind: input, shape index: {}]   ;;  %s637_s3 = inlined_call_operand.vmem [shape: f32[32,64], index: 3, kind: input, shape index: {}]   ;;  %s638_s4 = inlined_call_operand.vmem [shape: f32[1,64], index: 4, kind: input, shape index: {}]   ;;  %s639_s5 = inlined_call_operand.vmem [shape: f32[8,64], index: 5, kind: input, shape index: {}]   ;;  %s640_s6 = inlined_call_operand.vmem [shape: f32[2,8,64], index: 6, kind: output, shape index: {}]  }
   0x1 LB: > { %s480_s22 = sadd.s32 4294967295, %s542_s21   ;;  %p484_p0 = scmp.ge.s32.totalorder %s542_s21, 1  ;;  %s542_s21 = sphi %s581_s21, %s16_s21  }
   0x2   : > { %p211_p1 = scmp.lt.s32.totalorder %s542_s21, 3 }
   0x4   : > { %p212_p2 = pnand %p484_p0, %p211_p1 }
   0x5   : > { %p239_p3 = scmp.lt.s32.totalorder (!%p212_p2), %s480_s22, 1 }
   0x6   : > { %215 = sbr.rel (%p212_p2) target bundleno = 415 (0x19f), region = 44 }
   0xb   : > { %v251_v0 = vld [vmem:[%s635_s1 + $0x18] sm:$0x3]  ;;  %vm263_vm0 = vcmask 1041408   ;;  %v544_v1 = vmov 0.0   ;;  %v250_v2 = vld [vmem:[%s635_s1 + $0x10] sm:$0xff]  ;;  %vm545_vm1 = vmmov 0  }
   0xc   : > { %504 = vmatprep.subr.mxu0 %v544_v1  ;;  %515 = vmatprep.subr.mxu1 %v544_v1  ;;  %v341_v3 = vld [vmem:[%s637_s3 + $0x18] sm:$0xff]  ;;  %v249_v4 = vld [vmem:[%s635_s1 + $0x8] sm:$0xff]  ;;  %s642_s22 = smov (!%p239_p3, %s480_s22), 1  ;;  %v248_v5 = vld [vmem:[%s635_s1] sm:$0xff]  ;;  %vm259_vm2 = vcmask 211968   ;;  %vm349_vm3 = vcmask 261120  }
   0xd   : > { %505 = vmatpush3.msk.msra.mxu0 %vm263_vm0, %v251_v0  ;;  %512 = vmatprep.mubr.msk.f32.mxu0 %vm545_vm1, %v544_v1  ;;  %s485_s9 = sshll.u32 %s642_s22, 3  ;;  %v340_v7 = vld [vmem:[%s637_s3 + $0x10] sm:$0xff]  ;;  %v339_v8 = vld [vmem:[%s637_s3 + $0x8] sm:$0xff]  ;;  %v338_v9 = vld [vmem:[%s637_s3] sm:$0xff]  ;;  %vm425_vm4 = vcmask 523264  }
   0xe   : > { %506 = vmatprep.subr.mxu0 %v544_v1  ;;  %516 = vmatpush3.msra.mxu1 %v341_v3  ;;  %s242_s12 = scalar_lea.vmem %s634_s0, %s485_s9  ;;  %v487_v10 = vld [vmem:[%s636_s2] ss:$0 sm:$0xff]  ;;  %s246_s28 = scalar_lea.vmem %s640_s6, %s485_s9 }
   0xf   : > { %507 = vmatpush3.msra.mxu0 %v250_v2  ;;  %517 = vmatprep.subr.mxu1 %v544_v1  ;;  %v247_v6 = vld [vmem:[%s242_s12] sm:$0xff] }
  0x10   : > { %508 = vmatprep.subr.mxu0 %v544_v1  ;;  %523 = vmatprep.mubr.msk.f32.mxu1 %vm545_vm1, %v544_v1  ;;  %v490_v15 = vld [vmem:[%s638_s4] ss:$0 sm:$0xff] }
  0x11   : > { %509 = vmatpush3.msra.mxu0 %v249_v4  ;;  %518 = vmatpush3.msra.mxu1 %v340_v7  ;;  %v423_v17 = vld [vmem:[%s639_s5] sm:$0xff] }
  0x12   : > { %510 = vmatprep.subr.mxu0 %v544_v1  ;;  %519 = vmatprep.subr.mxu1 %v544_v1 }
  0x13   : > { %511 = vmatpush3.msra.mxu0 %v248_v5  ;;  %520 = vmatpush3.msra.mxu1 %v339_v8 }
  0x14   : > { %513 = vmatmul.mubr.msk.f32.vlgmr.msra.gmra.mxu0 %vm259_vm2, %v247_v6  ;;  %521 = vmatprep.subr.mxu1 %v544_v1 }
  0x15   : > { %522 = vmatpush3.msra.mxu1 %v338_v9 }
  0xd4   : > { %v333_v11 = vpop.f32.mrf.mxu0 }
  0xd5   : > { %v334_v12 = vadd.f32 %v487_v10, %v333_v11 }
  0xd6   : > { %v514_v13 = vpop.f32.mrf.mxu0 }
  0xd7   : > { %v337_v14 = vmax.f32 %v334_v12, 0.0 }
  0xd9   : > { %524 = vmatmul.mubr.msk.f32.vlgmr.msra.gmra.mxu1 %vm349_vm3, %v337_v14 }
 0x199   : > { %v419_v16 = vpop.f32.mrf.mxu1 }
 0x19a   : > { %v420_v18 = vadd.f32 %v490_v15, %v419_v16 }
 0x19b   : > { %v525_v19 = vpop.f32.mrf.mxu1 }
 0x19c   : > { %v424_v20 = vadd.f32 %v423_v17, %v420_v18 }
 0x19e   : > { %426 = vst.msk [vmem:[%s246_s28] sm:$0xff] %vm425_vm4, %v424_v20 }
 0x19f PF: > { %s16_s21 = sadd.s32 1, %s542_s21  }
 0x1a0   : > { %p13_p4 = scmp.ge.s32.totalorder %s16_s21, 4  }
 0x1a2   :  { %15 = sbr.rel (!%p13_p4) target bundleno = 1 (0x1), region = 74 }

// kernel: transformer_forward.13
= control target key start
LH: loop header
LB: loop body
LE: loop exit
PB: predicated region body
PF: predicated region fallthrough
CT: control target
= control target key end

     0   :  { %10 = vsyncpa [#allocation3], 0  ;;  %s805_s0 = inlined_call_operand.vmem [shape: f32[2,4,64], index: 0, kind: input, shape index: {}]   ;;  %s806_s1 = inlined_call_operand.vmem [shape: f32[64,32], index: 1, kind: input, shape index: {}]   ;;  %s807_s2 = inlined_call_operand.vmem [shape: f32[1,32], index: 2, kind: input, shape index: {}]   ;;  %s808_s3 = inlined_call_operand.vmem [shape: f32[32,12], index: 3, kind: input, shape index: {}]   ;;  %s809_s4 = inlined_call_operand.vmem [shape: f32[1,12], index: 4, kind: input, shape index: {}]   ;;  %s810_s5 = inlined_call_operand.hbm [shape: f32[2,4,12], index: 5, kind: output, shape index: {}]  }
   0x1   :  { %12 = vsyncpa [#allocation3 + $0x1], 0  ;;  %s670_s18 = smov 0   ;;  %s672_s19 = smov 0  }
   0x2   :  { %s674_s20 = smov 0   ;;  %s676_s21 = smov 0  }
   0x3 LB: > { %s691_s22 = sadd.s32 4294967295, %s635_s21   ;;  %s475_s23 = sadd.s32 4294967294, %s635_s21   ;;  %s635_s21 = sphi %s676_s21, %s816_s21   ;;  %s631_s20 = sphi %s674_s20, %s815_s20   ;;  %s627_s19 = sphi %s672_s19, %s814_s19   ;;  %s623_s18 = sphi %s670_s18, %s813_s18  }
   0x4   : > { %s695_s24 = sadd.s32 1, %s635_s21   ;;  %s135_s25 = sadd.s32 1, %s631_s20 }
   0x5   : > { %s132_s26 = ssub.s32 %s635_s21, %s695_s24  ;;  %p145_p0 = scmp.ne.s32.totalorder %s631_s20, %s627_s19 }
   0x6   : > { %p133_p1 = scmp.eq.s32.totalorder %s132_s26, 0  ;;  %p146_p2 = scmp.eq.s32.totalorder %s691_s22, 1 }
   0x7   : > { %p151_p3 = scmp.ne.s32.totalorder %s627_s19, %s623_s18  ;;  %p152_p4 = scmp.eq.s32.totalorder %s475_s23, 1 }
   0x8   : > { %s706_s27 = scalar_select %p133_p1, %s631_s20, %s135_s25  }
   0x9   : > { %p708_p5 = por %p146_p2, %p145_p0  ;;  %p712_p6 = por %p152_p4, %p151_p3 }
   0xa   : > { %p478_p7 = scmp.ge.s32.totalorder %s635_s21, 1  ;;  %p189_p8 = scmp.lt.s32.totalorder %s635_s21, 3 }
   0xc   : > { %p190_p9 = pnand %p478_p7, %p189_p8 }
   0xd   : > { %p216_p10 = scmp.lt.s32.totalorder (!%p190_p9), %s691_s22, 1  ;;  %s213_s26 = sand.u32 (!%p190_p9), 1, %s627_s19  }
   0xe   : > { %193 = sbr.rel (%p190_p9) target bundleno = 444 (0x1bc), region = 40  ;;  %s479_s30 = sshll.u32 (!%p190_p9), %s213_s26, 2 }
   0xf   : > { %s487_s8 = sshll.u32 (!%p190_p9), %s691_s22, 6  ;;  %s403_s14 = scalar_lea.sflag (!%p190_p9), [#allocation3], %s213_s26 }
  0x13   : > { %v228_v0 = vld [vmem:[%s806_s1 + $0x38] sm:$0xff]  ;;  %v637_v1 = vmov 0.0   ;;  %v227_v2 = vld [vmem:[%s806_s1 + $0x30] sm:$0xff]  ;;  %vm638_vm0 = vmmov 0   ;;  %v226_v4 = vld [vmem:[%s806_s1 + $0x28] sm:$0xff]  ;;  %s217_s13 = scalar_select %p216_p10, %s691_s22, 1 }
  0x14   : > { %504 = vmatprep.subr.mxu0 %v637_v1  ;;  %520 = vmatprep.mubr.msk.f32.mxu0 %vm638_vm0, %v637_v1  ;;  %v314_v3 = vld [vmem:[%s808_s3 + $0x18] sm:$0xff]  ;;  %v225_v5 = vld [vmem:[%s806_s1 + $0x20] sm:$0xff]  ;;  %v223_v7 = vld [vmem:[%s806_s1 + $0x10] sm:$0xff]  ;;  %vm236_vm1 = vcmask 523264   ;;  %vm322_vm2 = vcmask 261120   ;;  %vm400_vm4 = vcmask 93184  }
  0x15   : > { %505 = vmatpush3.msra.mxu0 %v228_v0  ;;  %523 = vmatprep.subr.mxu1 %v637_v1  ;;  %v224_v6 = vld [vmem:[%s806_s1 + $0x18] sm:$0xff]  ;;  %s480_s23 = sshll.u32 %s217_s13, 2  ;;  %v222_v8 = vld [vmem:[%s806_s1 + $0x8] sm:$0xff]  ;;  %v221_v9 = vld [vmem:[%s806_s1] sm:$0xff]  ;;  %s770_s13 = scalar_lea.hbm %s810_s5, %s487_s8 }
  0x16   : > { %506 = vmatprep.subr.mxu0 %v637_v1  ;;  %524 = vmatpush3.msra.mxu1 %v314_v3  ;;  %s219_s9 = scalar_lea.vmem %s805_s0, %s480_s23  ;;  %v313_v11 = vld [vmem:[%s808_s3 + $0x10] sm:$0xff]  ;;  %v312_v12 = vld [vmem:[%s808_s3 + $0x8] sm:$0xff]  ;;  %v311_v13 = vld [vmem:[%s808_s3] sm:$0xff]  ;;  %s639_s22 = smov [#allocation2]  }
  0x17   : > { %507 = vmatpush3.msra.mxu0 %v227_v2  ;;  %525 = vmatprep.subr.mxu1 %v637_v1  ;;  %v220_v10 = vld [vmem:[%s219_s9] sm:$0xf]  ;;  %s215_s9 = scalar_lea.vmem [#allocation2], %s479_s30  ;;  %s579_s16 = sshll.u32 %s639_s22, 4  ;;  %s580_s16 = int_to_ptr.vmem [resolvable:$false] %s579_s16 }
  0x18   : > { %508 = vmatprep.subr.mxu0 %v637_v1  ;;  %531 = vmatprep.mubr.msk.f32.mxu1 %vm638_vm0, %v637_v1  ;;  %v481_v14 = vld [vmem:[%s807_s2] ss:$0 sm:$0xff]  ;;  %s416_s10 = sshll.u32 %s215_s9, 4  ;;  %s581_s17 = scalar_lea.vmem %s580_s16, 128  ;;  %s417_s10 = int_to_ptr.vmem [resolvable:$true] %s416_s10 }
  0x19   : > { %509 = vmatpush3.msra.mxu0 %v226_v4  ;;  %526 = vmatpush3.msra.mxu1 %v313_v11  ;;  %v483_v19 = vld [vmem:[%s809_s4] ss:$0 sm:$0xff]  ;;  %s575_s15 = scalar_lea.vmem %s417_s10, 64  ;;  %p582_p0 = scmp.lt.s32.totalorder %s417_s10, %s580_s16 }
  0x1a   : > { %510 = vmatprep.subr.mxu0 %v637_v1  ;;  %527 = vmatprep.subr.mxu1 %v637_v1  ;;  %p576_p11 = scmp.ne.s32.totalorder %s417_s10, %s575_s15  ;;  %p583_p1 = scmp.lt.s32.totalorder %s581_s17, %s575_s15 }
  0x1b   : > { %511 = vmatpush3.msra.mxu0 %v225_v5  ;;  %528 = vmatpush3.msra.mxu1 %v312_v12 }
  0x1c   : > { %512 = vmatprep.subr.mxu0 %v637_v1  ;;  %529 = vmatprep.subr.mxu1 %v637_v1  ;;  %p577_p12 = pnand %p576_p11, %p708_p5  ;;  %p584_p2 = por %p583_p1, %p582_p0 }
  0x1d   : > { %513 = vmatpush3.msra.mxu0 %v224_v6  ;;  %530 = vmatpush3.msra.mxu1 %v311_v13 }
  0x1e   : > { %514 = vmatprep.subr.mxu0 %v637_v1  ;;  %p578_p13 = pneg %p577_p12 }
  0x1f   : > { %515 = vmatpush3.msra.mxu0 %v223_v7 }
  0x20   : > { %516 = vmatprep.subr.mxu0 %v637_v1  ;;  %p585_p3 = pnand %p584_p2, %p578_p13 }
  0x21   : > { %517 = vmatpush3.msra.mxu0 %v222_v8 }
  0x22   : > { %518 = vmatprep.subr.mxu0 %v637_v1 }
  0x23   : > { %519 = vmatpush3.msra.mxu0 %v221_v9 }
  0x24   : > { %521 = vmatmul.mubr.msk.f32.vlgmr.msra.gmra.mxu0 %vm236_vm1, %v220_v10 }
  0xe4   : > { %v306_v15 = vpop.f32.mrf.mxu0 }
  0xe5   : > { %v307_v16 = vadd.f32 %v481_v14, %v306_v15 }
  0xe6   : > { %v522_v17 = vpop.f32.mrf.mxu0 }
  0xe7   : > { %v310_v18 = vmax.f32 %v307_v16, 0.0 }
  0xe9   : > { %532 = vmatmul.mubr.msk.f32.vlgmr.msra.gmra.mxu1 %vm322_vm2, %v310_v18 }
 0x1a9   : > { %v392_v20 = vpop.f32.mrf.mxu1 }
 0x1aa   : > { %v393_v21 = vadd.f32 %v483_v19, %v392_v20 }
 0x1ab   : > { %v533_v22 = vpop.f32.mrf.mxu1 }
 0x1ac   : > { %vm396_vm3 = vcmp.ne.f32.partialorder %v393_v21, %v393_v21  ;;  %v485_v23 = vclamps-f32 %v393_v21, 10.0 }
 0x1ae   : > { %v399_v24 = vsel %vm396_vm3, 0.0, %v485_v23 }
 0x1af   : > { %401 = vst.msk [vmem:[%s215_s9] sm:$0xf] %vm400_vm4, %v399_v24 }
 0x1b0   : > { %588 = shalt.err (!%p585_p3)
}
 0x1b1   : > { %s589_s23 = scalar_lea.hbm %s770_s13, 64  ;;  %s593_s30 = scalar_lea.hbm %s810_s5, 128 }
 0x1b2   : > { %p590_p4 = scmp.ne.s32.totalorder %s770_s13, %s589_s23  ;;  %p594_p9 = scmp.lt.s32.totalorder %s770_s13, %s810_s5 }
 0x1b3   : > { %p595_p10 = scmp.lt.s32.totalorder %s593_s30, %s589_s23 }
 0x1b4   : > { %p591_p7 = pnand %p590_p4, %p708_p5 }
 0x1b5   : > { %p596_p11 = por %p595_p10, %p594_p9 }
 0x1b6   : > { %p592_p8 = pneg %p591_p7 }
 0x1b8   : > { %p597_p12 = pnand %p596_p11, %p592_p8 }
 0x1ba   : > { %600 = shalt.err (!%p597_p12)
}
 0x1bb   : > { %534 = dma.vmem_to_hbm [thread:$0]  (%p708_p5), %s417_s10, 64, %s770_s13, %s403_s14  }
 0x1bc PF: > { %p540_p13 = scmp.ge.s32.totalorder %s635_s21, 2  ;;  %s428_s8 = sand.u32 1, %s623_s18  }
 0x1bd   : > { %s429_s9 = scalar_lea.sflag [#allocation3], %s428_s8 }
 0x1be   : > { %p537_p0 = pnand %p540_p13, %p712_p6 }
 0x1c0   : > { %p538_p1 = pneg %p537_p0 }
 0x1c2   : > { %618 = dma.done.wait (%p538_p1), %s429_s9, 64  }
 0x1c3   : > { %620 = vsyncadd (%p538_p1), %s429_s9, 4294967232  ;;  %p15_p2 = scmp.ge.s32.totalorder %s695_s24, 4   ;;  %s813_s18 = smov %s627_s19 }
 0x1c4   : > { %s814_s19 = smov %s631_s20  ;;  %s815_s20 = smov %s706_s27 }
 0x1c5   : > { %s816_s21 = smov %s695_s24  ;;  %17 = sbr.rel (!%p15_p2) target bundleno = 3 (0x3), region = 75 }
 0x1ca   :  { %434 = vsyncpa [#allocation3], 1 }
 0x1cb   :  { %436 = vsyncpa [#allocation3 + $0x1], 1 }

// kernel: transformer_forward.8
= control target key start
LH: loop header
LB: loop body
LE: loop exit
PB: predicated region body
PF: predicated region fallthrough
CT: control target
= control target key end

     0   :  { %s3854_s25 = smov 0   ;;  %s4408_s0 = inlined_call_operand.vmem [shape: f32[2,8,64], index: 0, kind: input, shape index: {}]   ;;  %s4409_s1 = inlined_call_operand.vmem [shape: f32[192,64], index: 1, kind: input, shape index: {}]   ;;  %s4410_s2 = inlined_call_operand.vmem [shape: f32[192,1], index: 2, kind: input, shape index: {}]   ;;  %s4411_s3 = inlined_call_operand.vmem [shape: f32[64,64], index: 3, kind: input, shape index: {}]   ;;  %s4412_s4 = inlined_call_operand.vmem [shape: f32[1,64], index: 4, kind: input, shape index: {}]   ;;  %s4413_s5 = inlined_call_operand.vmem [shape: f32[64,128], index: 5, kind: input, shape index: {}]   ;;  %s4414_s6 = inlined_call_operand.vmem [shape: f32[1,128], index: 6, kind: input, shape index: {}]   ;;  %s4415_s7 = inlined_call_operand.vmem [shape: f32[128,64], index: 7, kind: input, shape index: {}]   ;;  %s4416_s8 = inlined_call_operand.vmem [shape: f32[1,64], index: 8, kind: input, shape index: {}]   ;;  %s4417_s9 = inlined_call_operand.vmem [shape: f32[1,64], index: 9, kind: input, shape index: {}]   ;;  %s4418_s10 = inlined_call_operand.vmem [shape: f32[1,64], index: 10, kind: input, shape index: {}]   ;;  %s4419_s11 = inlined_call_operand.vmem [shape: f32[1,64], index: 11, kind: input, shape index: {}]   ;;  %s4420_s12 = inlined_call_operand.vmem [shape: f32[1,64], index: 12, kind: input, shape index: {}]   ;;  %s4421_s13 = inlined_call_operand.vmem [shape: f32[2,8,64], index: 13, kind: output, shape index: {}]  }
   0x1 LB: > { %s3335_s26 = sadd.s32 4294967295, %s3779_s25   ;;  %p3339_p0 = scmp.ge.s32.totalorder %s3779_s25, 1  ;;  %s3779_s25 = sphi %s3854_s25, %s23_s25  }
   0x2   : > { %p386_p1 = scmp.lt.s32.totalorder %s3779_s25, 3 }
   0x4   : > { %p387_p2 = pnand %p3339_p0, %p386_p1 }
   0x5   : > { %p428_p3 = scmp.lt.s32.totalorder (!%p387_p2), %s3335_s26, 1 }
   0x6   : > { %390 = sbr.rel (%p387_p2) target bundleno = 6470 (0x1946), region = 72 }
   0xb   : > { %vm605_vm0 = vcmask 523264   ;;  %v437_v0 = vld [vmem:[%s4409_s1] sm:$0xff]  ;;  %v3781_v1 = vmov 0   ;;  %s4425_s26 = smov (!%p428_p3, %s3335_s26), 1  ;;  %v438_v5 = vld [vmem:[%s4409_s1 + $0x8] sm:$0xff]  ;;  %v439_v6 = vld [vmem:[%s4409_s1 + $0x10] sm:$0xff]  ;;  %v875_v45 = vlaneseq }
   0xc   : > { %3510 = vmatprep.mubr.msk.f32.mxu0 %vm605_vm0, %v437_v0  ;;  %3733 = vset.pattern.permute.xlu0 %v3781_v1  ;;  %v461_v2 = vld [vmem:[%s4410_s2] sm:$0xff]  ;;  %s3340_s14 = sshll.u32 %s4425_s26, 3  ;;  %v462_v7 = vld [vmem:[%s4410_s2 + $0x8] sm:$0xff]  ;;  %v440_v8 = vld [vmem:[%s4409_s1 + $0x18] sm:$0xff]  ;;  %v3782_v17 = vmov 0.0   ;;  %vm3783_vm1 = vmmov 0  }
   0xd   : > { %487 = vperm.xlu0 %3733, %v461_v2   ;;  %s431_s17 = scalar_lea.vmem %s4408_s0, %s3340_s14  ;;  %v469_v3 = vld [vmem:[%s4410_s2 + $0x40] sm:$0xff]  ;;  %v442_v10 = vld [vmem:[%s4409_s1 + $0x28] sm:$0xff]  ;;  %v443_v11 = vld [vmem:[%s4409_s1 + $0x30] sm:$0xff]  ;;  %vm912_vm2 = vcmask 64512   ;;  %v876_v47 = vshrl.u32 %v875_v45, 7  ;;  %v878_v48 = vand.u32 127, %v875_v45  ;;  %s435_s22 = scalar_lea.vmem %s4421_s13, %s3340_s14 }
   0xe   : > { %v3881_v4 = vld [vmem:[%s431_s17] sm:$0xff]  ;;  %v444_v12 = vld [vmem:[%s4409_s1 + $0x38] sm:$0xff]  ;;  %v446_v14 = vld [vmem:[%s4409_s1 + $0x48] sm:$0xff] }
   0xf   : > { %3508 = vmatprep.subr.msk.mxu0 %vm605_vm0, %v3881_v4  ;;  %3720 = vmatprep.subr.msk.mxu1 %vm605_vm0, %v3881_v4  ;;  %v441_v9 = vld [vmem:[%s4409_s1 + $0x20] sm:$0xff]  ;;  %v458_v16 = vld [vmem:[%s4409_s1 + $0xa8] sm:$0xff]  ;;  %v459_v18 = vld [vmem:[%s4409_s1 + $0xb0] sm:$0xff]  ;;  %vm4009_vm3 = vcmp.le.s32.totalorder %v878_v48, %v876_v47 }
  0x10   : > { %3509 = vmatpush3.xpose.msk.msra.mxu0 %vm605_vm0, %v3881_v4  ;;  %3721 = vmatpush3.xpose.msk.msra.mxu1 %vm605_vm0, %v3881_v4  ;;  %v445_v13 = vld [vmem:[%s4409_s1 + $0x40] sm:$0xff]  ;;  %v460_v19 = vld [vmem:[%s4409_s1 + $0xb8] sm:$0xff]  ;;  %v447_v35 = vld [vmem:[%s4409_s1 + $0x50] sm:$0xff] }
  0x11   : > { %527 = vperm.xlu0 %3733, %v469_v3   ;;  %v457_v15 = vld [vmem:[%s4409_s1 + $0xa0] sm:$0xff]  ;;  %3546 = vmatprep.subr.mxu1 %v3782_v17  ;;  %v448_v36 = vld [vmem:[%s4409_s1 + $0x58] sm:$0xff]  ;;  %v450_v38 = vld [vmem:[%s4409_s1 + $0x68] sm:$0xff] }
  0x12   : > { %3540 = vmatprep.mubr.msk.f32.mxu1 %vm605_vm0, %v457_v15  ;;  %3611 = vmatprep.subr.mxu0 %v3782_v17  ;;  %v449_v37 = vld [vmem:[%s4409_s1 + $0x60] sm:$0xff]  ;;  %v451_v39 = vld [vmem:[%s4409_s1 + $0x70] sm:$0xff]  ;;  %v452_v40 = vld [vmem:[%s4409_s1 + $0x78] sm:$0xff] }
  0x13   : > { %3511 = vmatmul.mubr.msk.f32.vlgmr.msra.gmra.mxu0 %vm605_vm0, %v438_v5  ;;  %3541 = vmatmul.mubr.msk.f32.vlgmr.msra.gmra.mxu1 %vm605_vm0, %v458_v16  ;;  %v453_v41 = vld [vmem:[%s4409_s1 + $0x80] sm:$0xff]  ;;  %v454_v42 = vld [vmem:[%s4409_s1 + $0x88] sm:$0xff]  ;;  %v463_v59 = vld [vmem:[%s4410_s2 + $0x10] sm:$0xff] }
  0x14   : > { %3513 = vmatprep.mubr.msk.f32.mxu0 %vm605_vm0, %v439_v6  ;;  %3543 = vmatprep.mubr.msk.f32.mxu1 %vm605_vm0, %v459_v18  ;;  %v470_v56 = vld [vmem:[%s4410_s2 + $0x48] sm:$0xff]  ;;  %v873_v51 = vld [vmem:[%s4411_s3 + $0x38] sm:$0xff] }
  0x15   : > { %492 = vperm.xlu0 %3733, %v462_v7  }
  0x17   : > { %3514 = vmatmul.mubr.msk.f32.gmra.mxu0 %vm605_vm0, %v440_v8  ;;  %3544 = vmatmul.mubr.msk.f32.gmra.mxu1 %vm605_vm0, %v460_v19 }
  0x18   : > { %3516 = vmatprep.mubr.msk.f32.mxu0 %vm605_vm0, %v441_v9  ;;  %3548 = vmatprep.mubr.msk.f32.mxu1 %vm3783_vm1, %v3782_v17 }
  0x1b   : > { %3517 = vmatmul.mubr.msk.f32.gmra.mxu0 %vm605_vm0, %v442_v10 }
  0x1c   : > { %3519 = vmatprep.mubr.msk.f32.mxu0 %vm605_vm0, %v443_v11 }
  0x1f   : > { %3520 = vmatmul.mubr.msk.f32.gmra.mxu0 %vm605_vm0, %v444_v12 }
  0x20   : > { %3522 = vmatprep.mubr.msk.f32.mxu0 %vm605_vm0, %v445_v13 }
  0x23   : > { %3523 = vmatmul.mubr.msk.f32.gmra.mxu0 %vm605_vm0, %v446_v14 }
  0x24   : > { %3525 = vmatprep.mubr.msk.f32.mxu0 %vm605_vm0, %v447_v35 }
  0x27   : > { %3526 = vmatmul.mubr.msk.f32.gmra.mxu0 %vm605_vm0, %v448_v36 }
  0x28   : > { %3528 = vmatprep.mubr.msk.f32.mxu0 %vm605_vm0, %v449_v37 }
  0x2b   : > { %3529 = vmatmul.mubr.msk.f32.gmra.mxu0 %vm605_vm0, %v450_v38  ;;  %v478_v38 = vld [vmem:[%s4410_s2 + $0x88] sm:$0xff] }
  0x2c   : > { %3531 = vmatprep.mubr.msk.f32.mxu0 %vm605_vm0, %v451_v39  ;;  %v471_v39 = vld [vmem:[%s4410_s2 + $0x50] sm:$0xff] }
  0x2f   : > { %3532 = vmatmul.mubr.msk.f32.gmra.mxu0 %vm605_vm0, %v452_v40 }
  0x30   : > { %3534 = vmatprep.mubr.msk.f32.mxu0 %vm605_vm0, %v453_v41 }
  0x33   : > { %3535 = vmatmul.mubr.msk.f32.gmra.mxu0 %vm605_vm0, %v454_v42 }
  0x88   : > { %v488_v21 = vpop.permute.xlu0 %487 }
  0x8c   : > { %v528_v31 = vpop.permute.xlu0 %527 }
  0x90   : > { %v493_v57 = vpop.permute.xlu0 %492 }
  0xd3   : > { %v3512_v20 = vpop.f32.mrf.mxu0  ;;  %v4001_v43 = vpop.f32.mrf.mxu1 }
  0xd4   : > { %v753_v58 = vadd.f32 %v3512_v20, %v493_v57 }
  0xd5   : > { %v747_v22 = vpop.f32.mrf.mxu0  ;;  %v4003_v44 = vpop.f32.mrf.mxu1 }
  0xd6   : > { %v748_v23 = vadd.f32 %v747_v22, %v488_v21 }
  0xd7   : > { %v3950_v24 = vpop.f32.mrf.mxu0  ;;  %v4005_v46 = vpop.f32.mrf.mxu1 }
  0xd8   : > { %880 = vxpose.xlu1.b32.start.end [1/1] (short) (narrow) %v748_v23, 8 }
  0xd9   : > { %v3952_v25 = vpop.f32.mrf.mxu0  ;;  %v4007_v49 = vpop.f32.mrf.mxu1 }
  0xdb   : > { %v3954_v26 = vpop.f32.mrf.mxu0 }
  0xdd   : > { %v3956_v27 = vpop.f32.mrf.mxu0 }
  0xdf   : > { %v3958_v28 = vpop.f32.mrf.mxu0 }
  0xe1   : > { %v3960_v29 = vpop.f32.mrf.mxu0 }
  0xe3   : > { %v3962_v30 = vpop.f32.mrf.mxu0 }
  0xe5   : > { %v787_v32 = vpop.f32.mrf.mxu0 }
  0xe6   : > { %v788_v33 = vadd.f32 %v787_v32, %v528_v31 }
  0xe7   : > { %v4026_v2 = vpop.f32.mrf.mxu0 }
  0xe8   : > { %3547 = vmatpush3.msra.mxu1 %v788_v33 }
  0xe9   : > { %3551 = vmatprep.subr.mxu1 %v3782_v17  ;;  %v4028_v3 = vpop.f32.mrf.mxu0 }
  0xeb   : > { %v4030_v5 = vpop.f32.mrf.mxu0 }
  0xed   : > { %v4032_v6 = vpop.f32.mrf.mxu0 }
  0xef   : > { %v4034_v7 = vpop.f32.mrf.mxu0 }
  0xf1   : > { %v4036_v8 = vpop.f32.mrf.mxu0 }
  0xf3   : > { %v3536_v10 = vpop.f32.mrf.mxu0 }
  0xf5   : > { %v827_v11 = vpop.f32.mrf.mxu0 }
  0xf6   : > { %3734 = vset.pattern.permute.xlu1 %v3781_v1  ;;  %v477_v1 = vld [vmem:[%s4410_s2 + $0x80] sm:$0xff] }
 0x154   : > { %v896_v34 = vpop.trf.xlu1 }
 0x155   : > { %3549 = vmatmul.mubr.msk.f32.vlgmr.msra.gmra.mxu1 %vm912_vm2, %v896_v34 }
 0x156   : > { %3553 = vmatprep.mubr.msk.f32.mxu1 %vm3783_vm1, %v3782_v17 }
 0x215   : > { %v982_v50 = vpop.f32.mrf.mxu1 }
 0x216   : > { %v986_v52 = vmul.f32 0.35355338, %v982_v50 }
 0x217   : > { %v3550_v53 = vpop.f32.mrf.mxu1 }
 0x218   : > { %v987_v54 = vsel %vm4009_vm3, %v986_v52, -1e+30  ;;  %v455_v52 = vld [vmem:[%s4409_s1 + $0x90] sm:$0xff]  ;;  %v456_v53 = vld [vmem:[%s4409_s1 + $0x98] sm:$0xff] }
 0x219   : > { %v988_v55 = vsel %vm912_vm2, %v987_v54, -inf  ;;  %3537 = vmatprep.mubr.msk.f32.mxu0 %vm605_vm0, %v455_v52 }
 0x21a   : > { %989 = vmax.xlane.f32.xlu1 %v988_v55  ;;  %3538 = vmatmul.mubr.msk.f32.gmra.mxu0 %vm605_vm0, %v456_v53 }
 0x21b   : > { %3613 = vmatprep.mubr.msk.f32.mxu0 %vm3783_vm1, %v3782_v17 }
 0x22b   : > { %532 = vperm.xlu1 %3734, %v470_v56  }
 0x254   : > { %1075 = vxpose.xlu1.b32.start.end [1/1] (short) (narrow) %v753_v58, 8 }
 0x272   : > { %497 = vperm.xlu1 %3734, %v463_v59  }
 0x2a3   : > { %v990_v60 = vpop.xlane.xlu1 %989 }
 0x2a4   : > { %v991_v61 = vsub.f32 %v987_v54, %v990_v60  ;;  %v866_v54 = vld [vmem:[%s4411_s3] sm:$0xff] }
 0x2a6   : > { %v992_v62 = vmul.f32 1.442695, %v991_v61 }
 0x2a7   : > { %v533_v14 = vpop.permute.xlu1 %532 }
 0x2a8   : > { %3735 = vpow2.f32 %v992_v62  ;;  %v793_v18 = vadd.f32 %v3962_v30, %v533_v14  ;;  %v472_v14 = vld [vmem:[%s4410_s2 + $0x58] sm:$0xff] }
 0x2b5   : > { %v3736_v63 = vpop.eup %3735 }
 0x2b6   : > { %v994_v0 = vsel %vm912_vm2, %v3736_v63, 0.0 }
 0x2b7   : > { %995 = vadd.xlane.f32.xlu0 %v994_v0 }
 0x2cd   : > { %567 = vperm.xlu0 %3733, %v477_v1  }
 0x2d0   : > { %v1091_v19 = vpop.trf.xlu1 }
 0x2ed   : > { %v498_v40 = vpop.permute.xlu1 %497 }
 0x2ee   : > { %v758_v41 = vadd.f32 %v3952_v25, %v498_v40  ;;  %v867_v25 = vld [vmem:[%s4411_s3 + $0x8] sm:$0xff] }
 0x340   : > { %v996_v9 = vpop.xlane.xlu0 %995 }
 0x341   : > { %3737 = vrcp.f32 %v996_v9 }
 0x348   : > { %v568_v12 = vpop.permute.xlu0 %567 }
 0x349   : > { %v828_v13 = vadd.f32 %v827_v11, %v568_v12  ;;  %v479_v12 = vld [vmem:[%s4410_s2 + $0x90] sm:$0xff] }
 0x34b   : > { %3552 = vmatpush3.xpose.msk.msra.mxu1 %vm912_vm2, %v828_v13  ;;  %v464_v13 = vld [vmem:[%s4410_s2 + $0x18] sm:$0xff] }
 0x34c   : > { %3556 = vmatprep.subr.mxu1 %v3782_v17 }
 0x34e   : > { %v3738_v15 = vpop.eup %3737 }
 0x34f   : > { %v998_v16 = vmul.f32 %v3738_v15, %v3736_v63  ;;  %v3539_v15 = vpop.f32.mrf.mxu0 }
 0x351   : > { %3554 = vmatmul.mubr.msk.f32.vlgmr.msra.gmra.mxu1 %vm912_vm2, %v998_v16 }
 0x352   : > { %3557 = vmatpush3.msra.mxu1 %v793_v18  ;;  %3558 = vmatprep.mubr.msk.f32.mxu1 %vm3783_vm1, %v3782_v17 }
 0x353   : > { %3561 = vmatprep.subr.mxu1 %v3782_v17 }
 0x355   : > { %3559 = vmatmul.mubr.msk.f32.vlgmr.msra.gmra.mxu1 %vm912_vm2, %v1091_v19  ;;  %v837_v19 = vpop.f32.mrf.mxu0 }
 0x356   : > { %3563 = vmatprep.mubr.msk.f32.mxu1 %vm3783_vm1, %v3782_v17 }
 0x411   : > { %v1071_v20 = vpop.f32.mrf.mxu1 }
 0x413   : > { %v3555_v21 = vpop.f32.mrf.mxu1 }
 0x415   : > { %v1176_v22 = vpop.f32.mrf.mxu1 }
 0x416   : > { %v1180_v23 = vmul.f32 0.35355338, %v1176_v22 }
 0x417   : > { %v3560_v31 = vpop.f32.mrf.mxu1 }
 0x418   : > { %v1181_v30 = vsel %vm4009_vm3, %v1180_v23, -1e+30 }
 0x419   : > { %v1182_v32 = vsel %vm912_vm2, %v1181_v30, -inf }
 0x41a   : > { %1183 = vmax.xlane.f32.xlu0 %v1182_v32 }
 0x4a3   : > { %v1184_v33 = vpop.xlane.xlu0 %1183 }
 0x4a4   : > { %v1185_v34 = vsub.f32 %v1181_v30, %v1184_v33  ;;  %v473_v33 = vld [vmem:[%s4410_s2 + $0x60] sm:$0xff] }
 0x4a6   : > { %v1186_v35 = vmul.f32 1.442695, %v1185_v34 }
 0x4a8   : > { %3739 = vpow2.f32 %v1186_v35 }
 0x4b5   : > { %v3740_v36 = vpop.eup %3739 }
 0x4b6   : > { %v1188_v37 = vsel %vm912_vm2, %v3740_v36, 0.0 }
 0x4b7   : > { %1189 = vadd.xlane.f32.xlu0 %v1188_v37  ;;  %v868_v37 = vld [vmem:[%s4411_s3 + $0x10] sm:$0xff] }
 0x4cd   : > { %572 = vperm.xlu0 %3733, %v478_v38  }
 0x4d1   : > { %537 = vperm.xlu0 %3733, %v471_v39  }
 0x4ef   : > { %1415 = vxpose.xlu0.b32.start.end [1/1] (short) (narrow) %v758_v41, 8 }
 0x540   : > { %v1190_v42 = vpop.xlane.xlu0 %1189 }
 0x541   : > { %3741 = vrcp.f32 %v1190_v42 }
 0x548   : > { %v573_v45 = vpop.permute.xlu0 %572 }
 0x549   : > { %v833_v47 = vadd.f32 %v3536_v10, %v573_v45 }
 0x54b   : > { %3562 = vmatpush3.xpose.msk.msra.mxu1 %vm912_vm2, %v833_v47 }
 0x54c   : > { %3566 = vmatprep.subr.mxu1 %v3782_v17  ;;  %v538_v56 = vpop.permute.xlu0 %537 }
 0x54d   : > { %v798_v58 = vadd.f32 %v4028_v3, %v538_v56 }
 0x54e   : > { %v3742_v48 = vpop.eup %3741 }
 0x54f   : > { %v1192_v50 = vmul.f32 %v3742_v48, %v3740_v36 }
 0x551   : > { %3564 = vmatmul.mubr.msk.f32.vlgmr.msra.gmra.mxu1 %vm912_vm2, %v1192_v50 }
 0x552   : > { %3568 = vmatprep.mubr.msk.f32.mxu1 %vm3783_vm1, %v3782_v17  ;;  %3567 = vmatpush3.msra.mxu1 %v867_v25 }
 0x553   : > { %3571 = vmatprep.subr.mxu1 %v3782_v17 }
 0x56b   : > { %v1431_v59 = vpop.trf.xlu0 }
 0x611   : > { %v1265_v55 = vpop.f32.mrf.mxu1 }
 0x612   : > { %3569 = vmatmul.mubr.msk.f32.vlgmr.msra.gmra.mxu1 %vm912_vm2, %v1265_v55 }
 0x613   : > { %v3565_v57 = vpop.f32.mrf.mxu1  ;;  %3572 = vmatpush3.msra.mxu1 %v866_v54  ;;  %3573 = vmatprep.mubr.msk.f32.mxu1 %vm3783_vm1, %v3782_v17 }
 0x614   : > { %3576 = vmatprep.subr.mxu1 %v3782_v17 }
 0x616   : > { %3574 = vmatmul.mubr.msk.f32.vlgmr.msra.gmra.mxu1 %vm912_vm2, %v1071_v20 }
 0x617   : > { %3577 = vmatpush3.msra.mxu1 %v798_v58  ;;  %3578 = vmatprep.mubr.msk.f32.mxu1 %vm3783_vm1, %v3782_v17  ;;  %v480_v58 = vld [vmem:[%s4410_s2 + $0x98] sm:$0xff] }
 0x618   : > { %3581 = vmatprep.subr.mxu1 %v3782_v17 }
 0x61a   : > { %3579 = vmatmul.mubr.msk.f32.vlgmr.msra.gmra.mxu1 %vm912_vm2, %v1431_v59  ;;  %v465_v59 = vld [vmem:[%s4410_s2 + $0x20] sm:$0xff] }
 0x61b   : > { %3583 = vmatprep.mubr.msk.f32.mxu1 %vm3783_vm1, %v3782_v17 }
 0x6d2   : > { %v1338_v60 = vpop.f32.mrf.mxu1 }
 0x6d4   : > { %v3570_v61 = vpop.f32.mrf.mxu1 }
 0x6d6   : > { %v1411_v62 = vpop.f32.mrf.mxu1 }
 0x6d7   : > { %v1412_v63 = vadd.f32 %v1411_v62, %v1338_v60 }
 0x6d8   : > { %v3575_v0 = vpop.f32.mrf.mxu1 }
 0x6da   : > { %v1516_v1 = vpop.f32.mrf.mxu1 }
 0x6db   : > { %v1520_v3 = vmul.f32 0.35355338, %v1516_v1 }
 0x6dc   : > { %v3580_v9 = vpop.f32.mrf.mxu1 }
 0x6dd   : > { %v1521_v10 = vsel %vm4009_vm3, %v1520_v3, -1e+30  ;;  %v466_v9 = vld [vmem:[%s4410_s2 + $0x28] sm:$0xff] }
 0x6de   : > { %v1522_v11 = vsel %vm912_vm2, %v1521_v10, -inf }
 0x6df   : > { %1523 = vmax.xlane.f32.xlu1 %v1522_v11 }
 0x6f0   : > { %577 = vperm.xlu1 %3734, %v479_v12  }
 0x6f4   : > { %502 = vperm.xlu1 %3734, %v464_v13  }
 0x6f8   : > { %542 = vperm.xlu1 %3734, %v472_v14  }
 0x768   : > { %v1524_v16 = vpop.xlane.xlu1 %1523 }
 0x769   : > { %v1525_v18 = vsub.f32 %v1521_v10, %v1524_v16  ;;  %v869_v10 = vld [vmem:[%s4411_s3 + $0x18] sm:$0xff] }
 0x76b   : > { %v1526_v20 = vmul.f32 1.442695, %v1525_v18 }
 0x76c   : > { %v578_v21 = vpop.permute.xlu1 %577 }
 0x76d   : > { %3743 = vpow2.f32 %v1526_v20  ;;  %v838_v22 = vadd.f32 %v837_v19, %v578_v21 }
 0x76f   : > { %3582 = vmatpush3.xpose.msk.msra.mxu1 %vm912_vm2, %v838_v22  ;;  %v468_v22 = vld [vmem:[%s4410_s2 + $0x38] sm:$0xff] }
 0x770   : > { %v503_v23 = vpop.permute.xlu1 %502  ;;  %3586 = vmatprep.subr.mxu1 %v3782_v17 }
 0x771   : > { %v763_v31 = vadd.f32 %v3950_v24, %v503_v23 }
 0x773   : > { %1683 = vxpose.xlu1.b32.start.end [1/1] (short) (narrow) %v763_v31, 8 }
 0x774   : > { %v543_v24 = vpop.permute.xlu1 %542 }
 0x775   : > { %v803_v38 = vadd.f32 %v4026_v2, %v543_v24 }
 0x77a   : > { %v3744_v30 = vpop.eup %3743 }
 0x77b   : > { %v1528_v32 = vsel %vm912_vm2, %v3744_v30, 0.0 }
 0x77c   : > { %1529 = vadd.xlane.f32.xlu0 %v1528_v32 }
 0x791   : > { %547 = vperm.xlu1 %3734, %v473_v33  }
 0x7ef   : > { %v1699_v41 = vpop.trf.xlu1 }
 0x805   : > { %v1530_v34 = vpop.xlane.xlu0 %1529 }
 0x806   : > { %3745 = vrcp.f32 %v1530_v34 }
 0x80c   : > { %v548_v14 = vpop.permute.xlu1 %547 }
 0x813   : > { %v3746_v35 = vpop.eup %3745 }
 0x814   : > { %v1532_v36 = vmul.f32 %v3746_v35, %v3744_v30 }
 0x816   : > { %3584 = vmatmul.mubr.msk.f32.vlgmr.msra.gmra.mxu1 %vm912_vm2, %v1532_v36 }
 0x817   : > { %3587 = vmatpush3.msra.mxu1 %v868_v37  ;;  %3588 = vmatprep.mubr.msk.f32.mxu1 %vm3783_vm1, %v3782_v17 }
 0x818   : > { %3591 = vmatprep.subr.mxu1 %v3782_v17 }
 0x8d6   : > { %v1605_v39 = vpop.f32.mrf.mxu1 }
 0x8d7   : > { %3589 = vmatmul.mubr.msk.f32.vlgmr.msra.gmra.mxu1 %vm912_vm2, %v1605_v39 }
 0x8d8   : > { %3592 = vmatpush3.msra.mxu1 %v803_v38  ;;  %v3585_v40 = vpop.f32.mrf.mxu1  ;;  %3593 = vmatprep.mubr.msk.f32.mxu1 %vm3783_vm1, %v3782_v17 }
 0x8d9   : > { %3596 = vmatprep.subr.mxu1 %v3782_v17  ;;  %v481_v40 = vld [vmem:[%s4410_s2 + $0xa0] sm:$0xff] }
 0x8db   : > { %3594 = vmatmul.mubr.msk.f32.vlgmr.msra.gmra.mxu1 %vm912_vm2, %v1699_v41 }
 0x8dc   : > { %3598 = vmatprep.mubr.msk.f32.mxu1 %vm3783_vm1, %v3782_v17 }
 0x997   : > { %v1678_v42 = vpop.f32.mrf.mxu1 }
 0x998   : > { %v4127_v45 = vadd.f32 %v1678_v42, %v1412_v63 }
 0x999   : > { %v3590_v2 = vpop.f32.mrf.mxu1 }
 0x99b   : > { %v1784_v47 = vpop.f32.mrf.mxu1 }
 0x99c   : > { %v1788_v48 = vmul.f32 0.35355338, %v1784_v47 }
 0x99d   : > { %v3595_v50 = vpop.f32.mrf.mxu1 }
 0x99e   : > { %v1789_v25 = vsel %vm4009_vm3, %v1788_v48, -1e+30 }
 0x99f   : > { %v1790_v52 = vsel %vm912_vm2, %v1789_v25, -inf }
 0x9a0   : > { %1791 = vmax.xlane.f32.xlu0 %v1790_v52 }
 0xa29   : > { %v1792_v53 = vpop.xlane.xlu0 %1791 }
 0xa2a   : > { %v1793_v54 = vsub.f32 %v1789_v25, %v1792_v53 }
 0xa2c   : > { %v1794_v55 = vmul.f32 1.442695, %v1793_v54 }
 0xa2e   : > { %3747 = vpow2.f32 %v1794_v55 }
 0xa3b   : > { %v3748_v56 = vpop.eup %3747 }
 0xa3c   : > { %v1796_v57 = vsel %vm912_vm2, %v3748_v56, 0.0 }
 0xa3d   : > { %1797 = vadd.xlane.f32.xlu0 %v1796_v57 }
 0xa53   : > { %582 = vperm.xlu0 %3733, %v480_v58  }
 0xa57   : > { %507 = vperm.xlu0 %3733, %v465_v59  }
 0xac6   : > { %v1798_v60 = vpop.xlane.xlu0 %1797 }
 0xac7   : > { %3749 = vrcp.f32 %v1798_v60 }
 0xace   : > { %v583_v61 = vpop.permute.xlu0 %582 }
 0xacf   : > { %v843_v62 = vadd.f32 %v3539_v15, %v583_v61  ;;  %v808_v15 = vadd.f32 %v4032_v6, %v548_v14  ;;  %v871_v14 = vld [vmem:[%s4411_s3 + $0x28] sm:$0xff] }
 0xad1   : > { %3597 = vmatpush3.xpose.msk.msra.mxu1 %vm912_vm2, %v843_v62 }
 0xad2   : > { %v508_v63 = vpop.permute.xlu0 %507  ;;  %3601 = vmatprep.subr.mxu1 %v3782_v17 }
 0xad3   : > { %v768_v0 = vadd.f32 %v3956_v27, %v508_v63  ;;  %v474_v27 = vld [vmem:[%s4410_s2 + $0x68] sm:$0xff] }
 0xad4   : > { %v3750_v1 = vpop.eup %3749 }
 0xad5   : > { %1951 = vxpose.xlu0.b32.start.end [1/1] (short) (narrow) %v768_v0, 8  ;;  %v1800_v3 = vmul.f32 %v3750_v1, %v3748_v56  ;;  %v482_v56 = vld [vmem:[%s4410_s2 + $0xa8] sm:$0xff]  ;;  %v475_v0 = vld [vmem:[%s4410_s2 + $0x70] sm:$0xff] }
 0xad7   : > { %3599 = vmatmul.mubr.msk.f32.vlgmr.msra.gmra.mxu1 %vm912_vm2, %v1800_v3 }
 0xad8   : > { %3603 = vmatprep.mubr.msk.f32.mxu1 %vm3783_vm1, %v3782_v17  ;;  %3602 = vmatpush3.msra.mxu1 %v869_v10 }
 0xad9   : > { %3606 = vmatprep.subr.mxu1 %v3782_v17 }
 0xafe   : > { %512 = vperm.xlu0 %3733, %v466_v9  }
 0xb02   : > { %552 = vperm.xlu0 %3733, %v474_v27  }
 0xb51   : > { %v1967_v11 = vpop.trf.xlu0 }
 0xb79   : > { %v513_v12 = vpop.permute.xlu0 %512 }
 0xb7a   : > { %v773_v13 = vadd.f32 %v3954_v26, %v513_v12  ;;  %v467_v26 = vld [vmem:[%s4410_s2 + $0x30] sm:$0xff] }
 0xb7c   : > { %2219 = vxpose.xlu0.b32.start.end [1/1] (short) (narrow) %v773_v13, 8 }
 0xb7d   : > { %v553_v6 = vpop.permute.xlu0 %552 }
 0xb7e   : > { %v813_v48 = vadd.f32 %v4030_v5, %v553_v6 }
 0xb97   : > { %v1873_v16 = vpop.f32.mrf.mxu1 }
 0xb98   : > { %3604 = vmatmul.mubr.msk.f32.vlgmr.msra.gmra.mxu1 %vm912_vm2, %v1873_v16 }
 0xb99   : > { %3607 = vmatpush3.msra.mxu1 %v808_v15  ;;  %v3600_v18 = vpop.f32.mrf.mxu1  ;;  %3608 = vmatprep.mubr.msk.f32.mxu1 %vm3783_vm1, %v3782_v17 }
 0xb9a   : > { %3616 = vmatprep.subr.mxu1 %v3782_v17 }
 0xb9c   : > { %3609 = vmatmul.mubr.msk.f32.vlgmr.msra.gmra.mxu1 %vm912_vm2, %v1967_v11 }
 0xb9d   : > { %3618 = vmatprep.mubr.msk.f32.mxu1 %vm3783_vm1, %v3782_v17 }
 0xba5   : > { %517 = vperm.xlu0 %3733, %v467_v26  }
 0xbf8   : > { %v2235_v19 = vpop.trf.xlu0 }
 0xc20   : > { %v518_v20 = vpop.permute.xlu0 %517 }
 0xc21   : > { %v778_v21 = vadd.f32 %v3960_v29, %v518_v20  ;;  %v483_v20 = vld [vmem:[%s4410_s2 + $0xb0] sm:$0xff] }
 0xc23   : > { %2487 = vxpose.xlu0.b32.start.end [1/1] (short) (narrow) %v778_v21, 8 }
 0xc4c   : > { %522 = vperm.xlu0 %3733, %v468_v22  }
 0xc58   : > { %v1946_v23 = vpop.f32.mrf.mxu1 }
 0xc59   : > { %v1950_v31 = vadd.f32 %v1946_v23, %v4127_v45 }
 0xc5a   : > { %v3605_v30 = vpop.f32.mrf.mxu1 }
 0xc5c   : > { %v2052_v32 = vpop.f32.mrf.mxu1 }
 0xc5d   : > { %v2056_v33 = vmul.f32 0.35355338, %v2052_v32 }
 0xc5e   : > { %v3610_v34 = vpop.f32.mrf.mxu1 }
 0xc5f   : > { %v2057_v35 = vsel %vm4009_vm3, %v2056_v33, -1e+30  ;;  %v476_v34 = vld [vmem:[%s4410_s2 + $0x78] sm:$0xff] }
 0xc60   : > { %v2058_v36 = vsel %vm912_vm2, %v2057_v35, -inf }
 0xc61   : > { %2059 = vmax.xlane.f32.xlu1 %v2058_v36 }
 0xc9f   : > { %v2503_v13 = vpop.trf.xlu0 }
 0xcea   : > { %v2060_v29 = vpop.xlane.xlu1 %2059 }
 0xceb   : > { %v2061_v37 = vsub.f32 %v2057_v35, %v2060_v29 }
 0xced   : > { %v2062_v24 = vmul.f32 1.442695, %v2061_v37  ;;  %v523_v37 = vpop.permute.xlu0 %522 }
 0xcef   : > { %3751 = vpow2.f32 %v2062_v24  ;;  %v783_v24 = vadd.f32 %v3958_v28, %v523_v37  ;;  %v3172_v37 = vld [vmem:[%s4415_s7 + $0x70] sm:$0xff] }
 0xcfc   : > { %v3752_v38 = vpop.eup %3751 }
 0xcfd   : > { %v2064_v39 = vsel %vm912_vm2, %v3752_v38, 0.0 }
 0xcfe   : > { %2065 = vadd.xlane.f32.xlu1 %v2064_v39 }
 0xd0f   : > { %587 = vperm.xlu1 %3734, %v481_v40  }
 0xd87   : > { %v2066_v41 = vpop.xlane.xlu1 %2065 }
 0xd88   : > { %3753 = vrcp.f32 %v2066_v41 }
 0xd8b   : > { %v588_v42 = vpop.permute.xlu1 %587 }
 0xd8c   : > { %v848_v45 = vadd.f32 %v4003_v44, %v588_v42  ;;  %v870_v44 = vld [vmem:[%s4411_s3 + $0x20] sm:$0xff] }
 0xd8d   : > { %3617 = vmatpush3.msra.mxu1 %v870_v44 }
 0xd8e   : > { %3612 = vmatpush3.xpose.msk.msra.mxu0 %vm912_vm2, %v848_v45  ;;  %3626 = vmatprep.subr.mxu1 %v3782_v17 }
 0xd8f   : > { %3621 = vmatprep.subr.mxu0 %v3782_v17 }
 0xd95   : > { %v3754_v2 = vpop.eup %3753 }
 0xd96   : > { %v2068_v47 = vmul.f32 %v3754_v2, %v3752_v38  ;;  %v484_v38 = vld [vmem:[%s4410_s2 + $0xb8] sm:$0xff] }
 0xd98   : > { %3614 = vmatmul.mubr.msk.f32.vlgmr.msra.gmra.mxu0 %vm912_vm2, %v2068_v47 }
 0xd99   : > { %3622 = vmatpush3.msra.mxu0 %v813_v48  ;;  %3623 = vmatprep.mubr.msk.f32.mxu0 %vm3783_vm1, %v3782_v17 }
 0xd9a   : > { %3631 = vmatprep.subr.mxu0 %v3782_v17 }
 0xd9c   : > { %3624 = vmatmul.mubr.msk.f32.vlgmr.msra.gmra.mxu0 %vm912_vm2, %v2235_v19 }
 0xd9d   : > { %3633 = vmatprep.mubr.msk.f32.mxu0 %vm3783_vm1, %v3782_v17  ;;  %3632 = vmatpush3.msra.mxu0 %v871_v14 }
 0xd9e   : > { %3641 = vmatprep.subr.mxu0 %v3782_v17 }
 0xe58   : > { %v2141_v5 = vpop.f32.mrf.mxu0 }
 0xe59   : > { %3619 = vmatmul.mubr.msk.f32.vlgmr.msra.gmra.mxu1 %vm912_vm2, %v2141_v5 }
 0xe5a   : > { %v3615_v50 = vpop.f32.mrf.mxu0  ;;  %3628 = vmatprep.mubr.msk.f32.mxu1 %vm3783_vm1, %v3782_v17 }
 0xe5c   : > { %v2320_v25 = vpop.f32.mrf.mxu0 }
 0xe5d   : > { %v2324_v52 = vmul.f32 0.35355338, %v2320_v25 }
 0xe5e   : > { %v3625_v53 = vpop.f32.mrf.mxu0 }
 0xe5f   : > { %v2325_v54 = vsel %vm4009_vm3, %v2324_v52, -1e+30 }
 0xe60   : > { %v2326_v55 = vsel %vm912_vm2, %v2325_v54, -inf }
 0xe61   : > { %2327 = vmax.xlane.f32.xlu1 %v2326_v55 }
 0xe72   : > { %592 = vperm.xlu1 %3734, %v482_v56  }
 0xeea   : > { %v2328_v57 = vpop.xlane.xlu1 %2327 }
 0xeeb   : > { %v2329_v58 = vsub.f32 %v2325_v54, %v2328_v57 }
 0xeed   : > { %v2330_v59 = vmul.f32 1.442695, %v2329_v58 }
 0xeee   : > { %v593_v60 = vpop.permute.xlu1 %592 }
 0xeef   : > { %3755 = vpow2.f32 %v2330_v59  ;;  %v853_v61 = vadd.f32 %v4001_v43, %v593_v60 }
 0xef1   : > { %3627 = vmatpush3.xpose.msk.msra.mxu1 %vm912_vm2, %v853_v61 }
 0xef2   : > { %3636 = vmatprep.subr.mxu1 %v3782_v17 }
 0xefc   : > { %v3756_v62 = vpop.eup %3755 }
 0xefd   : > { %v2332_v63 = vsel %vm912_vm2, %v3756_v62, 0.0 }
 0xefe   : > { %2333 = vadd.xlane.f32.xlu1 %v2332_v63 }
 0xf0f   : > { %557 = vperm.xlu1 %3734, %v475_v0  }
 0xf19   : > { %v2214_v1 = vpop.f32.mrf.mxu1 }
 0xf1a   : > { %v2218_v3 = vadd.f32 %v2214_v1, %v1950_v31  ;;  %v3399_v1 = vld [vmem:[%s4412_s4] ss:$0 sm:$0xff] }
 0xf1b   : > { %v3620_v9 = vpop.f32.mrf.mxu1 }
 0xf87   : > { %v2334_v10 = vpop.xlane.xlu1 %2333 }
 0xf88   : > { %3757 = vrcp.f32 %v2334_v10 }
 0xf8b   : > { %v558_v27 = vpop.permute.xlu1 %557 }
 0xf8c   : > { %v818_v12 = vadd.f32 %v4036_v8, %v558_v27 }
 0xf95   : > { %v3758_v43 = vpop.eup %3757 }
 0xf96   : > { %v2336_v11 = vmul.f32 %v3758_v43, %v3756_v62 }
 0xf98   : > { %3629 = vmatmul.mubr.msk.f32.vlgmr.msra.gmra.mxu1 %vm912_vm2, %v2336_v11 }
 0xf99   : > { %3637 = vmatpush3.msra.mxu1 %v818_v12  ;;  %3638 = vmatprep.mubr.msk.f32.mxu1 %vm3783_vm1, %v3782_v17 }
 0xf9a   : > { %3646 = vmatprep.subr.mxu1 %v3782_v17 }
 0xf9c   : > { %3639 = vmatmul.mubr.msk.f32.vlgmr.msra.gmra.mxu1 %vm912_vm2, %v2503_v13 }
 0xf9d   : > { %3648 = vmatprep.mubr.msk.f32.mxu1 %vm3783_vm1, %v3782_v17 }
0x1058   : > { %v2409_v8 = vpop.f32.mrf.mxu1 }
0x1059   : > { %3634 = vmatmul.mubr.msk.f32.vlgmr.msra.gmra.mxu0 %vm912_vm2, %v2409_v8 }
0x105a   : > { %v3630_v15 = vpop.f32.mrf.mxu1  ;;  %3643 = vmatprep.mubr.msk.f32.mxu0 %vm3783_vm1, %v3782_v17 }
0x105c   : > { %v2588_v16 = vpop.f32.mrf.mxu1 }
0x105d   : > { %v2592_v18 = vmul.f32 0.35355338, %v2588_v16  ;;  %v3068_v16 = vld [vmem:[%s4413_s5 + $0x38] sm:$0xff] }
0x105e   : > { %v3640_v26 = vpop.f32.mrf.mxu1 }
0x105f   : > { %v2593_v6 = vsel %vm4009_vm3, %v2592_v18, -1e+30  ;;  %v3066_v18 = vld [vmem:[%s4413_s5 + $0x28] sm:$0xff]  ;;  %v3065_v26 = vld [vmem:[%s4413_s5 + $0x20] sm:$0xff] }
0x1060   : > { %v2594_v19 = vsel %vm912_vm2, %v2593_v6, -inf }
0x1061   : > { %2595 = vmax.xlane.f32.xlu1 %v2594_v19  ;;  %v3063_v19 = vld [vmem:[%s4413_s5 + $0x10] sm:$0xff] }
0x1072   : > { %597 = vperm.xlu1 %3734, %v483_v20   ;;  %v3062_v20 = vld [vmem:[%s4413_s5 + $0x8] sm:$0xff] }
0x10ea   : > { %v2596_v21 = vpop.xlane.xlu1 %2595 }
0x10eb   : > { %v2597_v22 = vsub.f32 %v2593_v6, %v2596_v21  ;;  %v3064_v6 = vld [vmem:[%s4413_s5 + $0x18] sm:$0xff]  ;;  %v3061_v21 = vld [vmem:[%s4413_s5] sm:$0xff] }
0x10ed   : > { %v2598_v23 = vmul.f32 1.442695, %v2597_v22 }
0x10ee   : > { %v598_v31 = vpop.permute.xlu1 %597 }
0x10ef   : > { %3759 = vpow2.f32 %v2598_v23  ;;  %v858_v30 = vadd.f32 %v4007_v49, %v598_v31  ;;  %v872_v49 = vld [vmem:[%s4411_s3 + $0x30] sm:$0xff] }
0x10f0   : > { %3647 = vmatpush3.msra.mxu1 %v872_v49  ;;  %v3170_v49 = vld [vmem:[%s4415_s7 + $0x60] sm:$0xff] }
0x10f1   : > { %3642 = vmatpush3.xpose.msk.msra.mxu0 %vm912_vm2, %v858_v30  ;;  %3656 = vmatprep.subr.mxu1 %v3782_v17 }
0x10f2   : > { %3651 = vmatprep.subr.mxu0 %v3782_v17 }
0x10fc   : > { %v3760_v32 = vpop.eup %3759 }
0x10fd   : > { %v2600_v33 = vsel %vm912_vm2, %v3760_v32, 0.0 }
0x10fe   : > { %2601 = vadd.xlane.f32.xlu1 %v2600_v33 }
0x110f   : > { %562 = vperm.xlu1 %3734, %v476_v34   ;;  %v3401_v34 = vld [vmem:[%s4418_s10] ss:$0 sm:$0xff] }
0x1119   : > { %v2482_v35 = vpop.f32.mrf.mxu0 }
0x111a   : > { %v2486_v36 = vadd.f32 %v2482_v35, %v2218_v3 }
0x111b   : > { %v3635_v29 = vpop.f32.mrf.mxu0 }
0x111c   : > { %v3173_v29 = vld [vmem:[%s4415_s7 + $0x78] sm:$0xff] }
0x1138   : > { %2755 = vxpose.xlu1.b32.start.end [1/1] (short) (narrow) %v783_v24, 8  ;;  %v3171_v24 = vld [vmem:[%s4415_s7 + $0x68] sm:$0xff] }
0x1156   : > { %602 = vperm.xlu1 %3734, %v484_v38   ;;  %v3169_v38 = vld [vmem:[%s4415_s7 + $0x58] sm:$0xff] }
0x1187   : > { %v2602_v39 = vpop.xlane.xlu1 %2601 }
0x1188   : > { %3761 = vrcp.f32 %v2602_v39  ;;  %v3168_v39 = vld [vmem:[%s4415_s7 + $0x50] sm:$0xff] }
0x118b   : > { %v563_v40 = vpop.permute.xlu1 %562 }
0x118c   : > { %v823_v28 = vadd.f32 %v4034_v7, %v563_v40  ;;  %v3167_v40 = vld [vmem:[%s4415_s7 + $0x48] sm:$0xff] }
0x1195   : > { %v3762_v41 = vpop.eup %3761 }
0x1196   : > { %v2604_v42 = vmul.f32 %v3762_v41, %v3760_v32  ;;  %v3400_v32 = vld [vmem:[%s4417_s9] ss:$0 sm:$0xff] }
0x1197   : > { %v3166_v41 = vld [vmem:[%s4415_s7 + $0x40] sm:$0xff] }
0x1198   : > { %3644 = vmatmul.mubr.msk.f32.vlgmr.msra.gmra.mxu0 %vm912_vm2, %v2604_v42  ;;  %v3165_v42 = vld [vmem:[%s4415_s7 + $0x38] sm:$0xff] }
0x1199   : > { %3652 = vmatpush3.msra.mxu0 %v823_v28  ;;  %3653 = vmatprep.mubr.msk.f32.mxu0 %vm3783_vm1, %v3782_v17  ;;  %v3164_v28 = vld [vmem:[%s4415_s7 + $0x30] sm:$0xff] }
0x119a   : > { %3661 = vmatprep.subr.mxu0 %v3782_v17 }
0x11b4   : > { %v2771_v45 = vpop.trf.xlu1 }
0x11b5   : > { %3654 = vmatmul.mubr.msk.f32.vlgmr.msra.gmra.mxu0 %vm912_vm2, %v2771_v45  ;;  %v3163_v45 = vld [vmem:[%s4415_s7 + $0x28] sm:$0xff] }
0x11b6   : > { %3663 = vmatprep.mubr.msk.f32.mxu0 %vm3783_vm1, %v3782_v17  ;;  %3662 = vmatpush3.msra.mxu0 %v873_v51 }
0x11b7   : > { %3685 = vmatprep.subr.mxu0 %v3782_v17 }
0x11d1   : > { %v603_v2 = vpop.permute.xlu1 %602 }
0x11d2   : > { %v863_v47 = vadd.f32 %v4005_v46, %v603_v2  ;;  %v3162_v2 = vld [vmem:[%s4415_s7 + $0x20] sm:$0xff] }
0x1258   : > { %v2677_v48 = vpop.f32.mrf.mxu0 }
0x1259   : > { %3649 = vmatmul.mubr.msk.f32.vlgmr.msra.gmra.mxu1 %vm912_vm2, %v2677_v48  ;;  %v3160_v48 = vld [vmem:[%s4415_s7 + $0x10] sm:$0xff] }
0x125a   : > { %3657 = vmatpush3.xpose.msk.msra.mxu1 %vm912_vm2, %v863_v47  ;;  %v3645_v7 = vpop.f32.mrf.mxu0  ;;  %3658 = vmatprep.mubr.msk.f32.mxu1 %vm3783_vm1, %v3782_v17  ;;  %v3161_v47 = vld [vmem:[%s4415_s7 + $0x18] sm:$0xff] }
0x125b   : > { %3666 = vmatprep.subr.mxu1 %v3782_v17  ;;  %v3159_v7 = vld [vmem:[%s4415_s7 + $0x8] sm:$0xff] }
0x1275   : > { %v2856_v44 = vpop.f32.mrf.mxu0 }
0x1276   : > { %v2860_v5 = vmul.f32 0.35355338, %v2856_v44  ;;  %v3158_v44 = vld [vmem:[%s4415_s7] sm:$0xff] }
0x1277   : > { %v3655_v50 = vpop.f32.mrf.mxu0 }
0x1278   : > { %v2861_v25 = vsel %vm4009_vm3, %v2860_v5, -1e+30  ;;  %v3402_v5 = vld [vmem:[%s4414_s6] ss:$0 sm:$0xff] }
0x1279   : > { %v2862_v52 = vsel %vm912_vm2, %v2861_v25, -inf }
0x127a   : > { %2863 = vmax.xlane.f32.xlu0 %v2862_v52 }
0x1303   : > { %v2864_v46 = vpop.xlane.xlu0 %2863 }
0x1304   : > { %v2865_v53 = vsub.f32 %v2861_v25, %v2864_v46 }
0x1306   : > { %v2866_v54 = vmul.f32 1.442695, %v2865_v53 }
0x1308   : > { %3763 = vpow2.f32 %v2866_v54 }
0x1315   : > { %v3764_v55 = vpop.eup %3763 }
0x1316   : > { %v2868_v56 = vsel %vm912_vm2, %v3764_v55, 0.0 }
0x1317   : > { %2869 = vadd.xlane.f32.xlu0 %v2868_v56 }
0x1319   : > { %v2750_v57 = vpop.f32.mrf.mxu1 }
0x131a   : > { %v2754_v58 = vadd.f32 %v2750_v57, %v2486_v36 }
0x131b   : > { %v3650_v59 = vpop.f32.mrf.mxu1 }
0x13a0   : > { %v2870_v60 = vpop.xlane.xlu0 %2869 }
0x13a1   : > { %3765 = vrcp.f32 %v2870_v60 }
0x13ae   : > { %v3766_v61 = vpop.eup %3765 }
0x13af   : > { %v2872_v62 = vmul.f32 %v3766_v61, %v3764_v55 }
0x13b1   : > { %3659 = vmatmul.mubr.msk.f32.vlgmr.msra.gmra.mxu1 %vm912_vm2, %v2872_v62 }
0x13b2   : > { %3682 = vmatprep.mubr.msk.f32.mxu1 %vm3783_vm1, %v3782_v17  ;;  %3667 = vmatpush3.msra.mxu1 %v3068_v16 }
0x13b3   : > { %3668 = vmatprep.subr.mxu1 %v3782_v17 }
0x1471   : > { %v2945_v63 = vpop.f32.mrf.mxu1 }
0x1472   : > { %3664 = vmatmul.mubr.msk.f32.vlgmr.msra.gmra.mxu0 %vm912_vm2, %v2945_v63 }
0x1473   : > { %v3660_v0 = vpop.f32.mrf.mxu1  ;;  %3717 = vmatprep.mubr.msk.f32.mxu0 %vm3783_vm1, %v3782_v17  ;;  %3686 = vmatpush3.msra.mxu0 %v3173_v29 }
0x1474   : > { %3687 = vmatprep.subr.mxu0 %v3782_v17 }
0x1475   : > { %3688 = vmatpush3.msra.mxu0 %v3172_v37 }
0x1476   : > { %3689 = vmatprep.subr.mxu0 %v3782_v17 }
0x1477   : > { %3690 = vmatpush3.msra.mxu0 %v3171_v24 }
0x1478   : > { %3691 = vmatprep.subr.mxu0 %v3782_v17 }
0x1479   : > { %3692 = vmatpush3.msra.mxu0 %v3170_v49 }
0x147a   : > { %3693 = vmatprep.subr.mxu0 %v3782_v17 }
0x147b   : > { %3694 = vmatpush3.msra.mxu0 %v3169_v38 }
0x147c   : > { %3695 = vmatprep.subr.mxu0 %v3782_v17 }
0x147d   : > { %3696 = vmatpush3.msra.mxu0 %v3168_v39 }
0x147e   : > { %3697 = vmatprep.subr.mxu0 %v3782_v17 }
0x147f   : > { %3698 = vmatpush3.msra.mxu0 %v3167_v40 }
0x1480   : > { %3699 = vmatprep.subr.mxu0 %v3782_v17 }
0x1481   : > { %3700 = vmatpush3.msra.mxu0 %v3166_v41 }
0x1482   : > { %3701 = vmatprep.subr.mxu0 %v3782_v17 }
0x1483   : > { %3702 = vmatpush3.msra.mxu0 %v3165_v42 }
0x1484   : > { %3703 = vmatprep.subr.mxu0 %v3782_v17 }
0x1485   : > { %3704 = vmatpush3.msra.mxu0 %v3164_v28 }
0x1486   : > { %3705 = vmatprep.subr.mxu0 %v3782_v17 }
0x1487   : > { %3706 = vmatpush3.msra.mxu0 %v3163_v45 }
0x1488   : > { %3707 = vmatprep.subr.mxu0 %v3782_v17 }
0x1489   : > { %3708 = vmatpush3.msra.mxu0 %v3162_v2 }
0x148a   : > { %3709 = vmatprep.subr.mxu0 %v3782_v17 }
0x148b   : > { %3710 = vmatpush3.msra.mxu0 %v3161_v47 }
0x148c   : > { %3711 = vmatprep.subr.mxu0 %v3782_v17 }
0x148d   : > { %3712 = vmatpush3.msra.mxu0 %v3160_v48 }
0x148e   : > { %3713 = vmatprep.subr.mxu0 %v3782_v17 }
0x148f   : > { %3714 = vmatpush3.msra.mxu0 %v3159_v7 }
0x1490   : > { %3715 = vmatprep.subr.mxu0 %v3782_v17 }
0x1491   : > { %3716 = vmatpush3.msra.mxu0 %v3158_v44 }
0x1532   : > { %v3018_v3 = vpop.f32.mrf.mxu0 }
0x1533   : > { %v3022_v9 = vadd.f32 %v3018_v3, %v2754_v58 }
0x1534   : > { %v3665_v10 = vpop.f32.mrf.mxu0 }
0x1535   : > { %v3029_v27 = vadd.f32 %v3399_v1, %v3022_v9 }
0x1537   : > { %v3030_v43 = vadd.f32 %v3029_v27, %v3881_v4  ;;  %v3067_v4 = vld [vmem:[%s4413_s5 + $0x30] sm:$0xff] }
0x1538   : > { %3669 = vmatpush3.msra.mxu1 %v3067_v4 }
0x1539   : > { %v3033_v11 = vsel %vm605_vm0, %v3030_v43, 0.0  ;;  %3670 = vmatprep.subr.mxu1 %v3782_v17 }
0x153a   : > { %3034 = vadd.xlane.f32.xlu0 %v3033_v11  ;;  %3671 = vmatpush3.msra.mxu1 %v3066_v18 }
0x153b   : > { %3672 = vmatprep.subr.mxu1 %v3782_v17 }
0x153c   : > { %3673 = vmatpush3.msra.mxu1 %v3065_v26 }
0x153d   : > { %3674 = vmatprep.subr.mxu1 %v3782_v17 }
0x153e   : > { %3675 = vmatpush3.msra.mxu1 %v3064_v6 }
0x153f   : > { %3676 = vmatprep.subr.mxu1 %v3782_v17 }
0x1540   : > { %3677 = vmatpush3.msra.mxu1 %v3063_v19 }
0x1541   : > { %3678 = vmatprep.subr.mxu1 %v3782_v17 }
0x1542   : > { %3679 = vmatpush3.msra.mxu1 %v3062_v20 }
0x1543   : > { %3680 = vmatprep.subr.mxu1 %v3782_v17  ;;  %v3404_v17 = vld [vmem:[%s4416_s8] ss:$0 sm:$0xff] }
0x1544   : > { %3681 = vmatpush3.msra.mxu1 %v3061_v21 }
0x15c3   : > { %v3035_v12 = vpop.xlane.xlu0 %3034 }
0x15c4   : > { %v3037_v13 = vmul.f32 0.015625, %v3035_v12 }
0x15c6   : > { %v3038_v14 = vsub.f32 %v3030_v43, %v3037_v13 }
0x15c8   : > { %v3039_v8 = vmul.f32 %v3038_v14, %v3038_v14 }
0x15ca   : > { %v3040_v15 = vsel %vm605_vm0, %v3039_v8, 0.0 }
0x15cb   : > { %3041 = vadd.xlane.f32.xlu0 %v3040_v15  ;;  %v3406_v15 = vld [vmem:[%s4420_s12] ss:$0 sm:$0xff] }
0x1654   : > { %v3042_v22 = vpop.xlane.xlu0 %3041 }
0x1655   : > { %v3043_v23 = vmul.f32 0.015625, %v3042_v22 }
0x1657   : > { %v3044_v31 = vadd.f32 1e-05, %v3043_v23 }
0x1659   : > { %3767 = vrsqrt.f32 %v3044_v31 }
0x1666   : > { %v3768_v30 = vpop.eup %3767 }
0x1667   : > { %v3046_v33 = vmul.f32 %v3768_v30, %v3038_v14  ;;  %v3405_v14 = vld [vmem:[%s4419_s11] ss:$0 sm:$0xff] }
0x1669   : > { %v3053_v35 = vmul.f32 %v3400_v32, %v3046_v33 }
0x166b   : > { %v4317_v36 = vadd.f32 %v3401_v34, %v3053_v35 }
0x166d   : > { %3683 = vmatmul.mubr.msk.f32.vlgmr.msra.gmra.mxu1 %vm605_vm0, %v4317_v36 }
0x172d   : > { %v3145_v50 = vpop.f32.mrf.mxu1 }
0x172e   : > { %v3146_v25 = vadd.f32 %v3402_v5, %v3145_v50 }
0x172f   : > { %v3684_v52 = vpop.f32.mrf.mxu1 }
0x1730   : > { %v3150_v46 = vmul.f32 0.044715, %v3146_v25  ;;  %v3149_v58 = vmul.f32 0.5, %v3146_v25 }
0x1732   : > { %v3151_v53 = vmul.f32 %v3150_v46, %v3146_v25 }
0x1734   : > { %v3152_v54 = vmul.f32 %v3151_v53, %v3146_v25 }
0x1736   : > { %v3153_v55 = vadd.f32 %v3152_v54, %v3146_v25 }
0x1738   : > { %v3154_v56 = vmul.f32 0.7978846, %v3153_v55 }
0x173a   : > { %3769 = vtanh.f32 %v3154_v56 }
0x1747   : > { %v3770_v57 = vpop.eup %3769 }
0x1748   : > { %v3156_v59 = vadd.f32 1.0, %v3770_v57 }
0x174a   : > { %v3157_v60 = vmul.f32 %v3156_v59, %v3149_v58 }
0x174c   : > { %3718 = vmatmul.mubr.f32.vlgmr.msra.gmra.mxu0 %v3157_v60 }
0x180c   : > { %v3247_v61 = vpop.f32.mrf.mxu0 }
0x180d   : > { %v3248_v62 = vadd.f32 %v3404_v17, %v3247_v61 }
0x180e   : > { %v3719_v51 = vpop.f32.mrf.mxu0 }
0x180f   : > { %v3251_v63 = vadd.f32 %v3248_v62, %v4317_v36 }
0x1811   : > { %v3254_v0 = vsel %vm605_vm0, %v3251_v63, 0.0 }
0x1812   : > { %3255 = vadd.xlane.f32.xlu0 %v3254_v0 }
0x189b   : > { %v3256_v1 = vpop.xlane.xlu0 %3255 }
0x189c   : > { %v3257_v3 = vmul.f32 0.015625, %v3256_v1 }
0x189e   : > { %v3258_v9 = vsub.f32 %v3251_v63, %v3257_v3 }
0x18a0   : > { %v3259_v10 = vmul.f32 %v3258_v9, %v3258_v9 }
0x18a2   : > { %v3260_v27 = vsel %vm605_vm0, %v3259_v10, 0.0 }
0x18a3   : > { %3261 = vadd.xlane.f32.xlu0 %v3260_v27 }
0x192c   : > { %v3262_v43 = vpop.xlane.xlu0 %3261 }
0x192d   : > { %v3263_v11 = vmul.f32 0.015625, %v3262_v43 }
0x192f   : > { %v3264_v12 = vadd.f32 1e-05, %v3263_v11 }
0x1931   : > { %3771 = vrsqrt.f32 %v3264_v12 }
0x193e   : > { %v3772_v13 = vpop.eup %3771 }
0x193f   : > { %v3266_v8 = vmul.f32 %v3772_v13, %v3258_v9 }
0x1941   : > { %v3273_v16 = vmul.f32 %v3405_v14, %v3266_v8 }
0x1943   : > { %v3280_v4 = vadd.f32 %v3406_v15, %v3273_v16 }
0x1945   : > { %3281 = vst.msk [vmem:[%s435_s22] sm:$0xff] %vm605_vm0, %v3280_v4 }
0x1946 PF: > { %s23_s25 = sadd.s32 1, %s3779_s25  }
0x1947   : > { %p20_p4 = scmp.ge.s32.totalorder %s23_s25, 4  }
0x1949   :  { %22 = sbr.rel (!%p20_p4) target bundleno = 1 (0x1), region = 102 }

// kernel: transformer_forward.11
= control target key start
LH: loop header
LB: loop body
LE: loop exit
PB: predicated region body
PF: predicated region fallthrough
CT: control target
= control target key end

     0   :  { %s8159_s0 = inlined_call_operand.vmem [shape: f32[2,4,64], index: 0, kind: input, shape index: {}]   ;;  %s8160_s1 = inlined_call_operand.vmem [shape: f32[2,8,64], index: 1, kind: input, shape index: {}]   ;;  %s8161_s2 = inlined_call_operand.vmem [shape: f32[192,64], index: 2, kind: input, shape index: {}]   ;;  %s8162_s3 = inlined_call_operand.vmem [shape: f32[192,1], index: 3, kind: input, shape index: {}]   ;;  %s8163_s4 = inlined_call_operand.vmem [shape: f32[64,64], index: 4, kind: input, shape index: {}]   ;;  %s8164_s5 = inlined_call_operand.vmem [shape: f32[1,64], index: 5, kind: input, shape index: {}]   ;;  %s8165_s6 = inlined_call_operand.vmem [shape: f32[64,64], index: 6, kind: input, shape index: {}]   ;;  %s8166_s7 = inlined_call_operand.vmem [shape: f32[64,1], index: 7, kind: input, shape index: {}]   ;;  %s8167_s8 = inlined_call_operand.vmem [shape: f32[128,64], index: 8, kind: input, shape index: {}]   ;;  %s8168_s9 = inlined_call_operand.vmem [shape: f32[128,1], index: 9, kind: input, shape index: {}]   ;;  %s8169_s10 = inlined_call_operand.vmem [shape: f32[64,64], index: 10, kind: input, shape index: {}]   ;;  %s8170_s11 = inlined_call_operand.vmem [shape: f32[1,64], index: 11, kind: input, shape index: {}]   ;;  %s8171_s12 = inlined_call_operand.vmem [shape: f32[64,128], index: 12, kind: input, shape index: {}]   ;;  %s8172_s13 = inlined_call_operand.vmem [shape: f32[1,128], index: 13, kind: input, shape index: {}]   ;;  %s8173_s14 = inlined_call_operand.vmem [shape: f32[128,64], index: 14, kind: input, shape index: {}]   ;;  %s8174_s15 = inlined_call_operand.vmem [shape: f32[1,64], index: 15, kind: input, shape index: {}]   ;;  %s8175_s16 = inlined_call_operand.vmem [shape: f32[1,64], index: 16, kind: input, shape index: {}]   ;;  %s8176_s17 = inlined_call_operand.vmem [shape: f32[1,64], index: 17, kind: input, shape index: {}]   ;;  %s8177_s18 = inlined_call_operand.vmem [shape: f32[1,64], index: 18, kind: input, shape index: {}]   ;;  %s8178_s19 = inlined_call_operand.vmem [shape: f32[1,64], index: 19, kind: input, shape index: {}]   ;;  %s8179_s20 = inlined_call_operand.vmem [shape: f32[1,64], index: 20, kind: input, shape index: {}]   ;;  %s8180_s21 = inlined_call_operand.vmem [shape: f32[1,64], index: 21, kind: input, shape index: {}]   ;;  %s8181_s22 = inlined_call_operand.vmem [shape: f32[2,4,64], index: 22, kind: output, shape index: {}]  }
   0x1   :  { %8187 = sst [smem:[#allocation2_spill]] %s8159_s0 }
   0x2   :  { %8188 = sst [smem:[#allocation3_spill]] %s8160_s1 }
   0x3   :  { %8189 = sst [smem:[#allocation4_spill]] %s8161_s2 }
   0x4   :  { %8190 = sst [smem:[#allocation5_spill]] %s8162_s3  ;;  %s7190_s3 = smov 0  }
   0x5   :  { %8191 = sst [smem:[#allocation6_spill]] %s8163_s4 }
   0x6   :  { %8192 = sst [smem:[#allocation7_spill]] %s8164_s5 }
   0x7   :  { %8193 = sst [smem:[#allocation8_spill]] %s8165_s6 }
   0x8 LB: > { %s6296_s28 = sadd.s32 4294967295, %s7070_s3   ;;  %p6300_p0 = scmp.ge.s32.totalorder %s7070_s3, 1  ;;  %s7070_s3 = sphi %s7190_s3, %s32_s3  }
   0x9   : > { %p620_p1 = scmp.lt.s32.totalorder %s7070_s3, 3 }
   0xb   : > { %p621_p2 = pnand %p6300_p0, %p620_p1 }
   0xc   : > { %p684_p3 = scmp.lt.s32.totalorder (!%p621_p2), %s6296_s28, 1  ;;  %s8194_s4 = sld [smem:[#allocation4_spill]] (!%p621_p2) }
   0xd   : > { %624 = sbr.rel (%p621_p2) target bundleno = 11838 (0x2e3e), region = 108  ;;  %s8195_s1 = sld [smem:[#allocation5_spill]] (!%p621_p2) }
   0xe   : > { %s8196_s25 = sld [smem:[#allocation2_spill]] (!%p621_p2) }
   0xf   : > { %s8200_s2 = sld [smem:[#allocation3_spill]] (!%p621_p2) }
  0x10   : > { %s8202_s23 = sld [smem:[#allocation8_spill]] (!%p621_p2) }
  0x12   : > { %vm866_vm0 = vcmask 523264   ;;  %v698_v0 = vld [vmem:[%s8194_s4] sm:$0xff]  ;;  %v7072_v1 = vmov 0   ;;  %s8205_s28 = smov (!%p684_p3, %s6296_s28), 1  ;;  %v699_v5 = vld [vmem:[%s8194_s4 + $0x8] sm:$0xff]  ;;  %v700_v6 = vld [vmem:[%s8194_s4 + $0x10] sm:$0xff]  ;;  %v1136_v45 = vlaneseq }
  0x13   : > { %6607 = vmatprep.mubr.msk.f32.mxu0 %vm866_vm0, %v698_v0  ;;  %6990 = vset.pattern.permute.xlu0 %v7072_v1  ;;  %v722_v2 = vld [vmem:[%s8195_s1] sm:$0xff]  ;;  %s8186_s5 = sshll.u32 %s8205_s28, 2  ;;  %v723_v7 = vld [vmem:[%s8195_s1 + $0x8] sm:$0xff]  ;;  %v701_v8 = vld [vmem:[%s8194_s4 + $0x18] sm:$0xff]  ;;  %v7073_v17 = vmov 0.0   ;;  %vm7074_vm1 = vmmov 0  }
  0x14   : > { %748 = vperm.xlu0 %6990, %v722_v2   ;;  %s687_s26 = scalar_lea.vmem %s8196_s25, %s8186_s5  ;;  %v730_v3 = vld [vmem:[%s8195_s1 + $0x40] sm:$0xff]  ;;  %v703_v10 = vld [vmem:[%s8194_s4 + $0x28] sm:$0xff]  ;;  %v704_v11 = vld [vmem:[%s8194_s4 + $0x30] sm:$0xff]  ;;  %vm1173_vm2 = vcmask 64512   ;;  %v1137_v47 = vshrl.u32 %v1136_v45, 7  ;;  %v1139_v48 = vand.u32 127, %v1136_v45 }
  0x15   : > { %v7217_v4 = vld [vmem:[%s687_s26] sm:$0xf]  ;;  %v705_v12 = vld [vmem:[%s8194_s4 + $0x38] sm:$0xff]  ;;  %v707_v14 = vld [vmem:[%s8194_s4 + $0x48] sm:$0xff]  ;;  %vm1249_vm4 = vcmask 27648   ;;  %vm1261_vm5 = vcmask 31744  }
  0x16   : > { %6605 = vmatprep.subr.msk.mxu0 %vm866_vm0, %v7217_v4  ;;  %6977 = vmatprep.subr.msk.mxu1 %vm866_vm0, %v7217_v4  ;;  %v702_v9 = vld [vmem:[%s8194_s4 + $0x20] sm:$0xff]  ;;  %v719_v16 = vld [vmem:[%s8194_s4 + $0xa8] sm:$0xff]  ;;  %v720_v18 = vld [vmem:[%s8194_s4 + $0xb0] sm:$0xff]  ;;  %vm7345_vm3 = vcmp.le.s32.totalorder %v1139_v48, %v1137_v47  ;;  %s8199_s25 = sld [smem:[#allocation6_spill]]  ;;  %s6302_s0 = sshll.u32 %s8205_s28, 3  ;;  %vm3296_vm6 = vcmask 519168  }
  0x17   : > { %6606 = vmatpush3.xpose.msk.msra.mxu0 %vm866_vm0, %v7217_v4  ;;  %6978 = vmatpush3.xpose.msk.msra.mxu1 %vm866_vm0, %v7217_v4  ;;  %v706_v13 = vld [vmem:[%s8194_s4 + $0x40] sm:$0xff]  ;;  %v721_v19 = vld [vmem:[%s8194_s4 + $0xb8] sm:$0xff]  ;;  %v708_v35 = vld [vmem:[%s8194_s4 + $0x50] sm:$0xff]  ;;  %s691_s27 = scalar_lea.vmem %s8200_s2, %s6302_s0  ;;  %s8201_s26 = sld [smem:[#allocation7_spill]]  ;;  %vm3937_vm7 = vcmask 60416  }
  0x18   : > { %788 = vperm.xlu0 %6990, %v730_v3   ;;  %v718_v15 = vld [vmem:[%s8194_s4 + $0xa0] sm:$0xff]  ;;  %6643 = vmatprep.subr.mxu1 %v7073_v17  ;;  %v709_v36 = vld [vmem:[%s8194_s4 + $0x58] sm:$0xff]  ;;  %v711_v38 = vld [vmem:[%s8194_s4 + $0x68] sm:$0xff]  ;;  %s8203_s6 = sshll.u32 %s8205_s28, 2 }
  0x19   : > { %6637 = vmatprep.mubr.msk.f32.mxu1 %vm866_vm0, %v718_v15  ;;  %6708 = vmatprep.subr.mxu0 %v7073_v17  ;;  %v710_v37 = vld [vmem:[%s8194_s4 + $0x60] sm:$0xff]  ;;  %v712_v39 = vld [vmem:[%s8194_s4 + $0x70] sm:$0xff]  ;;  %v713_v40 = vld [vmem:[%s8194_s4 + $0x78] sm:$0xff]  ;;  %s695_s2 = scalar_lea.vmem %s8181_s22, %s8203_s6 }
  0x1a   : > { %6608 = vmatmul.mubr.msk.f32.vlgmr.msra.gmra.mxu0 %vm866_vm0, %v699_v5  ;;  %6638 = vmatmul.mubr.msk.f32.vlgmr.msra.gmra.mxu1 %vm866_vm0, %v719_v16  ;;  %v714_v41 = vld [vmem:[%s8194_s4 + $0x80] sm:$0xff]  ;;  %v715_v42 = vld [vmem:[%s8194_s4 + $0x88] sm:$0xff]  ;;  %v724_v59 = vld [vmem:[%s8195_s1 + $0x10] sm:$0xff] }
  0x1b   : > { %6610 = vmatprep.mubr.msk.f32.mxu0 %vm866_vm0, %v700_v6  ;;  %6640 = vmatprep.mubr.msk.f32.mxu1 %vm866_vm0, %v720_v18  ;;  %v731_v56 = vld [vmem:[%s8195_s1 + $0x48] sm:$0xff]  ;;  %v3828_v51 = vld [vmem:[%s8169_s10 + $0x38] sm:$0xff] }
  0x1c   : > { %753 = vperm.xlu0 %6990, %v723_v7  }
  0x1e   : > { %6611 = vmatmul.mubr.msk.f32.gmra.mxu0 %vm866_vm0, %v701_v8  ;;  %6641 = vmatmul.mubr.msk.f32.gmra.mxu1 %vm866_vm0, %v721_v19 }
  0x1f   : > { %6613 = vmatprep.mubr.msk.f32.mxu0 %vm866_vm0, %v702_v9  ;;  %6645 = vmatprep.mubr.msk.f32.mxu1 %vm7074_vm1, %v7073_v17 }
  0x22   : > { %6614 = vmatmul.mubr.msk.f32.gmra.mxu0 %vm866_vm0, %v703_v10 }
  0x23   : > { %6616 = vmatprep.mubr.msk.f32.mxu0 %vm866_vm0, %v704_v11 }
  0x26   : > { %6617 = vmatmul.mubr.msk.f32.gmra.mxu0 %vm866_vm0, %v705_v12 }
  0x27   : > { %6619 = vmatprep.mubr.msk.f32.mxu0 %vm866_vm0, %v706_v13 }
  0x2a   : > { %6620 = vmatmul.mubr.msk.f32.gmra.mxu0 %vm866_vm0, %v707_v14 }
  0x2b   : > { %6622 = vmatprep.mubr.msk.f32.mxu0 %vm866_vm0, %v708_v35 }
  0x2e   : > { %6623 = vmatmul.mubr.msk.f32.gmra.mxu0 %vm866_vm0, %v709_v36 }
  0x2f   : > { %6625 = vmatprep.mubr.msk.f32.mxu0 %vm866_vm0, %v710_v37 }
  0x32   : > { %6626 = vmatmul.mubr.msk.f32.gmra.mxu0 %vm866_vm0, %v711_v38  ;;  %v739_v38 = vld [vmem:[%s8195_s1 + $0x88] sm:$0xff] }
  0x33   : > { %6628 = vmatprep.mubr.msk.f32.mxu0 %vm866_vm0, %v712_v39  ;;  %v732_v39 = vld [vmem:[%s8195_s1 + $0x50] sm:$0xff] }
  0x36   : > { %6629 = vmatmul.mubr.msk.f32.gmra.mxu0 %vm866_vm0, %v713_v40 }
  0x37   : > { %6631 = vmatprep.mubr.msk.f32.mxu0 %vm866_vm0, %v714_v41 }
  0x3a   : > { %6632 = vmatmul.mubr.msk.f32.gmra.mxu0 %vm866_vm0, %v715_v42 }
  0x8f   : > { %v749_v21 = vpop.permute.xlu0 %748 }
  0x93   : > { %v789_v31 = vpop.permute.xlu0 %788 }
  0x97   : > { %v754_v57 = vpop.permute.xlu0 %753 }
  0xda   : > { %v6609_v20 = vpop.f32.mrf.mxu0  ;;  %v7337_v43 = vpop.f32.mrf.mxu1 }
  0xdb   : > { %v1014_v58 = vadd.f32 %v6609_v20, %v754_v57 }
  0xdc   : > { %v1008_v22 = vpop.f32.mrf.mxu0  ;;  %v7339_v44 = vpop.f32.mrf.mxu1 }
  0xdd   : > { %v1009_v23 = vadd.f32 %v1008_v22, %v749_v21 }
  0xde   : > { %v7286_v24 = vpop.f32.mrf.mxu0  ;;  %v7341_v46 = vpop.f32.mrf.mxu1 }
  0xdf   : > { %1141 = vxpose.xlu1.b32.start.end [1/1] (short) (narrow) %v1009_v23, 8 }
  0xe0   : > { %v7288_v25 = vpop.f32.mrf.mxu0  ;;  %v7343_v49 = vpop.f32.mrf.mxu1 }
  0xe2   : > { %v7290_v26 = vpop.f32.mrf.mxu0 }
  0xe4   : > { %v7292_v27 = vpop.f32.mrf.mxu0 }
  0xe6   : > { %v7294_v28 = vpop.f32.mrf.mxu0 }
  0xe8   : > { %v7296_v29 = vpop.f32.mrf.mxu0 }
  0xea   : > { %v7298_v30 = vpop.f32.mrf.mxu0 }
  0xec   : > { %v1048_v32 = vpop.f32.mrf.mxu0 }
  0xed   : > { %v1049_v33 = vadd.f32 %v1048_v32, %v789_v31 }
  0xee   : > { %v7362_v2 = vpop.f32.mrf.mxu0 }
  0xef   : > { %6644 = vmatpush3.msra.mxu1 %v1049_v33 }
  0xf0   : > { %6648 = vmatprep.subr.mxu1 %v7073_v17  ;;  %v7364_v3 = vpop.f32.mrf.mxu0 }
  0xf2   : > { %v7366_v5 = vpop.f32.mrf.mxu0 }
  0xf4   : > { %v7368_v6 = vpop.f32.mrf.mxu0 }
  0xf6   : > { %v7370_v7 = vpop.f32.mrf.mxu0 }
  0xf8   : > { %v7372_v8 = vpop.f32.mrf.mxu0 }
  0xfa   : > { %v6633_v10 = vpop.f32.mrf.mxu0 }
  0xfc   : > { %v1088_v11 = vpop.f32.mrf.mxu0 }
  0xfd   : > { %6991 = vset.pattern.permute.xlu1 %v7072_v1  ;;  %v738_v1 = vld [vmem:[%s8195_s1 + $0x80] sm:$0xff] }
 0x15b   : > { %v1157_v34 = vpop.trf.xlu1 }
 0x15c   : > { %6646 = vmatmul.mubr.msk.f32.vlgmr.msra.gmra.mxu1 %vm1173_vm2, %v1157_v34 }
 0x15d   : > { %6650 = vmatprep.mubr.msk.f32.mxu1 %vm7074_vm1, %v7073_v17 }
 0x21c   : > { %v1243_v50 = vpop.f32.mrf.mxu1 }
 0x21d   : > { %v1247_v52 = vmul.f32 0.35355338, %v1243_v50 }
 0x21e   : > { %v6647_v53 = vpop.f32.mrf.mxu1 }
 0x21f   : > { %v1248_v54 = vsel %vm7345_vm3, %v1247_v52, -1e+30  ;;  %v716_v52 = vld [vmem:[%s8194_s4 + $0x90] sm:$0xff]  ;;  %v717_v53 = vld [vmem:[%s8194_s4 + $0x98] sm:$0xff] }
 0x220   : > { %v1250_v55 = vsel %vm1249_vm4, %v1248_v54, -inf  ;;  %6634 = vmatprep.mubr.msk.f32.mxu0 %vm866_vm0, %v716_v52 }
 0x221   : > { %1251 = vmax.xlane.f32.xlu1 %v1250_v55  ;;  %6635 = vmatmul.mubr.msk.f32.gmra.mxu0 %vm866_vm0, %v717_v53 }
 0x222   : > { %6710 = vmatprep.mubr.msk.f32.mxu0 %vm7074_vm1, %v7073_v17 }
 0x232   : > { %793 = vperm.xlu1 %6991, %v731_v56  }
 0x25b   : > { %1338 = vxpose.xlu1.b32.start.end [1/1] (short) (narrow) %v1014_v58, 8 }
 0x279   : > { %758 = vperm.xlu1 %6991, %v724_v59  }
 0x2aa   : > { %v1252_v60 = vpop.xlane.xlu1 %1251 }
 0x2ab   : > { %v1253_v61 = vsub.f32 %v1248_v54, %v1252_v60  ;;  %v1127_v54 = vld [vmem:[%s8199_s25] sm:$0xff] }
 0x2ad   : > { %v1254_v62 = vmul.f32 1.442695, %v1253_v61 }
 0x2ae   : > { %v794_v14 = vpop.permute.xlu1 %793 }
 0x2af   : > { %6992 = vpow2.f32 %v1254_v62  ;;  %v1054_v18 = vadd.f32 %v7298_v30, %v794_v14  ;;  %v733_v14 = vld [vmem:[%s8195_s1 + $0x58] sm:$0xff] }
 0x2bc   : > { %v6993_v63 = vpop.eup %6992 }
 0x2bd   : > { %v1256_v0 = vsel %vm1249_vm4, %v6993_v63, 0.0 }
 0x2be   : > { %1257 = vadd.xlane.f32.xlu0 %v1256_v0 }
 0x2d4   : > { %828 = vperm.xlu0 %6990, %v738_v1  }
 0x2d7   : > { %v1354_v19 = vpop.trf.xlu1 }
 0x2f4   : > { %v759_v40 = vpop.permute.xlu1 %758 }
 0x2f5   : > { %v1019_v41 = vadd.f32 %v7288_v25, %v759_v40  ;;  %v1128_v25 = vld [vmem:[%s8199_s25 + $0x8] sm:$0xff] }
 0x347   : > { %v1258_v9 = vpop.xlane.xlu0 %1257 }
 0x348   : > { %6994 = vrcp.f32 %v1258_v9 }
 0x34f   : > { %v829_v12 = vpop.permute.xlu0 %828 }
 0x350   : > { %v1089_v13 = vadd.f32 %v1088_v11, %v829_v12  ;;  %v740_v12 = vld [vmem:[%s8195_s1 + $0x90] sm:$0xff] }
 0x352   : > { %6649 = vmatpush3.xpose.msk.msra.mxu1 %vm1261_vm5, %v1089_v13  ;;  %v725_v13 = vld [vmem:[%s8195_s1 + $0x18] sm:$0xff] }
 0x353   : > { %6653 = vmatprep.subr.mxu1 %v7073_v17 }
 0x355   : > { %v6995_v15 = vpop.eup %6994 }
 0x356   : > { %v1260_v16 = vmul.f32 %v6995_v15, %v6993_v63  ;;  %v6636_v15 = vpop.f32.mrf.mxu0 }
 0x358   : > { %6651 = vmatmul.mubr.msk.f32.vlgmr.msra.gmra.mxu1 %vm1261_vm5, %v1260_v16 }
 0x359   : > { %6654 = vmatpush3.msra.mxu1 %v1054_v18  ;;  %6655 = vmatprep.mubr.msk.f32.mxu1 %vm7074_vm1, %v7073_v17 }
 0x35a   : > { %6658 = vmatprep.subr.mxu1 %v7073_v17 }
 0x35c   : > { %6656 = vmatmul.mubr.msk.f32.vlgmr.msra.gmra.mxu1 %vm1173_vm2, %v1354_v19  ;;  %v1098_v19 = vpop.f32.mrf.mxu0 }
 0x35d   : > { %6660 = vmatprep.mubr.msk.f32.mxu1 %vm7074_vm1, %v7073_v17 }
 0x418   : > { %v1334_v20 = vpop.f32.mrf.mxu1 }
 0x41a   : > { %v6652_v21 = vpop.f32.mrf.mxu1 }
 0x41c   : > { %v1439_v22 = vpop.f32.mrf.mxu1 }
 0x41d   : > { %v1443_v23 = vmul.f32 0.35355338, %v1439_v22 }
 0x41e   : > { %v6657_v31 = vpop.f32.mrf.mxu1 }
 0x41f   : > { %v1444_v30 = vsel %vm7345_vm3, %v1443_v23, -1e+30 }
 0x420   : > { %v1445_v32 = vsel %vm1249_vm4, %v1444_v30, -inf }
 0x421   : > { %1446 = vmax.xlane.f32.xlu0 %v1445_v32 }
 0x4aa   : > { %v1447_v33 = vpop.xlane.xlu0 %1446 }
 0x4ab   : > { %v1448_v34 = vsub.f32 %v1444_v30, %v1447_v33  ;;  %v734_v33 = vld [vmem:[%s8195_s1 + $0x60] sm:$0xff] }
 0x4ad   : > { %v1449_v35 = vmul.f32 1.442695, %v1448_v34 }
 0x4af   : > { %6996 = vpow2.f32 %v1449_v35 }
 0x4bc   : > { %v6997_v36 = vpop.eup %6996 }
 0x4bd   : > { %v1451_v37 = vsel %vm1249_vm4, %v6997_v36, 0.0 }
 0x4be   : > { %1452 = vadd.xlane.f32.xlu0 %v1451_v37  ;;  %v1129_v37 = vld [vmem:[%s8199_s25 + $0x10] sm:$0xff] }
 0x4d4   : > { %833 = vperm.xlu0 %6990, %v739_v38  }
 0x4d8   : > { %798 = vperm.xlu0 %6990, %v732_v39  }
 0x4f6   : > { %1678 = vxpose.xlu0.b32.start.end [1/1] (short) (narrow) %v1019_v41, 8 }
 0x547   : > { %v1453_v42 = vpop.xlane.xlu0 %1452 }
 0x548   : > { %6998 = vrcp.f32 %v1453_v42 }
 0x54f   : > { %v834_v45 = vpop.permute.xlu0 %833 }
 0x550   : > { %v1094_v47 = vadd.f32 %v6633_v10, %v834_v45 }
 0x552   : > { %6659 = vmatpush3.xpose.msk.msra.mxu1 %vm1261_vm5, %v1094_v47 }
 0x553   : > { %6663 = vmatprep.subr.mxu1 %v7073_v17  ;;  %v799_v56 = vpop.permute.xlu0 %798 }
 0x554   : > { %v1059_v58 = vadd.f32 %v7364_v3, %v799_v56 }
 0x555   : > { %v6999_v48 = vpop.eup %6998 }
 0x556   : > { %v1455_v50 = vmul.f32 %v6999_v48, %v6997_v36 }
 0x558   : > { %6661 = vmatmul.mubr.msk.f32.vlgmr.msra.gmra.mxu1 %vm1261_vm5, %v1455_v50 }
 0x559   : > { %6665 = vmatprep.mubr.msk.f32.mxu1 %vm7074_vm1, %v7073_v17  ;;  %6664 = vmatpush3.msra.mxu1 %v1128_v25 }
 0x55a   : > { %6668 = vmatprep.subr.mxu1 %v7073_v17 }
 0x572   : > { %v1694_v59 = vpop.trf.xlu0 }
 0x618   : > { %v1528_v55 = vpop.f32.mrf.mxu1 }
 0x619   : > { %6666 = vmatmul.mubr.msk.f32.vlgmr.msra.gmra.mxu1 %vm1173_vm2, %v1528_v55 }
 0x61a   : > { %v6662_v57 = vpop.f32.mrf.mxu1  ;;  %6669 = vmatpush3.msra.mxu1 %v1127_v54  ;;  %6670 = vmatprep.mubr.msk.f32.mxu1 %vm7074_vm1, %v7073_v17 }
 0x61b   : > { %6673 = vmatprep.subr.mxu1 %v7073_v17 }
 0x61d   : > { %6671 = vmatmul.mubr.msk.f32.vlgmr.msra.gmra.mxu1 %vm1173_vm2, %v1334_v20 }
 0x61e   : > { %6674 = vmatpush3.msra.mxu1 %v1059_v58  ;;  %6675 = vmatprep.mubr.msk.f32.mxu1 %vm7074_vm1, %v7073_v17  ;;  %v741_v58 = vld [vmem:[%s8195_s1 + $0x98] sm:$0xff] }
 0x61f   : > { %6678 = vmatprep.subr.mxu1 %v7073_v17 }
 0x621   : > { %6676 = vmatmul.mubr.msk.f32.vlgmr.msra.gmra.mxu1 %vm1173_vm2, %v1694_v59  ;;  %v726_v59 = vld [vmem:[%s8195_s1 + $0x20] sm:$0xff] }
 0x622   : > { %6680 = vmatprep.mubr.msk.f32.mxu1 %vm7074_vm1, %v7073_v17 }
 0x6d9   : > { %v1601_v60 = vpop.f32.mrf.mxu1 }
 0x6db   : > { %v6667_v61 = vpop.f32.mrf.mxu1 }
 0x6dd   : > { %v1674_v62 = vpop.f32.mrf.mxu1 }
 0x6de   : > { %v1675_v63 = vadd.f32 %v1674_v62, %v1601_v60 }
 0x6df   : > { %v6672_v0 = vpop.f32.mrf.mxu1 }
 0x6e1   : > { %v1779_v1 = vpop.f32.mrf.mxu1 }
 0x6e2   : > { %v1783_v3 = vmul.f32 0.35355338, %v1779_v1 }
 0x6e3   : > { %v6677_v9 = vpop.f32.mrf.mxu1 }
 0x6e4   : > { %v1784_v10 = vsel %vm7345_vm3, %v1783_v3, -1e+30  ;;  %v727_v9 = vld [vmem:[%s8195_s1 + $0x28] sm:$0xff] }
 0x6e5   : > { %v1785_v11 = vsel %vm1249_vm4, %v1784_v10, -inf }
 0x6e6   : > { %1786 = vmax.xlane.f32.xlu1 %v1785_v11 }
 0x6f7   : > { %838 = vperm.xlu1 %6991, %v740_v12  }
 0x6fb   : > { %763 = vperm.xlu1 %6991, %v725_v13  }
 0x6ff   : > { %803 = vperm.xlu1 %6991, %v733_v14  }
 0x76f   : > { %v1787_v16 = vpop.xlane.xlu1 %1786 }
 0x770   : > { %v1788_v18 = vsub.f32 %v1784_v10, %v1787_v16  ;;  %v1130_v10 = vld [vmem:[%s8199_s25 + $0x18] sm:$0xff] }
 0x772   : > { %v1789_v20 = vmul.f32 1.442695, %v1788_v18 }
 0x773   : > { %v839_v21 = vpop.permute.xlu1 %838 }
 0x774   : > { %7000 = vpow2.f32 %v1789_v20  ;;  %v1099_v22 = vadd.f32 %v1098_v19, %v839_v21 }
 0x776   : > { %6679 = vmatpush3.xpose.msk.msra.mxu1 %vm1261_vm5, %v1099_v22  ;;  %v729_v22 = vld [vmem:[%s8195_s1 + $0x38] sm:$0xff] }
 0x777   : > { %v764_v23 = vpop.permute.xlu1 %763  ;;  %6683 = vmatprep.subr.mxu1 %v7073_v17 }
 0x778   : > { %v1024_v31 = vadd.f32 %v7286_v24, %v764_v23 }
 0x77a   : > { %1946 = vxpose.xlu1.b32.start.end [1/1] (short) (narrow) %v1024_v31, 8 }
 0x77b   : > { %v804_v24 = vpop.permute.xlu1 %803 }
 0x77c   : > { %v1064_v38 = vadd.f32 %v7362_v2, %v804_v24 }
 0x781   : > { %v7001_v30 = vpop.eup %7000 }
 0x782   : > { %v1791_v32 = vsel %vm1249_vm4, %v7001_v30, 0.0 }
 0x783   : > { %1792 = vadd.xlane.f32.xlu0 %v1791_v32 }
 0x798   : > { %808 = vperm.xlu1 %6991, %v734_v33  }
 0x7f6   : > { %v1962_v41 = vpop.trf.xlu1 }
 0x80c   : > { %v1793_v34 = vpop.xlane.xlu0 %1792 }
 0x80d   : > { %7002 = vrcp.f32 %v1793_v34 }
 0x813   : > { %v809_v14 = vpop.permute.xlu1 %808 }
 0x81a   : > { %v7003_v35 = vpop.eup %7002 }
 0x81b   : > { %v1795_v36 = vmul.f32 %v7003_v35, %v7001_v30 }
 0x81d   : > { %6681 = vmatmul.mubr.msk.f32.vlgmr.msra.gmra.mxu1 %vm1261_vm5, %v1795_v36 }
 0x81e   : > { %6684 = vmatpush3.msra.mxu1 %v1129_v37  ;;  %6685 = vmatprep.mubr.msk.f32.mxu1 %vm7074_vm1, %v7073_v17 }
 0x81f   : > { %6688 = vmatprep.subr.mxu1 %v7073_v17 }
 0x8dd   : > { %v1868_v39 = vpop.f32.mrf.mxu1 }
 0x8de   : > { %6686 = vmatmul.mubr.msk.f32.vlgmr.msra.gmra.mxu1 %vm1173_vm2, %v1868_v39 }
 0x8df   : > { %6689 = vmatpush3.msra.mxu1 %v1064_v38  ;;  %v6682_v40 = vpop.f32.mrf.mxu1  ;;  %6690 = vmatprep.mubr.msk.f32.mxu1 %vm7074_vm1, %v7073_v17 }
 0x8e0   : > { %6693 = vmatprep.subr.mxu1 %v7073_v17  ;;  %v742_v40 = vld [vmem:[%s8195_s1 + $0xa0] sm:$0xff] }
 0x8e2   : > { %6691 = vmatmul.mubr.msk.f32.vlgmr.msra.gmra.mxu1 %vm1173_vm2, %v1962_v41 }
 0x8e3   : > { %6695 = vmatprep.mubr.msk.f32.mxu1 %vm7074_vm1, %v7073_v17 }
 0x99e   : > { %v1941_v42 = vpop.f32.mrf.mxu1 }
 0x99f   : > { %v7463_v45 = vadd.f32 %v1941_v42, %v1675_v63 }
 0x9a0   : > { %v6687_v2 = vpop.f32.mrf.mxu1 }
 0x9a2   : > { %v2047_v47 = vpop.f32.mrf.mxu1 }
 0x9a3   : > { %v2051_v48 = vmul.f32 0.35355338, %v2047_v47 }
 0x9a4   : > { %v6692_v50 = vpop.f32.mrf.mxu1 }
 0x9a5   : > { %v2052_v25 = vsel %vm7345_vm3, %v2051_v48, -1e+30 }
 0x9a6   : > { %v2053_v52 = vsel %vm1249_vm4, %v2052_v25, -inf }
 0x9a7   : > { %2054 = vmax.xlane.f32.xlu0 %v2053_v52 }
 0xa30   : > { %v2055_v53 = vpop.xlane.xlu0 %2054 }
 0xa31   : > { %v2056_v54 = vsub.f32 %v2052_v25, %v2055_v53 }
 0xa33   : > { %v2057_v55 = vmul.f32 1.442695, %v2056_v54 }
 0xa35   : > { %7004 = vpow2.f32 %v2057_v55 }
 0xa42   : > { %v7005_v56 = vpop.eup %7004 }
 0xa43   : > { %v2059_v57 = vsel %vm1249_vm4, %v7005_v56, 0.0 }
 0xa44   : > { %2060 = vadd.xlane.f32.xlu0 %v2059_v57 }
 0xa5a   : > { %843 = vperm.xlu0 %6990, %v741_v58  }
 0xa5e   : > { %768 = vperm.xlu0 %6990, %v726_v59  }
 0xacd   : > { %v2061_v60 = vpop.xlane.xlu0 %2060 }
 0xace   : > { %7006 = vrcp.f32 %v2061_v60 }
 0xad5   : > { %v844_v61 = vpop.permute.xlu0 %843 }
 0xad6   : > { %v1104_v62 = vadd.f32 %v6636_v15, %v844_v61  ;;  %v1069_v15 = vadd.f32 %v7368_v6, %v809_v14  ;;  %v1132_v14 = vld [vmem:[%s8199_s25 + $0x28] sm:$0xff] }
 0xad8   : > { %6694 = vmatpush3.xpose.msk.msra.mxu1 %vm1261_vm5, %v1104_v62 }
 0xad9   : > { %v769_v63 = vpop.permute.xlu0 %768  ;;  %6698 = vmatprep.subr.mxu1 %v7073_v17 }
 0xada   : > { %v1029_v0 = vadd.f32 %v7292_v27, %v769_v63  ;;  %v735_v27 = vld [vmem:[%s8195_s1 + $0x68] sm:$0xff] }
 0xadb   : > { %v7007_v1 = vpop.eup %7006 }
 0xadc   : > { %2214 = vxpose.xlu0.b32.start.end [1/1] (short) (narrow) %v1029_v0, 8  ;;  %v2063_v3 = vmul.f32 %v7007_v1, %v7005_v56  ;;  %v743_v56 = vld [vmem:[%s8195_s1 + $0xa8] sm:$0xff]  ;;  %v736_v0 = vld [vmem:[%s8195_s1 + $0x70] sm:$0xff] }
 0xade   : > { %6696 = vmatmul.mubr.msk.f32.vlgmr.msra.gmra.mxu1 %vm1261_vm5, %v2063_v3 }
 0xadf   : > { %6700 = vmatprep.mubr.msk.f32.mxu1 %vm7074_vm1, %v7073_v17  ;;  %6699 = vmatpush3.msra.mxu1 %v1130_v10 }
 0xae0   : > { %6703 = vmatprep.subr.mxu1 %v7073_v17 }
 0xb05   : > { %773 = vperm.xlu0 %6990, %v727_v9  }
 0xb09   : > { %813 = vperm.xlu0 %6990, %v735_v27  }
 0xb58   : > { %v2230_v11 = vpop.trf.xlu0 }
 0xb80   : > { %v774_v12 = vpop.permute.xlu0 %773 }
 0xb81   : > { %v1034_v13 = vadd.f32 %v7290_v26, %v774_v12  ;;  %v728_v26 = vld [vmem:[%s8195_s1 + $0x30] sm:$0xff] }
 0xb83   : > { %2482 = vxpose.xlu0.b32.start.end [1/1] (short) (narrow) %v1034_v13, 8 }
 0xb84   : > { %v814_v6 = vpop.permute.xlu0 %813 }
 0xb85   : > { %v1074_v48 = vadd.f32 %v7366_v5, %v814_v6 }
 0xb9e   : > { %v2136_v16 = vpop.f32.mrf.mxu1 }
 0xb9f   : > { %6701 = vmatmul.mubr.msk.f32.vlgmr.msra.gmra.mxu1 %vm1173_vm2, %v2136_v16 }
 0xba0   : > { %6704 = vmatpush3.msra.mxu1 %v1069_v15  ;;  %v6697_v18 = vpop.f32.mrf.mxu1  ;;  %6705 = vmatprep.mubr.msk.f32.mxu1 %vm7074_vm1, %v7073_v17 }
 0xba1   : > { %6713 = vmatprep.subr.mxu1 %v7073_v17 }
 0xba3   : > { %6706 = vmatmul.mubr.msk.f32.vlgmr.msra.gmra.mxu1 %vm1173_vm2, %v2230_v11 }
 0xba4   : > { %6715 = vmatprep.mubr.msk.f32.mxu1 %vm7074_vm1, %v7073_v17 }
 0xbac   : > { %778 = vperm.xlu0 %6990, %v728_v26  }
 0xbff   : > { %v2498_v19 = vpop.trf.xlu0 }
 0xc27   : > { %v779_v20 = vpop.permute.xlu0 %778 }
 0xc28   : > { %v1039_v21 = vadd.f32 %v7296_v29, %v779_v20  ;;  %v744_v20 = vld [vmem:[%s8195_s1 + $0xb0] sm:$0xff] }
 0xc2a   : > { %2750 = vxpose.xlu0.b32.start.end [1/1] (short) (narrow) %v1039_v21, 8 }
 0xc53   : > { %783 = vperm.xlu0 %6990, %v729_v22  }
 0xc5f   : > { %v2209_v23 = vpop.f32.mrf.mxu1 }
 0xc60   : > { %v2213_v31 = vadd.f32 %v2209_v23, %v7463_v45 }
 0xc61   : > { %v6702_v30 = vpop.f32.mrf.mxu1 }
 0xc63   : > { %v2315_v32 = vpop.f32.mrf.mxu1 }
 0xc64   : > { %v2319_v33 = vmul.f32 0.35355338, %v2315_v32 }
 0xc65   : > { %v6707_v34 = vpop.f32.mrf.mxu1 }
 0xc66   : > { %v2320_v35 = vsel %vm7345_vm3, %v2319_v33, -1e+30  ;;  %v737_v34 = vld [vmem:[%s8195_s1 + $0x78] sm:$0xff] }
 0xc67   : > { %v2321_v36 = vsel %vm1249_vm4, %v2320_v35, -inf }
 0xc68   : > { %2322 = vmax.xlane.f32.xlu1 %v2321_v36 }
 0xca6   : > { %v2766_v13 = vpop.trf.xlu0 }
 0xcf1   : > { %v2323_v29 = vpop.xlane.xlu1 %2322 }
 0xcf2   : > { %v2324_v37 = vsub.f32 %v2320_v35, %v2323_v29 }
 0xcf4   : > { %v2325_v24 = vmul.f32 1.442695, %v2324_v37  ;;  %v784_v37 = vpop.permute.xlu0 %783 }
 0xcf6   : > { %7008 = vpow2.f32 %v2325_v24  ;;  %v1044_v24 = vadd.f32 %v7294_v28, %v784_v37  ;;  %v3326_v37 = vld [vmem:[%s8202_s23 + $0x8] sm:$0xff] }
 0xd03   : > { %v7009_v38 = vpop.eup %7008 }
 0xd04   : > { %v2327_v39 = vsel %vm1249_vm4, %v7009_v38, 0.0 }
 0xd05   : > { %2328 = vadd.xlane.f32.xlu1 %v2327_v39  ;;  %v3529_v39 = vld [vmem:[%s8168_s9] sm:$0xff] }
 0xd16   : > { %848 = vperm.xlu1 %6991, %v742_v40  }
 0xd8e   : > { %v2329_v41 = vpop.xlane.xlu1 %2328 }
 0xd8f   : > { %7010 = vrcp.f32 %v2329_v41 }
 0xd92   : > { %v849_v42 = vpop.permute.xlu1 %848 }
 0xd93   : > { %v1109_v45 = vadd.f32 %v7339_v44, %v849_v42  ;;  %v1131_v44 = vld [vmem:[%s8199_s25 + $0x20] sm:$0xff] }
 0xd94   : > { %6714 = vmatpush3.msra.mxu1 %v1131_v44 }
 0xd95   : > { %6709 = vmatpush3.xpose.msk.msra.mxu0 %vm1261_vm5, %v1109_v45  ;;  %6723 = vmatprep.subr.mxu1 %v7073_v17 }
 0xd96   : > { %6718 = vmatprep.subr.mxu0 %v7073_v17 }
 0xd9c   : > { %v7011_v2 = vpop.eup %7010 }
 0xd9d   : > { %v2331_v47 = vmul.f32 %v7011_v2, %v7009_v38  ;;  %v1133_v38 = vld [vmem:[%s8199_s25 + $0x30] sm:$0xff] }
 0xd9f   : > { %6711 = vmatmul.mubr.msk.f32.vlgmr.msra.gmra.mxu0 %vm1261_vm5, %v2331_v47 }
 0xda0   : > { %6719 = vmatpush3.msra.mxu0 %v1074_v48  ;;  %6720 = vmatprep.mubr.msk.f32.mxu0 %vm7074_vm1, %v7073_v17 }
 0xda1   : > { %6728 = vmatprep.subr.mxu0 %v7073_v17 }
 0xda3   : > { %6721 = vmatmul.mubr.msk.f32.vlgmr.msra.gmra.mxu0 %vm1173_vm2, %v2498_v19 }
 0xda4   : > { %6730 = vmatprep.mubr.msk.f32.mxu0 %vm7074_vm1, %v7073_v17  ;;  %6729 = vmatpush3.msra.mxu0 %v1132_v14 }
 0xda5   : > { %6738 = vmatprep.subr.mxu0 %v7073_v17 }
 0xe5f   : > { %v2404_v5 = vpop.f32.mrf.mxu0 }
 0xe60   : > { %6716 = vmatmul.mubr.msk.f32.vlgmr.msra.gmra.mxu1 %vm1173_vm2, %v2404_v5 }
 0xe61   : > { %v6712_v50 = vpop.f32.mrf.mxu0  ;;  %6725 = vmatprep.mubr.msk.f32.mxu1 %vm7074_vm1, %v7073_v17 }
 0xe63   : > { %v2583_v25 = vpop.f32.mrf.mxu0 }
 0xe64   : > { %v2587_v52 = vmul.f32 0.35355338, %v2583_v25 }
 0xe65   : > { %v6722_v53 = vpop.f32.mrf.mxu0 }
 0xe66   : > { %v2588_v54 = vsel %vm7345_vm3, %v2587_v52, -1e+30 }
 0xe67   : > { %v2589_v55 = vsel %vm1249_vm4, %v2588_v54, -inf }
 0xe68   : > { %2590 = vmax.xlane.f32.xlu1 %v2589_v55 }
 0xe79   : > { %853 = vperm.xlu1 %6991, %v743_v56  }
 0xef1   : > { %v2591_v57 = vpop.xlane.xlu1 %2590 }
 0xef2   : > { %v2592_v58 = vsub.f32 %v2588_v54, %v2591_v57 }
 0xef4   : > { %v2593_v59 = vmul.f32 1.442695, %v2592_v58 }
 0xef5   : > { %v854_v60 = vpop.permute.xlu1 %853 }
 0xef6   : > { %7012 = vpow2.f32 %v2593_v59  ;;  %v1114_v61 = vadd.f32 %v7337_v43, %v854_v60 }
 0xef8   : > { %6724 = vmatpush3.xpose.msk.msra.mxu1 %vm1261_vm5, %v1114_v61 }
 0xef9   : > { %6733 = vmatprep.subr.mxu1 %v7073_v17 }
 0xf03   : > { %v7013_v62 = vpop.eup %7012 }
 0xf04   : > { %v2595_v63 = vsel %vm1249_vm4, %v7013_v62, 0.0 }
 0xf05   : > { %2596 = vadd.xlane.f32.xlu1 %v2595_v63 }
 0xf16   : > { %818 = vperm.xlu1 %6991, %v736_v0   ;;  %v1134_v0 = vld [vmem:[%s8199_s25 + $0x38] sm:$0xff] }
 0xf20   : > { %v2477_v1 = vpop.f32.mrf.mxu1 }
 0xf21   : > { %v2481_v3 = vadd.f32 %v2477_v1, %v2213_v31  ;;  %v697_v1 = vld [vmem:[%s691_s27] sm:$0xff] }
 0xf22   : > { %v6717_v9 = vpop.f32.mrf.mxu1 }
 0xf8e   : > { %v2597_v10 = vpop.xlane.xlu1 %2596 }
 0xf8f   : > { %7014 = vrcp.f32 %v2597_v10 }
 0xf92   : > { %v819_v27 = vpop.permute.xlu1 %818 }
 0xf93   : > { %v1079_v12 = vadd.f32 %v7372_v8, %v819_v27  ;;  %v3514_v27 = vld [vmem:[%s8167_s8 + $0x8] sm:$0xff] }
 0xf9c   : > { %v7015_v43 = vpop.eup %7014 }
 0xf9d   : > { %v2599_v11 = vmul.f32 %v7015_v43, %v7013_v62  ;;  %v6361_v43 = vld [vmem:[%s8201_s26] ss:$0 sm:$0xff] }
 0xf9f   : > { %6726 = vmatmul.mubr.msk.f32.vlgmr.msra.gmra.mxu1 %vm1261_vm5, %v2599_v11 }
 0xfa0   : > { %6734 = vmatpush3.msra.mxu1 %v1079_v12  ;;  %6735 = vmatprep.mubr.msk.f32.mxu1 %vm7074_vm1, %v7073_v17 }
 0xfa1   : > { %6743 = vmatprep.subr.mxu1 %v7073_v17 }
 0xfa3   : > { %6736 = vmatmul.mubr.msk.f32.vlgmr.msra.gmra.mxu1 %vm1173_vm2, %v2766_v13 }
 0xfa4   : > { %6745 = vmatprep.mubr.msk.f32.mxu1 %vm7074_vm1, %v7073_v17  ;;  %6744 = vmatpush3.msra.mxu1 %v1133_v38  ;;  %v3327_v38 = vld [vmem:[%s8202_s23 + $0x10] sm:$0xff] }
 0xfa5   : > { %6753 = vmatprep.subr.mxu1 %v7073_v17 }
0x105f   : > { %v2672_v8 = vpop.f32.mrf.mxu1 }
0x1060   : > { %6731 = vmatmul.mubr.msk.f32.vlgmr.msra.gmra.mxu0 %vm1173_vm2, %v2672_v8 }
0x1061   : > { %v6727_v15 = vpop.f32.mrf.mxu1  ;;  %6740 = vmatprep.mubr.msk.f32.mxu0 %vm7074_vm1, %v7073_v17 }
0x1063   : > { %v2851_v16 = vpop.f32.mrf.mxu1 }
0x1064   : > { %v2855_v18 = vmul.f32 0.35355338, %v2851_v16 }
0x1065   : > { %v6737_v26 = vpop.f32.mrf.mxu1 }
0x1066   : > { %v2856_v6 = vsel %vm7345_vm3, %v2855_v18, -1e+30 }
0x1067   : > { %v2857_v19 = vsel %vm1249_vm4, %v2856_v6, -inf }
0x1068   : > { %2858 = vmax.xlane.f32.xlu1 %v2857_v19 }
0x1079   : > { %858 = vperm.xlu1 %6991, %v744_v20   ;;  %v3333_v20 = vld [vmem:[%s8166_s7] sm:$0xff] }
0x10f1   : > { %v2859_v21 = vpop.xlane.xlu1 %2858 }
0x10f2   : > { %v2860_v22 = vsub.f32 %v2856_v6, %v2859_v21  ;;  %v3325_v21 = vld [vmem:[%s8202_s23] sm:$0xff] }
0x10f4   : > { %v2861_v23 = vmul.f32 1.442695, %v2860_v22 }
0x10f5   : > { %v859_v31 = vpop.permute.xlu1 %858 }
0x10f6   : > { %7016 = vpow2.f32 %v2861_v23  ;;  %v1119_v30 = vadd.f32 %v7343_v49, %v859_v31  ;;  %v745_v49 = vld [vmem:[%s8195_s1 + $0xb8] sm:$0xff] }
0x10f8   : > { %6739 = vmatpush3.xpose.msk.msra.mxu0 %vm1261_vm5, %v1119_v30  ;;  %v6362_v30 = vld [vmem:[%s8175_s16] ss:$0 sm:$0xff] }
0x10f9   : > { %6748 = vmatprep.subr.mxu0 %v7073_v17 }
0x1103   : > { %v7017_v32 = vpop.eup %7016 }
0x1104   : > { %v2863_v33 = vsel %vm1249_vm4, %v7017_v32, 0.0 }
0x1105   : > { %2864 = vadd.xlane.f32.xlu1 %v2863_v33  ;;  %v6363_v33 = vld [vmem:[%s8176_s17] ss:$0 sm:$0xff] }
0x1116   : > { %823 = vperm.xlu1 %6991, %v737_v34  }
0x1120   : > { %v2745_v35 = vpop.f32.mrf.mxu0 }
0x1121   : > { %v2749_v36 = vadd.f32 %v2745_v35, %v2481_v3  ;;  %v3513_v3 = vld [vmem:[%s8167_s8] sm:$0xff] }
0x1122   : > { %v6732_v29 = vpop.f32.mrf.mxu0 }
0x113f   : > { %3018 = vxpose.xlu1.b32.start.end [1/1] (short) (narrow) %v1044_v24, 8 }
0x115d   : > { %863 = vperm.xlu1 %6991, %v745_v49  }
0x1161   : > { %3547 = vperm.xlu1 %6991, %v3529_v39   ;;  %v3328_v39 = vld [vmem:[%s8202_s23 + $0x18] sm:$0xff] }
0x118e   : > { %v2865_v40 = vpop.xlane.xlu1 %2864 }
0x118f   : > { %7018 = vrcp.f32 %v2865_v40  ;;  %v3329_v40 = vld [vmem:[%s8202_s23 + $0x20] sm:$0xff] }
0x1192   : > { %v824_v28 = vpop.permute.xlu1 %823 }
0x1193   : > { %v1084_v45 = vadd.f32 %v7370_v7, %v824_v28  ;;  %v3330_v28 = vld [vmem:[%s8202_s23 + $0x28] sm:$0xff] }
0x119c   : > { %v7019_v41 = vpop.eup %7018 }
0x119d   : > { %v2867_v42 = vmul.f32 %v7019_v41, %v7017_v32  ;;  %v3331_v41 = vld [vmem:[%s8202_s23 + $0x30] sm:$0xff] }
0x119f   : > { %6741 = vmatmul.mubr.msk.f32.vlgmr.msra.gmra.mxu0 %vm1261_vm5, %v2867_v42  ;;  %v3332_v42 = vld [vmem:[%s8202_s23 + $0x38] sm:$0xff] }
0x11a0   : > { %6749 = vmatpush3.msra.mxu0 %v1084_v45  ;;  %6750 = vmatprep.mubr.msk.f32.mxu0 %vm7074_vm1, %v7073_v17 }
0x11a1   : > { %6758 = vmatprep.subr.mxu0 %v7073_v17 }
0x11bb   : > { %v3034_v2 = vpop.trf.xlu1 }
0x11bc   : > { %6751 = vmatmul.mubr.msk.f32.vlgmr.msra.gmra.mxu0 %vm1173_vm2, %v3034_v2 }
0x11bd   : > { %6760 = vmatprep.mubr.msk.f32.mxu0 %vm7074_vm1, %v7073_v17  ;;  %6759 = vmatpush3.msra.mxu0 %v1134_v0 }
0x11be   : > { %6777 = vmatprep.subr.msk.mxu0 %vm866_vm0, %v697_v1 }
0x11d8   : > { %v864_v47 = vpop.permute.xlu1 %863 }
0x11d9   : > { %v1124_v48 = vadd.f32 %v7341_v46, %v864_v47 }
0x11dc   : > { %v3548_v24 = vpop.permute.xlu1 %3547 }
0x125f   : > { %v2940_v44 = vpop.f32.mrf.mxu0 }
0x1260   : > { %6746 = vmatmul.mubr.msk.f32.vlgmr.msra.gmra.mxu1 %vm1173_vm2, %v2940_v44  ;;  %v3515_v44 = vld [vmem:[%s8167_s8 + $0x10] sm:$0xff] }
0x1261   : > { %6754 = vmatpush3.xpose.msk.msra.mxu1 %vm1261_vm5, %v1124_v48  ;;  %v6742_v7 = vpop.f32.mrf.mxu0  ;;  %6755 = vmatprep.mubr.msk.f32.mxu1 %vm7074_vm1, %v7073_v17 }
0x1262   : > { %v3516_v7 = vld [vmem:[%s8167_s8 + $0x18] sm:$0xff] }
0x127c   : > { %v3119_v5 = vpop.f32.mrf.mxu0 }
0x127d   : > { %v3123_v50 = vmul.f32 0.35355338, %v3119_v5  ;;  %v3517_v5 = vld [vmem:[%s8167_s8 + $0x20] sm:$0xff] }
0x127e   : > { %v6752_v25 = vpop.f32.mrf.mxu0 }
0x127f   : > { %v3124_v52 = vsel %vm7345_vm3, %v3123_v50, -1e+30  ;;  %v3334_v50 = vld [vmem:[%s8166_s7 + $0x8] sm:$0xff] }
0x1280   : > { %v3125_v53 = vsel %vm1249_vm4, %v3124_v52, -inf  ;;  %v3518_v25 = vld [vmem:[%s8167_s8 + $0x28] sm:$0xff] }
0x1281   : > { %3126 = vmax.xlane.f32.xlu0 %v3125_v53  ;;  %v3520_v53 = vld [vmem:[%s8167_s8 + $0x38] sm:$0xff] }
0x130a   : > { %v3127_v46 = vpop.xlane.xlu0 %3126 }
0x130b   : > { %v3128_v54 = vsub.f32 %v3124_v52, %v3127_v46  ;;  %v3519_v52 = vld [vmem:[%s8167_s8 + $0x30] sm:$0xff]  ;;  %v3521_v46 = vld [vmem:[%s8167_s8 + $0x40] sm:$0xff] }
0x130d   : > { %v3129_v55 = vmul.f32 1.442695, %v3128_v54  ;;  %v3522_v54 = vld [vmem:[%s8167_s8 + $0x48] sm:$0xff] }
0x130f   : > { %7020 = vpow2.f32 %v3129_v55 }
0x131c   : > { %v7021_v56 = vpop.eup %7020 }
0x131d   : > { %v3131_v57 = vsel %vm1249_vm4, %v7021_v56, 0.0 }
0x131e   : > { %3132 = vadd.xlane.f32.xlu0 %v3131_v57 }
0x1320   : > { %v3013_v58 = vpop.f32.mrf.mxu1 }
0x1321   : > { %v3017_v59 = vadd.f32 %v3013_v58, %v2749_v36 }
0x1322   : > { %v6747_v60 = vpop.f32.mrf.mxu1 }
0x13a7   : > { %v3133_v61 = vpop.xlane.xlu0 %3132 }
0x13a8   : > { %7022 = vrcp.f32 %v3133_v61 }
0x13b5   : > { %v7023_v62 = vpop.eup %7022 }
0x13b6   : > { %v3135_v63 = vmul.f32 %v7023_v62, %v7021_v56 }
0x13b8   : > { %6756 = vmatmul.mubr.msk.f32.vlgmr.msra.gmra.mxu1 %vm1261_vm5, %v3135_v63 }
0x13b9   : > { %6765 = vmatprep.mubr.msk.f32.mxu1 %vm866_vm0, %v3325_v21  ;;  %v3530_v21 = vld [vmem:[%s8168_s9 + $0x8] sm:$0xff] }
0x1478   : > { %v3208_v9 = vpop.f32.mrf.mxu1 }
0x1479   : > { %6761 = vmatmul.mubr.msk.f32.vlgmr.msra.gmra.mxu0 %vm1173_vm2, %v3208_v9  ;;  %v3537_v9 = vld [vmem:[%s8168_s9 + $0x40] sm:$0xff] }
0x147a   : > { %v6757_v10 = vpop.f32.mrf.mxu1  ;;  %6778 = vmatpush3.xpose.msk.msra.mxu0 %vm866_vm0, %v697_v1  ;;  %6779 = vmatprep.mubr.msk.f32.mxu0 %vm866_vm0, %v3513_v3 }
0x147b   : > { %6828 = vmatprep.subr.mxu0 %v7073_v17 }
0x147d   : > { %6780 = vmatmul.mubr.msk.f32.vlgmr.msra.gmra.mxu0 %vm866_vm0, %v3514_v27 }
0x147e   : > { %6782 = vmatprep.mubr.msk.f32.mxu0 %vm866_vm0, %v3515_v44 }
0x1481   : > { %6783 = vmatmul.mubr.msk.f32.gmra.mxu0 %vm866_vm0, %v3516_v7 }
0x1482   : > { %6785 = vmatprep.mubr.msk.f32.mxu0 %vm866_vm0, %v3517_v5 }
0x1485   : > { %6786 = vmatmul.mubr.msk.f32.gmra.mxu0 %vm866_vm0, %v3518_v25 }
0x1486   : > { %6788 = vmatprep.mubr.msk.f32.mxu0 %vm866_vm0, %v3519_v52 }
0x1489   : > { %6789 = vmatmul.mubr.msk.f32.gmra.mxu0 %vm866_vm0, %v3520_v53 }
0x148a   : > { %6791 = vmatprep.mubr.msk.f32.mxu0 %vm866_vm0, %v3521_v46 }
0x148d   : > { %6792 = vmatmul.mubr.msk.f32.gmra.mxu0 %vm866_vm0, %v3522_v54 }
0x1539   : > { %v3281_v11 = vpop.f32.mrf.mxu0 }
0x153a   : > { %v3285_v12 = vadd.f32 %v3281_v11, %v3017_v59 }
0x153b   : > { %v6762_v13 = vpop.f32.mrf.mxu0 }
0x153c   : > { %v3292_v14 = vadd.f32 %v6361_v43, %v3285_v12 }
0x153d   : > { %v7641_v34 = vpop.f32.mrf.mxu0 }
0x153e   : > { %v3293_v8 = vadd.f32 %v3292_v14, %v7217_v4 }
0x153f   : > { %v3742_v29 = vpop.f32.mrf.mxu0 }
0x1540   : > { %v3297_v15 = vsel %vm3296_vm6, %v3293_v8, 0.0  ;;  %v3743_v49 = vadd.f32 %v3742_v29, %v3548_v24  ;;  %v3528_v29 = vld [vmem:[%s8167_s8 + $0x78] sm:$0xff] }
0x1541   : > { %3298 = vadd.xlane.f32.xlu0 %v3297_v15  ;;  %v7739_v10 = vpop.f32.mrf.mxu0 }
0x1543   : > { %v7741_v27 = vpop.f32.mrf.mxu0 }
0x1545   : > { %v7743_v43 = vpop.f32.mrf.mxu0 }
0x1547   : > { %v7745_v11 = vpop.f32.mrf.mxu0 }
0x1549   : > { %v7747_v12 = vpop.f32.mrf.mxu0 }
0x154b   : > { %v7749_v13 = vpop.f32.mrf.mxu0 }
0x154d   : > { %v6793_v14 = vpop.f32.mrf.mxu0 }
0x15ca   : > { %v3299_v16 = vpop.xlane.xlu0 %3298 }
0x15cb   : > { %v3301_v18 = vmul.f32 0.015625, %v3299_v16  ;;  %v3782_v16 = vpop.f32.mrf.mxu0 }
0x15cd   : > { %v3302_v26 = vsub.f32 %v3293_v8, %v3301_v18 }
0x15cf   : > { %v3303_v6 = vmul.f32 %v3302_v26, %v3302_v26 }
0x15d1   : > { %v3304_v19 = vsel %vm3296_vm6, %v3303_v6, 0.0 }
0x15d2   : > { %3305 = vadd.xlane.f32.xlu0 %v3304_v19 }
0x15e8   : > { %3343 = vperm.xlu0 %6990, %v3333_v20  }
0x165b   : > { %v3306_v4 = vpop.xlane.xlu0 %3305 }
0x165c   : > { %v3307_v22 = vmul.f32 0.015625, %v3306_v4 }
0x165e   : > { %v3308_v23 = vadd.f32 1e-05, %v3307_v22 }
0x1660   : > { %7024 = vrsqrt.f32 %v3308_v23  ;;  %v3538_v23 = vld [vmem:[%s8168_s9 + $0x48] sm:$0xff] }
0x1663   : > { %v3344_v2 = vpop.permute.xlu0 %3343 }
0x166d   : > { %v7025_v31 = vpop.eup %7024 }
0x166e   : > { %v3310_v32 = vmul.f32 %v7025_v31, %v3302_v26  ;;  %v3523_v31 = vld [vmem:[%s8167_s8 + $0x50] sm:$0xff] }
0x166f   : > { %6794 = vmatprep.mubr.msk.f32.mxu0 %vm866_vm0, %v3523_v31 }
0x1670   : > { %v3317_v35 = vmul.f32 %v6362_v30, %v3310_v32  ;;  %v3524_v30 = vld [vmem:[%s8167_s8 + $0x58] sm:$0xff]  ;;  %v3525_v32 = vld [vmem:[%s8167_s8 + $0x60] sm:$0xff] }
0x1671   : > { %6795 = vmatmul.mubr.msk.f32.gmra.mxu0 %vm866_vm0, %v3524_v30 }
0x1672   : > { %v7643_v36 = vadd.f32 %v6363_v33, %v3317_v35  ;;  %6797 = vmatprep.mubr.msk.f32.mxu0 %vm866_vm0, %v3525_v32  ;;  %v3526_v33 = vld [vmem:[%s8167_s8 + $0x68] sm:$0xff]  ;;  %v3527_v35 = vld [vmem:[%s8167_s8 + $0x70] sm:$0xff] }
0x1674   : > { %6763 = vmatprep.subr.msk.mxu1 %vm866_vm0, %v7643_v36 }
0x1675   : > { %6764 = vmatpush3.xpose.msk.msra.mxu1 %vm866_vm0, %v7643_v36  ;;  %6798 = vmatmul.mubr.msk.f32.gmra.mxu0 %vm866_vm0, %v3526_v33 }
0x1676   : > { %6803 = vmatprep.subr.mxu1 %v7073_v17  ;;  %6800 = vmatprep.mubr.msk.f32.mxu0 %vm866_vm0, %v3527_v35 }
0x1678   : > { %6766 = vmatmul.mubr.msk.f32.vlgmr.msra.gmra.mxu1 %vm866_vm0, %v3326_v37 }
0x1679   : > { %6804 = vmatpush3.msra.mxu1 %v3743_v49  ;;  %6768 = vmatprep.mubr.msk.f32.mxu1 %vm866_vm0, %v3327_v38 }
0x167a   : > { %6808 = vmatprep.subr.mxu1 %v7073_v17  ;;  %6801 = vmatmul.mubr.msk.f32.gmra.mxu0 %vm866_vm0, %v3528_v29  ;;  %v3539_v29 = vld [vmem:[%s8168_s9 + $0x50] sm:$0xff] }
0x167b   : > { %6830 = vmatprep.mubr.msk.f32.mxu0 %vm7074_vm1, %v7073_v17 }
0x167c   : > { %6769 = vmatmul.mubr.msk.f32.gmra.mxu1 %vm866_vm0, %v3328_v39 }
0x167d   : > { %6771 = vmatprep.mubr.msk.f32.mxu1 %vm866_vm0, %v3329_v40 }
0x1680   : > { %6772 = vmatmul.mubr.msk.f32.gmra.mxu1 %vm866_vm0, %v3330_v28 }
0x1681   : > { %6774 = vmatprep.mubr.msk.f32.mxu1 %vm866_vm0, %v3331_v41 }
0x1684   : > { %6775 = vmatmul.mubr.msk.f32.gmra.mxu1 %vm866_vm0, %v3332_v42 }
0x1685   : > { %6805 = vmatprep.mubr.msk.f32.mxu1 %vm7074_vm1, %v7073_v17 }
0x1731   : > { %v7807_v5 = vpop.f32.mrf.mxu0 }
0x1733   : > { %v3792_v52 = vpop.f32.mrf.mxu0 }
0x1735   : > { %v7809_v46 = vpop.f32.mrf.mxu0 }
0x1737   : > { %v7811_v54 = vpop.f32.mrf.mxu0 }
0x1738   : > { %v7681_v45 = vpop.f32.mrf.mxu1 }
0x173a   : > { %v3474_v47 = vpop.f32.mrf.mxu1 }
0x173b   : > { %v3475_v48 = vadd.f32 %v3474_v47, %v3344_v2 }
0x173c   : > { %v7721_v56 = vpop.f32.mrf.mxu1 }
0x173d   : > { %3830 = vxpose.xlu0.b32.start.end [1/1] (short) (narrow) %v3475_v48, 8 }
0x173e   : > { %v7723_v57 = vpop.f32.mrf.mxu1 }
0x1740   : > { %v7725_v58 = vpop.f32.mrf.mxu1 }
0x1742   : > { %v7727_v59 = vpop.f32.mrf.mxu1 }
0x1744   : > { %v7729_v60 = vpop.f32.mrf.mxu1 }
0x1746   : > { %v7731_v61 = vpop.f32.mrf.mxu1 }
0x1766   : > { %3348 = vperm.xlu0 %6990, %v3334_v50  }
0x17b9   : > { %v3846_v55 = vpop.trf.xlu0 }
0x17ba   : > { %6806 = vmatmul.mubr.msk.f32.vlgmr.msra.gmra.mxu1 %vm1173_vm2, %v3846_v55  ;;  %v7813_v55 = vpop.f32.mrf.mxu0 }
0x17bb   : > { %6810 = vmatprep.mubr.msk.f32.mxu1 %vm7074_vm1, %v7073_v17 }
0x17e1   : > { %v3349_v4 = vpop.permute.xlu0 %3348 }
0x17e2   : > { %v3480_v22 = vadd.f32 %v7681_v45, %v3349_v4 }
0x187a   : > { %v3931_v62 = vpop.f32.mrf.mxu1 }
0x187b   : > { %v3935_v63 = vmul.f32 0.35355338, %v3931_v62 }
0x187c   : > { %v6807_v0 = vpop.f32.mrf.mxu1 }
0x187d   : > { %v3936_v1 = vsel %vm7345_vm3, %v3935_v63, -1e+30  ;;  %v7815_v63 = vpop.f32.mrf.mxu0 }
0x187e   : > { %v3938_v3 = vsel %vm3937_vm7, %v3936_v1, -inf }
0x187f   : > { %3939 = vmax.xlane.f32.xlu1 %v3938_v3 }
0x1890   : > { %3587 = vperm.xlu1 %6991, %v3537_v9   ;;  %v3335_v9 = vld [vmem:[%s8166_s7 + $0x10] sm:$0xff] }
0x1908   : > { %v3940_v8 = vpop.xlane.xlu1 %3939 }
0x1909   : > { %v3941_v15 = vsub.f32 %v3936_v1, %v3940_v8 }
0x190b   : > { %v3942_v18 = vmul.f32 1.442695, %v3941_v15 }
0x190c   : > { %v3588_v26 = vpop.permute.xlu1 %3587 }
0x190d   : > { %7026 = vpow2.f32 %v3942_v18  ;;  %v3783_v6 = vadd.f32 %v3782_v16, %v3588_v26 }
0x190f   : > { %6809 = vmatpush3.xpose.msk.msra.mxu1 %vm1173_vm2, %v3783_v6  ;;  %v3822_v6 = vld [vmem:[%s8169_s10 + $0x8] sm:$0xff] }
0x1910   : > { %6813 = vmatprep.subr.mxu1 %v7073_v17 }
0x191a   : > { %v7027_v19 = vpop.eup %7026 }
0x191b   : > { %v3944_v20 = vsel %vm3937_vm7, %v7027_v19, 0.0 }
0x191c   : > { %3945 = vadd.xlane.f32.xlu1 %v3944_v20 }
0x192d   : > { %3552 = vperm.xlu1 %6991, %v3530_v21  }
0x1956   : > { %4025 = vxpose.xlu1.b32.start.end [1/1] (short) (narrow) %v3480_v22, 8 }
0x1974   : > { %3592 = vperm.xlu1 %6991, %v3538_v23  }
0x19a5   : > { %v3946_v37 = vpop.xlane.xlu1 %3945 }
0x19a6   : > { %7028 = vrcp.f32 %v3946_v37 }
0x19a9   : > { %v3553_v24 = vpop.permute.xlu1 %3552 }
0x19aa   : > { %v3748_v39 = vadd.f32 %v7641_v34, %v3553_v24  ;;  %v3821_v34 = vld [vmem:[%s8169_s10] sm:$0xff] }
0x19ab   : > { %6829 = vmatpush3.msra.mxu0 %v3821_v34 }
0x19ac   : > { %6838 = vmatprep.subr.mxu0 %v7073_v17 }
0x19b3   : > { %v7029_v49 = vpop.eup %7028 }
0x19b4   : > { %v3948_v38 = vmul.f32 %v7029_v49, %v7027_v19  ;;  %v3336_v19 = vld [vmem:[%s8166_s7 + $0x18] sm:$0xff] }
0x19b6   : > { %6811 = vmatmul.mubr.msk.f32.vlgmr.msra.gmra.mxu1 %vm1173_vm2, %v3948_v38 }
0x19b7   : > { %6814 = vmatpush3.msra.mxu1 %v3748_v39  ;;  %6815 = vmatprep.mubr.msk.f32.mxu1 %vm7074_vm1, %v7073_v17 }
0x19b8   : > { %6818 = vmatprep.subr.mxu1 %v7073_v17 }
0x19d2   : > { %v4041_v40 = vpop.trf.xlu1 }
0x19d3   : > { %6816 = vmatmul.mubr.msk.f32.vlgmr.msra.gmra.mxu1 %vm1173_vm2, %v4041_v40 }
0x19d4   : > { %6820 = vmatprep.mubr.msk.f32.mxu1 %vm7074_vm1, %v7073_v17 }
0x19ef   : > { %v3593_v28 = vpop.permute.xlu1 %3592 }
0x19f0   : > { %v3788_v41 = vadd.f32 %v6793_v14, %v3593_v28  ;;  %v3531_v14 = vld [vmem:[%s8168_s9 + $0x10] sm:$0xff] }
0x19f2   : > { %6819 = vmatpush3.xpose.msk.msra.mxu1 %vm1173_vm2, %v3788_v41  ;;  %v3532_v41 = vld [vmem:[%s8168_s9 + $0x18] sm:$0xff] }
0x19f3   : > { %6823 = vmatprep.subr.mxu1 %v7073_v17 }
0x1a76   : > { %v4021_v42 = vpop.f32.mrf.mxu1 }
0x1a77   : > { %6831 = vmatmul.mubr.msk.f32.vlgmr.msra.gmra.mxu0 %vm1173_vm2, %v4021_v42 }
0x1a78   : > { %v6812_v45 = vpop.f32.mrf.mxu1  ;;  %6840 = vmatprep.mubr.msk.f32.mxu0 %vm7074_vm1, %v7073_v17 }
0x1a93   : > { %v4126_v2 = vpop.f32.mrf.mxu1 }
0x1a94   : > { %v4130_v47 = vmul.f32 0.35355338, %v4126_v2 }
0x1a95   : > { %v6817_v48 = vpop.f32.mrf.mxu1 }
0x1a96   : > { %v4131_v44 = vsel %vm7345_vm3, %v4130_v47, -1e+30 }
0x1a97   : > { %v4132_v7 = vsel %vm3937_vm7, %v4131_v44, -inf }
0x1a98   : > { %4133 = vmax.xlane.f32.xlu0 %v4132_v7 }
0x1b21   : > { %v4134_v50 = vpop.xlane.xlu0 %4133 }
0x1b22   : > { %v4135_v25 = vsub.f32 %v4131_v44, %v4134_v50 }
0x1b24   : > { %v4136_v53 = vmul.f32 1.442695, %v4135_v25 }
0x1b26   : > { %7030 = vpow2.f32 %v4136_v53 }
0x1b33   : > { %v7031_v62 = vpop.eup %7030 }
0x1b34   : > { %v4138_v0 = vsel %vm3937_vm7, %v7031_v62, 0.0 }
0x1b35   : > { %4139 = vadd.xlane.f32.xlu0 %v4138_v0 }
0x1b37   : > { %v7818_v1 = vpop.f32.mrf.mxu0 }
0x1b39   : > { %v6832_v3 = vpop.f32.mrf.mxu0 }
0x1b3a   : > { %v3337_v3 = vld [vmem:[%s8166_s7 + $0x20] sm:$0xff] }
0x1b4b   : > { %3353 = vperm.xlu0 %6990, %v3335_v9   ;;  %v3540_v9 = vld [vmem:[%s8168_s9 + $0x58] sm:$0xff] }
0x1b4f   : > { %3557 = vperm.xlu0 %6990, %v3531_v14   ;;  %v3533_v14 = vld [vmem:[%s8168_s9 + $0x20] sm:$0xff] }
0x1bbe   : > { %v4140_v8 = vpop.xlane.xlu0 %4139 }
0x1bbf   : > { %7032 = vrcp.f32 %v4140_v8 }
0x1bc6   : > { %v3354_v15 = vpop.permute.xlu0 %3353 }
0x1bc7   : > { %v3485_v16 = vadd.f32 %v7723_v57, %v3354_v15 }
0x1bc9   : > { %4365 = vxpose.xlu0.b32.start.end [1/1] (short) (narrow) %v3485_v16, 8 }
0x1bca   : > { %v3558_v57 = vpop.permute.xlu0 %3557 }
0x1bcb   : > { %v3753_v20 = vadd.f32 %v7741_v27, %v3558_v57 }
0x1bcc   : > { %v7033_v18 = vpop.eup %7032 }
0x1bcd   : > { %v4142_v26 = vmul.f32 %v7033_v18, %v7031_v62 }
0x1bcf   : > { %6821 = vmatmul.mubr.msk.f32.vlgmr.msra.gmra.mxu1 %vm1173_vm2, %v4142_v26 }
0x1bd0   : > { %6825 = vmatprep.mubr.msk.f32.mxu1 %vm7074_vm1, %v7073_v17  ;;  %6824 = vmatpush3.msra.mxu1 %v3822_v6 }
0x1bd1   : > { %6833 = vmatprep.subr.mxu1 %v7073_v17 }
0x1bf2   : > { %3358 = vperm.xlu0 %6990, %v3336_v19  }
0x1c45   : > { %v4381_v22 = vpop.trf.xlu0 }
0x1c6d   : > { %v3359_v34 = vpop.permute.xlu0 %3358 }
0x1c6e   : > { %v3490_v42 = vadd.f32 %v7721_v56, %v3359_v34  ;;  %v3823_v56 = vld [vmem:[%s8169_s10 + $0x10] sm:$0xff] }
0x1c8f   : > { %v4215_v21 = vpop.f32.mrf.mxu1 }
0x1c90   : > { %6826 = vmatmul.mubr.msk.f32.vlgmr.msra.gmra.mxu1 %vm1173_vm2, %v4215_v21 }
0x1c91   : > { %6834 = vmatpush3.msra.mxu1 %v3753_v20  ;;  %v6822_v4 = vpop.f32.mrf.mxu1  ;;  %6835 = vmatprep.mubr.msk.f32.mxu1 %vm7074_vm1, %v7073_v17 }
0x1c92   : > { %6843 = vmatprep.subr.mxu1 %v7073_v17 }
0x1c94   : > { %6836 = vmatmul.mubr.msk.f32.vlgmr.msra.gmra.mxu1 %vm1173_vm2, %v4381_v22 }
0x1c95   : > { %6845 = vmatprep.mubr.msk.f32.mxu1 %vm7074_vm1, %v7073_v17  ;;  %6844 = vmatpush3.msra.mxu1 %v3823_v56 }
0x1c96   : > { %6853 = vmatprep.subr.mxu1 %v7073_v17 }
0x1d50   : > { %v7845_v23 = vpop.f32.mrf.mxu1 }
0x1d51   : > { %v4362_v21 = vadd.f32 %v7818_v1, %v7845_v23  ;;  %v3824_v1 = vld [vmem:[%s8169_s10 + $0x18] sm:$0xff] }
0x1d52   : > { %v6827_v31 = vpop.f32.mrf.mxu1 }
0x1d54   : > { %v4466_v27 = vpop.f32.mrf.mxu1 }
0x1d55   : > { %v4470_v30 = vmul.f32 0.35355338, %v4466_v27 }
0x1d56   : > { %v6837_v32 = vpop.f32.mrf.mxu1 }
0x1d57   : > { %v4471_v33 = vsel %vm7345_vm3, %v4470_v30, -1e+30 }
0x1d58   : > { %v4472_v35 = vsel %vm3937_vm7, %v4471_v33, -inf }
0x1d59   : > { %4473 = vmax.xlane.f32.xlu1 %v4472_v35 }
0x1d6a   : > { %3597 = vperm.xlu1 %6991, %v3539_v29  }
0x1de2   : > { %v4474_v37 = vpop.xlane.xlu1 %4473 }
0x1de3   : > { %v4475_v24 = vsub.f32 %v4471_v33, %v4474_v37 }
0x1de5   : > { %v4476_v49 = vmul.f32 1.442695, %v4475_v24 }
0x1de6   : > { %v3598_v38 = vpop.permute.xlu1 %3597 }
0x1de7   : > { %7034 = vpow2.f32 %v4476_v49  ;;  %v3793_v39 = vadd.f32 %v3792_v52, %v3598_v38  ;;  %v3338_v38 = vld [vmem:[%s8166_s7 + $0x28] sm:$0xff] }
0x1de9   : > { %6839 = vmatpush3.xpose.msk.msra.mxu0 %vm1173_vm2, %v3793_v39  ;;  %v3541_v39 = vld [vmem:[%s8168_s9 + $0x60] sm:$0xff] }
0x1dea   : > { %6848 = vmatprep.subr.mxu0 %v7073_v17 }
0x1df4   : > { %v7035_v40 = vpop.eup %7034 }
0x1df5   : > { %v4478_v28 = vsel %vm3937_vm7, %v7035_v40, 0.0 }
0x1df6   : > { %4479 = vadd.xlane.f32.xlu1 %v4478_v28 }
0x1e07   : > { %3562 = vperm.xlu1 %6991, %v3532_v41  }
0x1e30   : > { %4633 = vxpose.xlu1.b32.start.end [1/1] (short) (narrow) %v3490_v42, 8 }
0x1e7f   : > { %v4480_v45 = vpop.xlane.xlu1 %4479 }
0x1e80   : > { %7036 = vrcp.f32 %v4480_v45 }
0x1e83   : > { %v3563_v2 = vpop.permute.xlu1 %3562 }
0x1e84   : > { %v3758_v44 = vadd.f32 %v7739_v10, %v3563_v2 }
0x1e8d   : > { %v7037_v47 = vpop.eup %7036 }
0x1e8e   : > { %v4482_v48 = vmul.f32 %v7037_v47, %v7035_v40  ;;  %v3534_v40 = vld [vmem:[%s8168_s9 + $0x28] sm:$0xff] }
0x1e90   : > { %6841 = vmatmul.mubr.msk.f32.vlgmr.msra.gmra.mxu0 %vm1173_vm2, %v4482_v48 }
0x1e91   : > { %6849 = vmatpush3.msra.mxu0 %v3758_v44  ;;  %6850 = vmatprep.mubr.msk.f32.mxu0 %vm7074_vm1, %v7073_v17 }
0x1e92   : > { %6858 = vmatprep.subr.mxu0 %v7073_v17 }
0x1eac   : > { %v4649_v7 = vpop.trf.xlu1 }
0x1ead   : > { %6851 = vmatmul.mubr.msk.f32.vlgmr.msra.gmra.mxu0 %vm1173_vm2, %v4649_v7 }
0x1eae   : > { %6860 = vmatprep.mubr.msk.f32.mxu0 %vm7074_vm1, %v7073_v17  ;;  %6859 = vmatpush3.msra.mxu0 %v3824_v1 }
0x1eaf   : > { %6868 = vmatprep.subr.mxu0 %v7073_v17 }
0x1f50   : > { %v4555_v10 = vpop.f32.mrf.mxu0 }
0x1f51   : > { %6846 = vmatmul.mubr.msk.f32.vlgmr.msra.gmra.mxu1 %vm1173_vm2, %v4555_v10 }
0x1f52   : > { %v6842_v50 = vpop.f32.mrf.mxu0  ;;  %6855 = vmatprep.mubr.msk.f32.mxu1 %vm7074_vm1, %v7073_v17 }
0x1f6d   : > { %v4734_v25 = vpop.f32.mrf.mxu0 }
0x1f6e   : > { %v4738_v52 = vmul.f32 0.35355338, %v4734_v25 }
0x1f6f   : > { %v6852_v53 = vpop.f32.mrf.mxu0 }
0x1f70   : > { %v4739_v62 = vsel %vm7345_vm3, %v4738_v52, -1e+30 }
0x1f71   : > { %v4740_v0 = vsel %vm3937_vm7, %v4739_v62, -inf }
0x1f72   : > { %4741 = vmax.xlane.f32.xlu0 %v4740_v0 }
0x1f88   : > { %3363 = vperm.xlu0 %6990, %v3337_v3  }
0x1f8c   : > { %3602 = vperm.xlu0 %6990, %v3540_v9  }
0x1f90   : > { %3567 = vperm.xlu0 %6990, %v3533_v14  }
0x1ffb   : > { %v4742_v8 = vpop.xlane.xlu0 %4741 }
0x1ffc   : > { %v4743_v15 = vsub.f32 %v4739_v62, %v4742_v8  ;;  %v3825_v62 = vld [vmem:[%s8169_s10 + $0x20] sm:$0xff] }
0x1ffe   : > { %v4744_v16 = vmul.f32 1.442695, %v4743_v15 }
0x2000   : > { %7038 = vpow2.f32 %v4744_v16  ;;  %v3339_v16 = vld [vmem:[%s8166_s7 + $0x30] sm:$0xff] }
0x2003   : > { %v3364_v18 = vpop.permute.xlu0 %3363 }
0x2004   : > { %v3495_v26 = vadd.f32 %v7727_v59, %v3364_v18  ;;  %v3542_v18 = vld [vmem:[%s8168_s9 + $0x68] sm:$0xff] }
0x2006   : > { %4901 = vxpose.xlu0.b32.start.end [1/1] (short) (narrow) %v3495_v26, 8  ;;  %v3535_v26 = vld [vmem:[%s8168_s9 + $0x30] sm:$0xff] }
0x2007   : > { %v3603_v6 = vpop.permute.xlu0 %3602 }
0x2008   : > { %v3798_v19 = vadd.f32 %v7807_v5, %v3603_v6 }
0x200a   : > { %6854 = vmatpush3.xpose.msk.msra.mxu1 %vm1173_vm2, %v3798_v19 }
0x200b   : > { %6863 = vmatprep.subr.mxu1 %v7073_v17  ;;  %v3568_v59 = vpop.permute.xlu0 %3567 }
0x200c   : > { %v3763_v5 = vadd.f32 %v7745_v11, %v3568_v59 }
0x200d   : > { %v7039_v57 = vpop.eup %7038 }
0x200e   : > { %v4746_v20 = vsel %vm3937_vm7, %v7039_v57, 0.0 }
0x200f   : > { %4747 = vadd.xlane.f32.xlu1 %v4746_v20 }
0x2011   : > { %v4628_v4 = vpop.f32.mrf.mxu1 }
0x2012   : > { %v4632_v22 = vadd.f32 %v4628_v4, %v4362_v21 }
0x2013   : > { %v6847_v31 = vpop.f32.mrf.mxu1 }
0x2082   : > { %v4917_v33 = vpop.trf.xlu0 }
0x2098   : > { %v4748_v27 = vpop.xlane.xlu1 %4747 }
0x2099   : > { %7040 = vrcp.f32 %v4748_v27 }
0x20a6   : > { %v7041_v30 = vpop.eup %7040 }
0x20a7   : > { %v4750_v32 = vmul.f32 %v7041_v30, %v7039_v57 }
0x20a9   : > { %6856 = vmatmul.mubr.msk.f32.vlgmr.msra.gmra.mxu1 %vm1173_vm2, %v4750_v32 }
0x20aa   : > { %6864 = vmatpush3.msra.mxu1 %v3763_v5  ;;  %6865 = vmatprep.mubr.msk.f32.mxu1 %vm7074_vm1, %v7073_v17 }
0x20ab   : > { %6873 = vmatprep.subr.mxu1 %v7073_v17 }
0x20ad   : > { %6866 = vmatmul.mubr.msk.f32.vlgmr.msra.gmra.mxu1 %vm1173_vm2, %v4917_v33 }
0x20ae   : > { %6875 = vmatprep.mubr.msk.f32.mxu1 %vm7074_vm1, %v7073_v17  ;;  %6874 = vmatpush3.msra.mxu1 %v3825_v62 }
0x20af   : > { %6883 = vmatprep.subr.mxu1 %v7073_v17 }
0x2169   : > { %v4823_v11 = vpop.f32.mrf.mxu1 }
0x216a   : > { %6861 = vmatmul.mubr.msk.f32.vlgmr.msra.gmra.mxu0 %vm1173_vm2, %v4823_v11 }
0x216b   : > { %v6857_v23 = vpop.f32.mrf.mxu1  ;;  %6870 = vmatprep.mubr.msk.f32.mxu0 %vm7074_vm1, %v7073_v17 }
0x216c   : > { %v3826_v23 = vld [vmem:[%s8169_s10 + $0x28] sm:$0xff] }
0x216d   : > { %v5002_v35 = vpop.f32.mrf.mxu1 }
0x216e   : > { %v5006_v29 = vmul.f32 0.35355338, %v5002_v35 }
0x216f   : > { %v6867_v37 = vpop.f32.mrf.mxu1 }
0x2170   : > { %v5007_v24 = vsel %vm7345_vm3, %v5006_v29, -1e+30 }
0x2171   : > { %v5008_v49 = vsel %vm3937_vm7, %v5007_v24, -inf }
0x2172   : > { %5009 = vmax.xlane.f32.xlu1 %v5008_v49 }
0x2183   : > { %3368 = vperm.xlu1 %6991, %v3338_v38  }
0x2187   : > { %3607 = vperm.xlu1 %6991, %v3541_v39   ;;  %v3340_v39 = vld [vmem:[%s8166_s7 + $0x38] sm:$0xff] }
0x218b   : > { %3572 = vperm.xlu1 %6991, %v3534_v40   ;;  %v3543_v40 = vld [vmem:[%s8168_s9 + $0x70] sm:$0xff] }
0x21fb   : > { %v5010_v28 = vpop.xlane.xlu1 %5009 }
0x21fc   : > { %v5011_v41 = vsub.f32 %v5007_v24, %v5010_v28  ;;  %v3536_v28 = vld [vmem:[%s8168_s9 + $0x38] sm:$0xff] }
0x21fe   : > { %v5012_v34 = vmul.f32 1.442695, %v5011_v41 }
0x21ff   : > { %v3369_v42 = vpop.permute.xlu1 %3368 }
0x2200   : > { %7042 = vpow2.f32 %v5012_v34  ;;  %v3500_v45 = vadd.f32 %v7725_v58, %v3369_v42 }
0x2202   : > { %5169 = vxpose.xlu1.b32.start.end [1/1] (short) (narrow) %v3500_v45, 8 }
0x2203   : > { %v3608_v2 = vpop.permute.xlu1 %3607 }
0x2204   : > { %v3803_v47 = vadd.f32 %v7811_v54, %v3608_v2 }
0x2206   : > { %6869 = vmatpush3.xpose.msk.msra.mxu0 %vm1173_vm2, %v3803_v47 }
0x2207   : > { %6878 = vmatprep.subr.mxu0 %v7073_v17  ;;  %v3573_v25 = vpop.permute.xlu1 %3572 }
0x2208   : > { %v3768_v53 = vadd.f32 %v7743_v43, %v3573_v25 }
0x220d   : > { %v7043_v48 = vpop.eup %7042 }
0x220e   : > { %v5014_v44 = vsel %vm3937_vm7, %v7043_v48, 0.0 }
0x220f   : > { %5015 = vadd.xlane.f32.xlu0 %v5014_v44 }
0x222a   : > { %v4896_v7 = vpop.f32.mrf.mxu0 }
0x222b   : > { %v4900_v56 = vadd.f32 %v4896_v7, %v4632_v22 }
0x222c   : > { %v6862_v10 = vpop.f32.mrf.mxu0 }
0x227e   : > { %v5185_v54 = vpop.trf.xlu1 }
0x2298   : > { %v5016_v50 = vpop.xlane.xlu0 %5015 }
0x2299   : > { %7044 = vrcp.f32 %v5016_v50 }
0x22a6   : > { %v7045_v52 = vpop.eup %7044 }
0x22a7   : > { %v5018_v58 = vmul.f32 %v7045_v52, %v7043_v48 }
0x22a9   : > { %6871 = vmatmul.mubr.msk.f32.vlgmr.msra.gmra.mxu0 %vm1173_vm2, %v5018_v58 }
0x22aa   : > { %6879 = vmatpush3.msra.mxu0 %v3768_v53  ;;  %6880 = vmatprep.mubr.msk.f32.mxu0 %vm7074_vm1, %v7073_v17 }
0x22ab   : > { %6888 = vmatprep.subr.mxu0 %v7073_v17 }
0x22ad   : > { %6881 = vmatmul.mubr.msk.f32.vlgmr.msra.gmra.mxu0 %vm1173_vm2, %v5185_v54 }
0x22ae   : > { %6890 = vmatprep.mubr.msk.f32.mxu0 %vm7074_vm1, %v7073_v17  ;;  %6889 = vmatpush3.msra.mxu0 %v3826_v23 }
0x22af   : > { %6898 = vmatprep.subr.mxu0 %v7073_v17 }
0x2369   : > { %v5091_v43 = vpop.f32.mrf.mxu0 }
0x236a   : > { %6876 = vmatmul.mubr.msk.f32.vlgmr.msra.gmra.mxu1 %vm1173_vm2, %v5091_v43 }
0x236b   : > { %v6872_v0 = vpop.f32.mrf.mxu0  ;;  %6885 = vmatprep.mubr.msk.f32.mxu1 %vm7074_vm1, %v7073_v17 }
0x236d   : > { %v5270_v3 = vpop.f32.mrf.mxu0 }
0x236e   : > { %v5274_v9 = vmul.f32 0.35355338, %v5270_v3 }
0x236f   : > { %v6882_v14 = vpop.f32.mrf.mxu0 }
0x2370   : > { %v5275_v8 = vsel %vm7345_vm3, %v5274_v9, -1e+30 }
0x2371   : > { %v5276_v15 = vsel %vm3937_vm7, %v5275_v8, -inf }
0x2372   : > { %5277 = vmax.xlane.f32.xlu0 %v5276_v15 }
0x2388   : > { %3373 = vperm.xlu0 %6990, %v3339_v16  }
0x238c   : > { %3612 = vperm.xlu0 %6990, %v3542_v18  }
0x2390   : > { %3577 = vperm.xlu0 %6990, %v3535_v26  }
0x23fb   : > { %v5278_v6 = vpop.xlane.xlu0 %5277 }
0x23fc   : > { %v5279_v19 = vsub.f32 %v5275_v8, %v5278_v6 }
0x23fe   : > { %v5280_v57 = vmul.f32 1.442695, %v5279_v19 }
0x2400   : > { %7046 = vpow2.f32 %v5280_v57 }
0x2403   : > { %v3374_v20 = vpop.permute.xlu0 %3373 }
0x2404   : > { %v3505_v21 = vadd.f32 %v7731_v61, %v3374_v20 }
0x2406   : > { %5437 = vxpose.xlu0.b32.start.end [1/1] (short) (narrow) %v3505_v21, 8 }
0x2407   : > { %v3613_v4 = vpop.permute.xlu0 %3612 }
0x2408   : > { %v3808_v22 = vadd.f32 %v7809_v46, %v3613_v4 }
0x240a   : > { %6884 = vmatpush3.xpose.msk.msra.mxu1 %vm1173_vm2, %v3808_v22 }
0x240b   : > { %6893 = vmatprep.subr.mxu1 %v7073_v17  ;;  %v3578_v33 = vpop.permute.xlu0 %3577 }
0x240c   : > { %v3773_v11 = vadd.f32 %v7749_v13, %v3578_v33 }
0x240d   : > { %v7047_v31 = vpop.eup %7046 }
0x240e   : > { %v5282_v27 = vsel %vm3937_vm7, %v7047_v31, 0.0 }
0x240f   : > { %5283 = vadd.xlane.f32.xlu1 %v5282_v27 }
0x242a   : > { %v5164_v59 = vpop.f32.mrf.mxu1 }
0x242b   : > { %v5168_v30 = vadd.f32 %v5164_v59, %v4900_v56  ;;  %v3544_v56 = vld [vmem:[%s8168_s9 + $0x78] sm:$0xff] }
0x242c   : > { %v6877_v32 = vpop.f32.mrf.mxu1 }
0x2482   : > { %v5453_v46 = vpop.trf.xlu0 }
0x2498   : > { %v5284_v5 = vpop.xlane.xlu1 %5283 }
0x2499   : > { %7048 = vrcp.f32 %v5284_v5 }
0x24a6   : > { %v7049_v1 = vpop.eup %7048 }
0x24a7   : > { %v5286_v61 = vmul.f32 %v7049_v1, %v7047_v31 }
0x24a9   : > { %6886 = vmatmul.mubr.msk.f32.vlgmr.msra.gmra.mxu1 %vm1173_vm2, %v5286_v61 }
0x24aa   : > { %6894 = vmatpush3.msra.mxu1 %v3773_v11  ;;  %6895 = vmatprep.mubr.msk.f32.mxu1 %vm7074_vm1, %v7073_v17 }
0x24ab   : > { %6903 = vmatprep.subr.mxu1 %v7073_v17 }
0x24ad   : > { %6896 = vmatmul.mubr.msk.f32.vlgmr.msra.gmra.mxu1 %vm1173_vm2, %v5453_v46 }
0x24ae   : > { %6905 = vmatprep.mubr.msk.f32.mxu1 %vm7074_vm1, %v7073_v17 }
0x2569   : > { %v5359_v13 = vpop.f32.mrf.mxu1 }
0x256a   : > { %6891 = vmatmul.mubr.msk.f32.vlgmr.msra.gmra.mxu0 %vm1173_vm2, %v5359_v13 }
0x256b   : > { %v6887_v35 = vpop.f32.mrf.mxu1  ;;  %6900 = vmatprep.mubr.msk.f32.mxu0 %vm7074_vm1, %v7073_v17 }
0x256d   : > { %v5538_v29 = vpop.f32.mrf.mxu1 }
0x256e   : > { %v5542_v37 = vmul.f32 0.35355338, %v5538_v29 }
0x256f   : > { %v6897_v24 = vpop.f32.mrf.mxu1 }
0x2570   : > { %v5543_v49 = vsel %vm7345_vm3, %v5542_v37, -1e+30  ;;  %v6017_v37 = vld [vmem:[%s8171_s12 + $0x38] sm:$0xff]  ;;  %v6015_v24 = vld [vmem:[%s8171_s12 + $0x28] sm:$0xff] }
0x2571   : > { %v5544_v38 = vsel %vm3937_vm7, %v5543_v49, -inf }
0x2572   : > { %5545 = vmax.xlane.f32.xlu1 %v5544_v38  ;;  %v6013_v38 = vld [vmem:[%s8171_s12 + $0x18] sm:$0xff] }
0x2583   : > { %3378 = vperm.xlu1 %6991, %v3340_v39   ;;  %v6012_v39 = vld [vmem:[%s8171_s12 + $0x10] sm:$0xff] }
0x2587   : > { %3617 = vperm.xlu1 %6991, %v3543_v40   ;;  %v6011_v40 = vld [vmem:[%s8171_s12 + $0x8] sm:$0xff] }
0x258b   : > { %3582 = vperm.xlu1 %6991, %v3536_v28   ;;  %v6010_v28 = vld [vmem:[%s8171_s12] sm:$0xff] }
0x25fb   : > { %v5546_v41 = vpop.xlane.xlu1 %5545 }
0x25fc   : > { %v5547_v34 = vsub.f32 %v5543_v49, %v5546_v41  ;;  %v6014_v49 = vld [vmem:[%s8171_s12 + $0x20] sm:$0xff] }
0x25fe   : > { %v5548_v42 = vmul.f32 1.442695, %v5547_v34 }
0x25ff   : > { %v3379_v45 = vpop.permute.xlu1 %3378 }
0x2600   : > { %7050 = vpow2.f32 %v5548_v42  ;;  %v3510_v2 = vadd.f32 %v7729_v60, %v3379_v45 }
0x2602   : > { %5705 = vxpose.xlu1.b32.start.end [1/1] (short) (narrow) %v3510_v2, 8  ;;  %v6423_v2 = vld [vmem:[%s8177_s18] ss:$0 sm:$0xff] }
0x2603   : > { %v3618_v47 = vpop.permute.xlu1 %3617 }
0x2604   : > { %v3813_v48 = vadd.f32 %v7815_v63, %v3618_v47  ;;  %v3827_v63 = vld [vmem:[%s8169_s10 + $0x30] sm:$0xff] }
0x2605   : > { %6904 = vmatpush3.msra.mxu1 %v3827_v63  ;;  %v6118_v63 = vld [vmem:[%s8173_s14 + $0x58] sm:$0xff] }
0x2606   : > { %6899 = vmatpush3.xpose.msk.msra.mxu0 %vm1173_vm2, %v3813_v48  ;;  %6913 = vmatprep.subr.mxu1 %v7073_v17  ;;  %v6424_v48 = vld [vmem:[%s8178_s19] ss:$0 sm:$0xff] }
0x2607   : > { %6908 = vmatprep.subr.mxu0 %v7073_v17  ;;  %v3583_v52 = vpop.permute.xlu1 %3582 }
0x2608   : > { %v3778_v54 = vadd.f32 %v7747_v12, %v3583_v52  ;;  %v6116_v52 = vld [vmem:[%s8173_s14 + $0x48] sm:$0xff] }
0x260d   : > { %v7051_v44 = vpop.eup %7050 }
0x260e   : > { %v5550_v7 = vsel %vm3937_vm7, %v7051_v44, 0.0 }
0x260f   : > { %5551 = vadd.xlane.f32.xlu0 %v5550_v7 }
0x2620   : > { %3622 = vperm.xlu1 %6991, %v3544_v56   ;;  %v6122_v56 = vld [vmem:[%s8173_s14 + $0x78] sm:$0xff] }
0x262a   : > { %v5432_v10 = vpop.f32.mrf.mxu0 }
0x262b   : > { %v5436_v50 = vadd.f32 %v5432_v10, %v5168_v30  ;;  %v6422_v30 = vld [vmem:[%s8170_s11] ss:$0 sm:$0xff]  ;;  %v6121_v10 = vld [vmem:[%s8173_s14 + $0x70] sm:$0xff] }
0x262c   : > { %v6892_v60 = vpop.f32.mrf.mxu0 }
0x262d   : > { %v6119_v60 = vld [vmem:[%s8173_s14 + $0x60] sm:$0xff] }
0x267e   : > { %v5721_v62 = vpop.trf.xlu1 }
0x2698   : > { %v5552_v25 = vpop.xlane.xlu0 %5551 }
0x2699   : > { %7052 = vrcp.f32 %v5552_v25  ;;  %v6117_v25 = vld [vmem:[%s8173_s14 + $0x50] sm:$0xff] }
0x269b   : > { %v3623_v43 = vpop.permute.xlu1 %3622 }
0x269c   : > { %v3818_v0 = vadd.f32 %v7813_v55, %v3623_v43  ;;  %v6111_v43 = vld [vmem:[%s8173_s14 + $0x20] sm:$0xff] }
0x26a6   : > { %v7053_v58 = vpop.eup %7052 }
0x26a7   : > { %v5554_v53 = vmul.f32 %v7053_v58, %v7051_v44  ;;  %v6115_v58 = vld [vmem:[%s8173_s14 + $0x40] sm:$0xff] }
0x26a9   : > { %6901 = vmatmul.mubr.msk.f32.vlgmr.msra.gmra.mxu0 %vm1173_vm2, %v5554_v53  ;;  %v6114_v53 = vld [vmem:[%s8173_s14 + $0x38] sm:$0xff] }
0x26aa   : > { %6909 = vmatpush3.msra.mxu0 %v3778_v54  ;;  %6910 = vmatprep.mubr.msk.f32.mxu0 %vm7074_vm1, %v7073_v17  ;;  %v6113_v54 = vld [vmem:[%s8173_s14 + $0x30] sm:$0xff] }
0x26ab   : > { %6918 = vmatprep.subr.mxu0 %v7073_v17 }
0x26ad   : > { %6911 = vmatmul.mubr.msk.f32.vlgmr.msra.gmra.mxu0 %vm1173_vm2, %v5721_v62  ;;  %v6112_v62 = vld [vmem:[%s8173_s14 + $0x28] sm:$0xff] }
0x26ae   : > { %6920 = vmatprep.mubr.msk.f32.mxu0 %vm7074_vm1, %v7073_v17  ;;  %6919 = vmatpush3.msra.mxu0 %v3828_v51 }
0x26af   : > { %6942 = vmatprep.subr.mxu0 %v7073_v17 }
0x2769   : > { %v5627_v3 = vpop.f32.mrf.mxu0 }
0x276a   : > { %6906 = vmatmul.mubr.msk.f32.vlgmr.msra.gmra.mxu1 %vm1173_vm2, %v5627_v3  ;;  %v6109_v3 = vld [vmem:[%s8173_s14 + $0x10] sm:$0xff] }
0x276b   : > { %6914 = vmatpush3.xpose.msk.msra.mxu1 %vm1173_vm2, %v3818_v0  ;;  %v6902_v12 = vpop.f32.mrf.mxu0  ;;  %6915 = vmatprep.mubr.msk.f32.mxu1 %vm7074_vm1, %v7073_v17  ;;  %v6110_v0 = vld [vmem:[%s8173_s14 + $0x18] sm:$0xff] }
0x276c   : > { %6923 = vmatprep.subr.mxu1 %v7073_v17  ;;  %v6108_v12 = vld [vmem:[%s8173_s14 + $0x8] sm:$0xff] }
0x276d   : > { %v5806_v9 = vpop.f32.mrf.mxu0 }
0x276e   : > { %v5810_v14 = vmul.f32 0.35355338, %v5806_v9  ;;  %v6107_v9 = vld [vmem:[%s8173_s14] sm:$0xff] }
0x276f   : > { %v6912_v8 = vpop.f32.mrf.mxu0 }
0x2770   : > { %v5811_v15 = vsel %vm7345_vm3, %v5810_v14, -1e+30  ;;  %v6425_v14 = vld [vmem:[%s8172_s13] ss:$0 sm:$0xff] }
0x2771   : > { %v5812_v16 = vsel %vm3937_vm7, %v5811_v15, -inf }
0x2772   : > { %5813 = vmax.xlane.f32.xlu0 %v5812_v16 }
0x27fb   : > { %v5814_v55 = vpop.xlane.xlu0 %5813 }
0x27fc   : > { %v5815_v18 = vsub.f32 %v5811_v15, %v5814_v55 }
0x27fe   : > { %v5816_v26 = vmul.f32 1.442695, %v5815_v18 }
0x2800   : > { %7054 = vpow2.f32 %v5816_v26 }
0x280d   : > { %v7055_v6 = vpop.eup %7054 }
0x280e   : > { %v5818_v19 = vsel %vm3937_vm7, %v7055_v6, 0.0 }
0x280f   : > { %5819 = vadd.xlane.f32.xlu0 %v5818_v19 }
0x282a   : > { %v5700_v57 = vpop.f32.mrf.mxu1 }
0x282b   : > { %v5704_v20 = vadd.f32 %v5700_v57, %v5436_v50  ;;  %v6120_v50 = vld [vmem:[%s8173_s14 + $0x68] sm:$0xff] }
0x282c   : > { %v6907_v21 = vpop.f32.mrf.mxu1 }
0x2898   : > { %v5820_v4 = vpop.xlane.xlu0 %5819 }
0x2899   : > { %7056 = vrcp.f32 %v5820_v4 }
0x28a6   : > { %v7057_v22 = vpop.eup %7056 }
0x28a7   : > { %v5822_v31 = vmul.f32 %v7057_v22, %v7055_v6 }
0x28a9   : > { %6916 = vmatmul.mubr.msk.f32.vlgmr.msra.gmra.mxu1 %vm1173_vm2, %v5822_v31 }
0x28aa   : > { %6939 = vmatprep.mubr.msk.f32.mxu1 %vm7074_vm1, %v7073_v17  ;;  %6924 = vmatpush3.msra.mxu1 %v6017_v37 }
0x28ab   : > { %6925 = vmatprep.subr.mxu1 %v7073_v17 }
0x2969   : > { %v5895_v27 = vpop.f32.mrf.mxu1 }
0x296a   : > { %6921 = vmatmul.mubr.msk.f32.vlgmr.msra.gmra.mxu0 %vm1173_vm2, %v5895_v27 }
0x296b   : > { %v6917_v59 = vpop.f32.mrf.mxu1  ;;  %6974 = vmatprep.mubr.msk.f32.mxu0 %vm7074_vm1, %v7073_v17  ;;  %6943 = vmatpush3.msra.mxu0 %v6122_v56 }
0x296c   : > { %6944 = vmatprep.subr.mxu0 %v7073_v17 }
0x296d   : > { %6945 = vmatpush3.msra.mxu0 %v6121_v10 }
0x296e   : > { %6946 = vmatprep.subr.mxu0 %v7073_v17 }
0x296f   : > { %6947 = vmatpush3.msra.mxu0 %v6120_v50 }
0x2970   : > { %6948 = vmatprep.subr.mxu0 %v7073_v17 }
0x2971   : > { %6949 = vmatpush3.msra.mxu0 %v6119_v60 }
0x2972   : > { %6950 = vmatprep.subr.mxu0 %v7073_v17 }
0x2973   : > { %6951 = vmatpush3.msra.mxu0 %v6118_v63 }
0x2974   : > { %6952 = vmatprep.subr.mxu0 %v7073_v17 }
0x2975   : > { %6953 = vmatpush3.msra.mxu0 %v6117_v25 }
0x2976   : > { %6954 = vmatprep.subr.mxu0 %v7073_v17 }
0x2977   : > { %6955 = vmatpush3.msra.mxu0 %v6116_v52 }
0x2978   : > { %6956 = vmatprep.subr.mxu0 %v7073_v17 }
0x2979   : > { %6957 = vmatpush3.msra.mxu0 %v6115_v58 }
0x297a   : > { %6958 = vmatprep.subr.mxu0 %v7073_v17 }
0x297b   : > { %6959 = vmatpush3.msra.mxu0 %v6114_v53 }
0x297c   : > { %6960 = vmatprep.subr.mxu0 %v7073_v17 }
0x297d   : > { %6961 = vmatpush3.msra.mxu0 %v6113_v54 }
0x297e   : > { %6962 = vmatprep.subr.mxu0 %v7073_v17 }
0x297f   : > { %6963 = vmatpush3.msra.mxu0 %v6112_v62 }
0x2980   : > { %6964 = vmatprep.subr.mxu0 %v7073_v17 }
0x2981   : > { %6965 = vmatpush3.msra.mxu0 %v6111_v43 }
0x2982   : > { %6966 = vmatprep.subr.mxu0 %v7073_v17 }
0x2983   : > { %6967 = vmatpush3.msra.mxu0 %v6110_v0 }
0x2984   : > { %6968 = vmatprep.subr.mxu0 %v7073_v17 }
0x2985   : > { %6969 = vmatpush3.msra.mxu0 %v6109_v3 }
0x2986   : > { %6970 = vmatprep.subr.mxu0 %v7073_v17 }
0x2987   : > { %6971 = vmatpush3.msra.mxu0 %v6108_v12 }
0x2988   : > { %6972 = vmatprep.subr.mxu0 %v7073_v17 }
0x2989   : > { %6973 = vmatpush3.msra.mxu0 %v6107_v9 }
0x2a2a   : > { %v5968_v32 = vpop.f32.mrf.mxu0 }
0x2a2b   : > { %v5972_v5 = vadd.f32 %v5968_v32, %v5704_v20 }
0x2a2c   : > { %v6922_v33 = vpop.f32.mrf.mxu0 }
0x2a2d   : > { %v5979_v1 = vadd.f32 %v6422_v30, %v5972_v5 }
0x2a2f   : > { %v5980_v61 = vadd.f32 %v5979_v1, %v7643_v36  ;;  %v6016_v36 = vld [vmem:[%s8171_s12 + $0x30] sm:$0xff] }
0x2a30   : > { %6926 = vmatpush3.msra.mxu1 %v6016_v36 }
0x2a31   : > { %v5983_v11 = vsel %vm3296_vm6, %v5980_v61, 0.0  ;;  %6927 = vmatprep.subr.mxu1 %v7073_v17 }
0x2a32   : > { %5984 = vadd.xlane.f32.xlu0 %v5983_v11  ;;  %6928 = vmatpush3.msra.mxu1 %v6015_v24 }
0x2a33   : > { %6929 = vmatprep.subr.mxu1 %v7073_v17 }
0x2a34   : > { %6930 = vmatpush3.msra.mxu1 %v6014_v49 }
0x2a35   : > { %6931 = vmatprep.subr.mxu1 %v7073_v17 }
0x2a36   : > { %6932 = vmatpush3.msra.mxu1 %v6013_v38 }
0x2a37   : > { %6933 = vmatprep.subr.mxu1 %v7073_v17 }
0x2a38   : > { %6934 = vmatpush3.msra.mxu1 %v6012_v39 }
0x2a39   : > { %6935 = vmatprep.subr.mxu1 %v7073_v17 }
0x2a3a   : > { %6936 = vmatpush3.msra.mxu1 %v6011_v40 }
0x2a3b   : > { %6937 = vmatprep.subr.mxu1 %v7073_v17  ;;  %v6427_v17 = vld [vmem:[%s8174_s15] ss:$0 sm:$0xff] }
0x2a3c   : > { %6938 = vmatpush3.msra.mxu1 %v6010_v28 }
0x2abb   : > { %v5985_v46 = vpop.xlane.xlu0 %5984 }
0x2abc   : > { %v5986_v23 = vmul.f32 0.015625, %v5985_v46 }
0x2abe   : > { %v5987_v13 = vsub.f32 %v5980_v61, %v5986_v23 }
0x2ac0   : > { %v5988_v35 = vmul.f32 %v5987_v13, %v5987_v13 }
0x2ac2   : > { %v5989_v29 = vsel %vm3296_vm6, %v5988_v35, 0.0 }
0x2ac3   : > { %5990 = vadd.xlane.f32.xlu0 %v5989_v29  ;;  %v6429_v29 = vld [vmem:[%s8180_s21] ss:$0 sm:$0xff] }
0x2b4c   : > { %v5991_v41 = vpop.xlane.xlu0 %5990 }
0x2b4d   : > { %v5992_v34 = vmul.f32 0.015625, %v5991_v41 }
0x2b4f   : > { %v5993_v42 = vadd.f32 1e-05, %v5992_v34 }
0x2b51   : > { %7058 = vrsqrt.f32 %v5993_v42 }
0x2b5e   : > { %v7059_v45 = vpop.eup %7058 }
0x2b5f   : > { %v5995_v47 = vmul.f32 %v7059_v45, %v5987_v13  ;;  %v6428_v13 = vld [vmem:[%s8179_s20] ss:$0 sm:$0xff] }
0x2b61   : > { %v6002_v44 = vmul.f32 %v6423_v2, %v5995_v47 }
0x2b63   : > { %v8068_v7 = vadd.f32 %v6424_v48, %v6002_v44 }
0x2b65   : > { %6940 = vmatmul.mubr.msk.f32.vlgmr.msra.gmra.mxu1 %vm866_vm0, %v8068_v7 }
0x2c25   : > { %v6094_v8 = vpop.f32.mrf.mxu1 }
0x2c26   : > { %v6095_v15 = vadd.f32 %v6425_v14, %v6094_v8 }
0x2c27   : > { %v6941_v16 = vpop.f32.mrf.mxu1 }
0x2c28   : > { %v6099_v55 = vmul.f32 0.044715, %v6095_v15  ;;  %v6098_v20 = vmul.f32 0.5, %v6095_v15 }
0x2c2a   : > { %v6100_v18 = vmul.f32 %v6099_v55, %v6095_v15 }
0x2c2c   : > { %v6101_v26 = vmul.f32 %v6100_v18, %v6095_v15 }
0x2c2e   : > { %v6102_v6 = vadd.f32 %v6101_v26, %v6095_v15 }
0x2c30   : > { %v6103_v19 = vmul.f32 0.7978846, %v6102_v6 }
0x2c32   : > { %7060 = vtanh.f32 %v6103_v19 }
0x2c3f   : > { %v7061_v57 = vpop.eup %7060 }
0x2c40   : > { %v6105_v21 = vadd.f32 1.0, %v7061_v57 }
0x2c42   : > { %v6106_v4 = vmul.f32 %v6105_v21, %v6098_v20 }
0x2c44   : > { %6975 = vmatmul.mubr.f32.vlgmr.msra.gmra.mxu0 %v6106_v4 }
0x2d04   : > { %v6196_v22 = vpop.f32.mrf.mxu0 }
0x2d05   : > { %v6197_v31 = vadd.f32 %v6427_v17, %v6196_v22 }
0x2d06   : > { %v6976_v51 = vpop.f32.mrf.mxu0 }
0x2d07   : > { %v6200_v27 = vadd.f32 %v6197_v31, %v8068_v7 }
0x2d09   : > { %v6203_v59 = vsel %vm3296_vm6, %v6200_v27, 0.0 }
0x2d0a   : > { %6204 = vadd.xlane.f32.xlu0 %v6203_v59 }
0x2d93   : > { %v6205_v30 = vpop.xlane.xlu0 %6204 }
0x2d94   : > { %v6206_v32 = vmul.f32 0.015625, %v6205_v30 }
0x2d96   : > { %v6207_v5 = vsub.f32 %v6200_v27, %v6206_v32 }
0x2d98   : > { %v6208_v33 = vmul.f32 %v6207_v5, %v6207_v5 }
0x2d9a   : > { %v6209_v1 = vsel %vm3296_vm6, %v6208_v33, 0.0 }
0x2d9b   : > { %6210 = vadd.xlane.f32.xlu0 %v6209_v1 }
0x2e24   : > { %v6211_v61 = vpop.xlane.xlu0 %6210 }
0x2e25   : > { %v6212_v11 = vmul.f32 0.015625, %v6211_v61 }
0x2e27   : > { %v6213_v46 = vadd.f32 1e-05, %v6212_v11 }
0x2e29   : > { %7062 = vrsqrt.f32 %v6213_v46 }
0x2e36   : > { %v7063_v23 = vpop.eup %7062 }
0x2e37   : > { %v6215_v35 = vmul.f32 %v7063_v23, %v6207_v5 }
0x2e39   : > { %v6222_v37 = vmul.f32 %v6428_v13, %v6215_v35 }
0x2e3b   : > { %v6229_v36 = vadd.f32 %v6429_v29, %v6222_v37 }
0x2e3d   : > { %6230 = vst.msk [vmem:[%s695_s2] sm:$0xf] %vm3296_vm6, %v6229_v36 }
0x2e3e PF: > { %s32_s3 = sadd.s32 1, %s7070_s3  }
0x2e3f   : > { %p29_p4 = scmp.ge.s32.totalorder %s32_s3, 4  }
0x2e41   :  { %31 = sbr.rel (!%p29_p4) target bundleno = 8 (0x8), region = 141 }

</bundles_post_ra>
